<compile_context>
chip_gen: v7x
topology: tpu7x:2x2x1
jax: 0.10.0
libtpu: 0.0.40
codegen_flags: <defaults>
</compile_context>

<pallas_src>
import functools

import numpy as np
import jax
import jax.numpy as jnp
from jax import lax
from jax.experimental import pallas as pl
from jax.experimental.pallas import tpu as pltpu

LANE = 128  # vreg lane width on all TPU generations


def _round_up(x, m):
    return (x + m - 1) // m * m


# ------------------------------ Pallas kernel ------------------------------- #

def _bottleneck_kernel(x_ref, w0_ref, b0_ref, w1_ref, b1_ref, w2_ref, b2_ref,
                       ws_ref, bs_ref, o_ref, y0p_ref, *,
                       stride, use_pool, compute_dtype):
    """One batch image per grid step; all intermediates stay in VMEM / vregs."""
    H, W, Cin = x_ref.shape[1], x_ref.shape[2], x_ref.shape[3]
    Cmid_p = w0_ref.shape[1]
    Cout_p = w2_ref.shape[1]
    Ho, Wo = o_ref.shape[1], o_ref.shape[2]

    x = x_ref[0]                                            # (H, W, Cin) f32

    # --- conv0: 1x1, stride 1, BN(+fold) + ReLU -------------------------------
    y0 = jnp.dot(x.reshape(H * W, Cin).astype(compute_dtype), w0_ref[...],
                 preferred_element_type=jnp.float32)
    y0 = jnp.maximum(y0 + b0_ref[...], 0.0)                 # f32 epilogue

    # --- conv1: 3x3, pad 1, stride s, BN + ReLU --------------------------------
    # 9 accumulated MXU matmuls over shifted slices of a zero-padded VMEM tile
    # (no HBM im2col materialization).
    y0p_ref[...] = jnp.zeros(y0p_ref.shape, y0p_ref.dtype)
    y0p_ref[1:H + 1, 1:W + 1, :] = y0.reshape(H, W, Cmid_p).astype(y0p_ref.dtype)
    y0p = y0p_ref[...]

    acc = jnp.zeros((Ho * Wo, Cmid_p), jnp.float32)
    for t in range(9):
        dh, dw = t // 3, t % 3
        if stride == 1:
            patch = y0p[dh:dh + Ho, dw:dw + Wo, :]
        else:
            span_h = (Ho - 1) * stride + 1
            span_w = (Wo - 1) * stride + 1
            patch = lax.slice(y0p, (dh, dw, 0),
                              (dh + span_h, dw + span_w, Cmid_p),
                              (stride, stride, 1))
        acc = acc + jnp.dot(patch.reshape(Ho * Wo, Cmid_p), w1_ref[t],
                            preferred_element_type=jnp.float32)
    y1 = jnp.maximum(acc + b1_ref[...], 0.0)

    # --- conv2: 1x1, BN (activation deferred until after the residual add) -----
    y2 = jnp.dot(y1.astype(compute_dtype), w2_ref[...],
                 preferred_element_type=jnp.float32) + b2_ref[...]

    # --- shortcut: identity / strided 1x1 conv / (2x2 avg-pool + 1x1 conv) -----
    # All variants are expressed as one MXU matmul against ws (identity => ws == I),
    # so the residual add + final ReLU fuse into this same kernel.
    if use_pool:
        # TODO(synk): matches AvgPool2d(2,2,pad=0) for even H/W only (no ceil_mode).
        xs = 0.25 * (lax.slice(x, (0, 0, 0), (H, W, Cin), (2, 2, 1))
                     + lax.slice(x, (0, 1, 0), (H, W, Cin), (2, 2, 1))
                     + lax.slice(x, (1, 0, 0), (H, W, Cin), (2, 2, 1))
                     + lax.slice(x, (1, 1, 0), (H, W, Cin), (2, 2, 1)))
    elif stride != 1:
        span_h = (Ho - 1) * stride + 1
        span_w = (Wo - 1) * stride + 1
        xs = lax.slice(x, (0, 0, 0), (span_h, span_w, Cin), (stride, stride, 1))
    else:
        xs = x
    sc = jnp.dot(xs.reshape(Ho * Wo, Cin).astype(compute_dtype), ws_ref[...],
                 preferred_element_type=jnp.float32) + bs_ref[...]

    out = jnp.maximum(y2 + sc, 0.0)
    o_ref[0] = out.reshape(Ho, Wo, Cout_p).astype(o_ref.dtype)


# --------------------------- weight preparation ------------------------------ #

def _fold_bn(w_pt, bn, eps=1e-5):
    """Fold inference-mode BN scale into the conv weight; return (kh,kw,Cin,Cout), shift."""
    gamma, beta, mean, var = bn
    scale = gamma / jnp.sqrt(var + eps)
    shift = beta - mean * scale
    w = jnp.transpose(w_pt, (2, 3, 1, 0)) * scale           # (kh, kw, Cin, Cout)
    return w, shift


def _prep_1x1(w_pt, bn, cin_p, cout_p, dtype):
    w, shift = _fold_bn(w_pt, bn)
    w = w[0, 0]                                             # (Cin, Cout)
    cin, cout = w.shape
    w = jnp.pad(w, ((0, cin_p - cin), (0, cout_p - cout))).astype(dtype)
    shift = jnp.pad(shift, (0, cout_p - cout)).reshape(1, cout_p).astype(jnp.float32)
    return w, shift


def _prep_3x3(w_pt, bn, cin_p, cout_p, dtype):
    w, shift = _fold_bn(w_pt, bn)                           # (3, 3, Cin, Cout)
    _, _, cin, cout = w.shape
    w = jnp.pad(w, ((0, 0), (0, 0), (0, cin_p - cin), (0, cout_p - cout)))
    w = w.reshape(9, cin_p, cout_p).astype(dtype)
    shift = jnp.pad(shift, (0, cout_p - cout)).reshape(1, cout_p).astype(jnp.float32)
    return w, shift


# --------------------------------- wrapper ----------------------------------- #

def bottleneck_forward(x_nhwc, params, stride, if_first, in_c, out_c,
                       compute_dtype=jnp.bfloat16):
    """BottleneckBlock.forward on an NHWC f32 input, as one fused Pallas kernel."""
    N, H, W, Cin = x_nhwc.shape
    assert Cin == in_c
    Cout = 4 * out_c
    Cmid_p = _round_up(out_c, LANE)
    Cout_p = _round_up(Cout, LANE)
    Ho = (H + 2 - 3) // stride + 1
    Wo = (W + 2 - 3) // stride + 1

    w0, b0 = _prep_1x1(params['w0'], params['bn0'], Cin, Cmid_p, compute_dtype)
    w1, b1 = _prep_3x3(params['w1'], params['bn1'], Cmid_p, Cmid_p, compute_dtype)
    w2, b2 = _prep_1x1(params['w2'], params['bn2'], Cmid_p, Cout_p, compute_dtype)

    # Shortcut config (mirrors torchocr ShortCut).  Identity becomes a 1x1 matmul
    # against an identity weight so every variant fuses into the same kernel.
    use_pool = False
    if in_c != Cout or stride != 1:
        if if_first:
            ws, bs = _prep_1x1(params['ws'], params['bns'], Cin, Cout_p, compute_dtype)
        else:
            use_pool = True
            ws, bs = _prep_1x1(params['ws'], params['bns'], Cin, Cout_p, compute_dtype)
    elif if_first:
        ws, bs = _prep_1x1(params['ws'], params['bns'], Cin, Cout_p, compute_dtype)
    else:
        ws = jnp.pad(jnp.eye(Cin, dtype=jnp.float32),
                     ((0, 0), (0, Cout_p - Cin))).astype(compute_dtype)
        bs = jnp.zeros((1, Cout_p), jnp.float32)

    kernel = functools.partial(_bottleneck_kernel, stride=stride,
                               use_pool=use_pool, compute_dtype=compute_dtype)

    out = pl.pallas_call(
        kernel,
        out_shape=jax.ShapeDtypeStruct((N, Ho, Wo, Cout_p), jnp.float32),
        grid=(N,),                       # >= 2 parallel steps -> both v7x TCs busy
        in_specs=[
            pl.BlockSpec((1, H, W, Cin), lambda n: (n, 0, 0, 0)),     # activations
            pl.BlockSpec((Cin, Cmid_p), lambda n: (0, 0)),            # w0 (resident)
            pl.BlockSpec((1, Cmid_p), lambda n: (0, 0)),              # bn0 shift
            pl.BlockSpec((9, Cmid_p, Cmid_p), lambda n: (0, 0, 0)),   # w1 taps
            pl.BlockSpec((1, Cmid_p), lambda n: (0, 0)),              # bn1 shift
            pl.BlockSpec((Cmid_p, Cout_p), lambda n: (0, 0)),         # w2
            pl.BlockSpec((1, Cout_p), lambda n: (0, 0)),              # bn2 shift
            pl.BlockSpec((Cin, Cout_p), lambda n: (0, 0)),            # shortcut w
            pl.BlockSpec((1, Cout_p), lambda n: (0, 0)),              # shortcut shift
        ],
        out_specs=pl.BlockSpec((1, Ho, Wo, Cout_p), lambda n: (n, 0, 0, 0)),
        scratch_shapes=[pltpu.VMEM((H + 2, W + 2, Cmid_p), compute_dtype)],
        compiler_params=pltpu.CompilerParams(
            dimension_semantics=("parallel",)),
    )(x_nhwc, w0, b0, w1, b1, w2, b2, ws, bs)

    return out[..., :Cout]               # drop the (all-zero) lane-padding channels


# --------------------------- pure-JAX reference ------------------------------ #

def _ref_conv_bn(x, w_pt, bn, stride, pad, relu):
    y = lax.conv_general_dilated(
        x, jnp.transpose(w_pt, (2, 3, 1, 0)), (stride, stride),
        [(pad, pad), (pad, pad)],
        dimension_numbers=('NHWC', 'HWIO', 'NHWC'),
        precision=lax.Precision.HIGHEST)
    g, b, m, v = bn
    y = (y - m) / jnp.sqrt(v + 1e-5) * g + b
    if relu:
        y = jnp.maximum(y, 0.0)
    return y


def _avg_pool_2x2(x):
    N, H, W, C = x.shape
    return x.reshape(N, H // 2, 2, W // 2, 2, C).mean(axis=(2, 4))


def ref_forward(x, params, stride, if_first, in_c, out_c):
    y = _ref_conv_bn(x, params['w0'], params['bn0'], 1, 0, True)
    y = _ref_conv_bn(y, params['w1'], params['bn1'], stride, 1, True)
    y = _ref_conv_bn(y, params['w2'], params['bn2'], 1, 0, False)
    oc4 = out_c * 4
    if in_c != oc4 or stride != 1:
        if if_first:
            sc = _ref_conv_bn(x, params['ws'], params['bns'], stride, 0, False)
        else:
            sc = _ref_conv_bn(_avg_pool_2x2(x), params['ws'], params['bns'],
                              1, 0, False)
    elif if_first:
        sc = _ref_conv_bn(x, params['ws'], params['bns'], stride, 0, False)
    else:
        sc = x
    return jnp.maximum(y + sc, 0.0)


# ----------------------------------- main ------------------------------------ #

def _make_bn(key, c):
    k1, k2, k3, k4 = jax.random.split(key, 4)
    gamma = 0.5 + jax.random.uniform(k1, (c,), jnp.float32)
    beta = 0.1 * jax.random.normal(k2, (c,), jnp.float32)
    mean = 0.1 * jax.random.normal(k3, (c,), jnp.float32)
    var = 0.5 + jax.random.uniform(k4, (c,), jnp.float32)
    return (gamma, beta, mean, var)


if __name__ == "__main__":
    key = jax.random.PRNGKey(0)
    N, in_c, H, W = 2, 16, 16, 16
    out_c, stride, if_first = 8, 1, True          # output_channels = 32

    keys = jax.random.split(key, 10)
    x_nchw = jax.random.normal(keys[0], (N, in_c, H, W), jnp.float32)

    params = {
        'w0': 0.1 * jax.random.normal(keys[1], (out_c, in_c, 1, 1), jnp.float32),
        'bn0': _make_bn(keys[2], out_c),
        'w1': 0.1 * jax.random.normal(keys[3], (out_c, out_c, 3, 3), jnp.float32),
        'bn1': _make_bn(keys[4], out_c),
        'w2': 0.1 * jax.random.normal(keys[5], (4 * out_c, out_c, 1, 1), jnp.float32),
        'bn2': _make_bn(keys[6], 4 * out_c),
        'ws': 0.1 * jax.random.normal(keys[7], (4 * out_c, in_c, 1, 1), jnp.float32),
        'bns': _make_bn(keys[8], 4 * out_c),
    }

    x_nhwc = jnp.transpose(x_nchw, (0, 2, 3, 1))   # NCHW -> NHWC

    ref = ref_forward(x_nhwc, params, stride, if_first, in_c, out_c)

    # Exact f32 MXU path: tight numerical check against the f32 reference.
    out_f32 = bottleneck_forward(x_nhwc, params, stride, if_first, in_c, out_c,
                                 compute_dtype=jnp.float32)
    out_f32 = jax.block_until_ready(out_f32)
    assert out_f32.shape == (N, H // stride, W // stride, 4 * out_c), out_f32.shape
    np.testing.assert_allclose(np.asarray(out_f32), np.asarray(ref),
                               rtol=2e-3, atol=2e-3)

    # bf16-operand MXU path (fast path on v6e/v7x): looser tolerance vs f32 reference.
    out_bf16 = bottleneck_forward(x_nhwc, params, stride, if_first, in_c, out_c,
                                  compute_dtype=jnp.bfloat16)
    out_bf16 = jax.block_until_ready(out_bf16)
    assert out_bf16.shape == (N, H // stride, W // stride, 4 * out_c), out_bf16.shape
    np.testing.assert_allclose(np.asarray(out_bf16), np.asarray(ref),
                               rtol=6e-2, atol=6e-2)

    print("KERNEL_OK")
</pallas_src>

<mosaic_0001>
module attributes {stable_mosaic.version = 11 : i64} {
  func.func @_bottleneck_kernel(%arg0: i32, %arg1: memref<1x16x16x16xf32, #tpu.memory_space<vmem>>, %arg2: memref<16x128xf32, #tpu.memory_space<vmem>>, %arg3: memref<1x128xf32, #tpu.memory_space<vmem>>, %arg4: memref<9x128x128xf32, #tpu.memory_space<vmem>>, %arg5: memref<1x128xf32, #tpu.memory_space<vmem>>, %arg6: memref<128x128xf32, #tpu.memory_space<vmem>>, %arg7: memref<1x128xf32, #tpu.memory_space<vmem>>, %arg8: memref<16x128xf32, #tpu.memory_space<vmem>>, %arg9: memref<1x128xf32, #tpu.memory_space<vmem>>, %arg10: memref<1x16x16x128xf32, #tpu.memory_space<vmem>>, %arg11: memref<18x18x128xf32, #tpu.memory_space<vmem>>) attributes {dimension_semantics = [#tpu.dimension_semantics<parallel>], iteration_bounds = array<i64: 2>, scalar_prefetch = 0 : i64, scratch_operands = 1 : i64, tpu.core_type = #tpu.core_type<tc>, window_params = [{transform_indices = @transform_0, window_bounds = array<i64: 1, 16, 16, 16>}, {pipeline_mode = #tpu.pipeline_mode<synchronous>, transform_indices = @transform_1, window_bounds = array<i64: 16, 128>}, {pipeline_mode = #tpu.pipeline_mode<synchronous>, transform_indices = @transform_2, window_bounds = array<i64: 1, 128>}, {pipeline_mode = #tpu.pipeline_mode<synchronous>, transform_indices = @transform_3, window_bounds = array<i64: 9, 128, 128>}, {pipeline_mode = #tpu.pipeline_mode<synchronous>, transform_indices = @transform_4, window_bounds = array<i64: 1, 128>}, {pipeline_mode = #tpu.pipeline_mode<synchronous>, transform_indices = @transform_5, window_bounds = array<i64: 128, 128>}, {pipeline_mode = #tpu.pipeline_mode<synchronous>, transform_indices = @transform_6, window_bounds = array<i64: 1, 128>}, {pipeline_mode = #tpu.pipeline_mode<synchronous>, transform_indices = @transform_7, window_bounds = array<i64: 16, 128>}, {pipeline_mode = #tpu.pipeline_mode<synchronous>, transform_indices = @transform_8, window_bounds = array<i64: 1, 128>}, {transform_indices = @transform_9, window_bounds = array<i64: 1, 16, 16, 128>}]} {
    %c0 = arith.constant 0 : index
    %c0_0 = arith.constant 0 : index
    %c0_1 = arith.constant 0 : index
    %c0_2 = arith.constant 0 : index
    %0 = vector.load %arg1[%c0, %c0_0, %c0_1, %c0_2] : memref<1x16x16x16xf32, #tpu.memory_space<vmem>>, vector<1x16x16x16xf32>
    %1 = vector.shape_cast %0 : vector<1x16x16x16xf32> to vector<16x16x16xf32>
    %2 = vector.shape_cast %1 : vector<16x16x16xf32> to vector<256x16xf32>
    %c0_3 = arith.constant 0 : index
    %c0_4 = arith.constant 0 : index
    %3 = vector.load %arg2[%c0_3, %c0_4] : memref<16x128xf32, #tpu.memory_space<vmem>>, vector<16x128xf32>
    %cst = arith.constant dense<0.000000e+00> : vector<256x128xf32>
    %4 = tpu.matmul %2, %3, %cst {dimension_numbers = #tpu.dot_dimension_numbers<[1], [0], [0], [1], [0, 0, 1, 1], [], []>} : vector<256x16xf32>, vector<16x128xf32>, vector<256x128xf32> -> vector<256x128xf32>
    %c0_5 = arith.constant 0 : index
    %c0_6 = arith.constant 0 : index
    %5 = vector.load %arg3[%c0_5, %c0_6] : memref<1x128xf32, #tpu.memory_space<vmem>>, vector<1x128xf32>
    %6 = vector.broadcast %5 : vector<1x128xf32> to vector<256x128xf32>
    %7 = arith.addf %4, %6 : vector<256x128xf32>
    %cst_7 = arith.constant 0.000000e+00 : f32
    %8 = vector.broadcast %cst_7 : f32 to vector<256x128xf32>
    %9 = arith.maximumf %7, %8 : vector<256x128xf32>
    %cst_8 = arith.constant 0.000000e+00 : f32
    %10 = vector.broadcast %cst_8 : f32 to vector<18x18x128xf32>
    %c0_9 = arith.constant 0 : index
    %c0_10 = arith.constant 0 : index
    %c0_11 = arith.constant 0 : index
    %11 = vector.load %arg11[%c0_9, %c0_10, %c0_11] : memref<18x18x128xf32, #tpu.memory_space<vmem>>, vector<18x18x128xf32>
    tpu.vector_store %arg11[%c0_9, %c0_10, %c0_11], %10 {strides = array<i32>} : memref<18x18x128xf32, #tpu.memory_space<vmem>>, vector<18x18x128xf32>,
    %12 = vector.shape_cast %9 : vector<256x128xf32> to vector<16x16x128xf32>
    %c1 = arith.constant 1 : index
    %c1_12 = arith.constant 1 : index
    %c0_13 = arith.constant 0 : index
    %13 = vector.load %arg11[%c1, %c1_12, %c0_13] : memref<18x18x128xf32, #tpu.memory_space<vmem>>, vector<16x16x128xf32>
    tpu.vector_store %arg11[%c1, %c1_12, %c0_13], %12 {strides = array<i32>} : memref<18x18x128xf32, #tpu.memory_space<vmem>>, vector<16x16x128xf32>,
    %c0_14 = arith.constant 0 : index
    %c0_15 = arith.constant 0 : index
    %c0_16 = arith.constant 0 : index
    %14 = vector.load %arg11[%c0_14, %c0_15, %c0_16] : memref<18x18x128xf32, #tpu.memory_space<vmem>>, vector<18x18x128xf32>
    %cst_17 = arith.constant 0.000000e+00 : f32
    %15 = vector.broadcast %cst_17 : f32 to vector<256x128xf32>
    %16 = vector.extract_strided_slice %14 {offsets = [0, 0, 0], sizes = [16, 16, 128], strides = [1, 1, 1]} : vector<18x18x128xf32> to vector<16x16x128xf32>
    %17 = vector.shape_cast %16 : vector<16x16x128xf32> to vector<256x128xf32>
    %c0_18 = arith.constant 0 : index
    %c0_19 = arith.constant 0 : index
    %c0_20 = arith.constant 0 : index
    %18 = vector.load %arg4[%c0_18, %c0_19, %c0_20] : memref<9x128x128xf32, #tpu.memory_space<vmem>>, vector<1x128x128xf32>
    %19 = vector.shape_cast %18 : vector<1x128x128xf32> to vector<128x128xf32>
    %cst_21 = arith.constant dense<0.000000e+00> : vector<256x128xf32>
    %20 = tpu.matmul %17, %19, %cst_21 {dimension_numbers = #tpu.dot_dimension_numbers<[1], [0], [0], [1], [0, 0, 1, 1], [], []>} : vector<256x128xf32>, vector<128x128xf32>, vector<256x128xf32> -> vector<256x128xf32>
    %21 = arith.addf %15, %20 : vector<256x128xf32>
    %22 = vector.extract_strided_slice %14 {offsets = [0, 1, 0], sizes = [16, 16, 128], strides = [1, 1, 1]} : vector<18x18x128xf32> to vector<16x16x128xf32>
    %23 = vector.shape_cast %22 : vector<16x16x128xf32> to vector<256x128xf32>
    %c1_22 = arith.constant 1 : index
    %c0_23 = arith.constant 0 : index
    %c0_24 = arith.constant 0 : index
    %24 = vector.load %arg4[%c1_22, %c0_23, %c0_24] : memref<9x128x128xf32, #tpu.memory_space<vmem>>, vector<1x128x128xf32>
    %25 = vector.shape_cast %24 : vector<1x128x128xf32> to vector<128x128xf32>
    %cst_25 = arith.constant dense<0.000000e+00> : vector<256x128xf32>
    %26 = tpu.matmul %23, %25, %cst_25 {dimension_numbers = #tpu.dot_dimension_numbers<[1], [0], [0], [1], [0, 0, 1, 1], [], []>} : vector<256x128xf32>, vector<128x128xf32>, vector<256x128xf32> -> vector<256x128xf32>
    %27 = arith.addf %21, %26 : vector<256x128xf32>
    %28 = vector.extract_strided_slice %14 {offsets = [0, 2, 0], sizes = [16, 16, 128], strides = [1, 1, 1]} : vector<18x18x128xf32> to vector<16x16x128xf32>
    %29 = vector.shape_cast %28 : vector<16x16x128xf32> to vector<256x128xf32>
    %c2 = arith.constant 2 : index
    %c0_26 = arith.constant 0 : index
    %c0_27 = arith.constant 0 : index
    %30 = vector.load %arg4[%c2, %c0_26, %c0_27] : memref<9x128x128xf32, #tpu.memory_space<vmem>>, vector<1x128x128xf32>
    %31 = vector.shape_cast %30 : vector<1x128x128xf32> to vector<128x128xf32>
    %cst_28 = arith.constant dense<0.000000e+00> : vector<256x128xf32>
    %32 = tpu.matmul %29, %31, %cst_28 {dimension_numbers = #tpu.dot_dimension_numbers<[1], [0], [0], [1], [0, 0, 1, 1], [], []>} : vector<256x128xf32>, vector<128x128xf32>, vector<256x128xf32> -> vector<256x128xf32>
    %33 = arith.addf %27, %32 : vector<256x128xf32>
    %34 = vector.extract_strided_slice %14 {offsets = [1, 0, 0], sizes = [16, 16, 128], strides = [1, 1, 1]} : vector<18x18x128xf32> to vector<16x16x128xf32>
    %35 = vector.shape_cast %34 : vector<16x16x128xf32> to vector<256x128xf32>
    %c3 = arith.constant 3 : index
    %c0_29 = arith.constant 0 : index
    %c0_30 = arith.constant 0 : index
    %36 = vector.load %arg4[%c3, %c0_29, %c0_30] : memref<9x128x128xf32, #tpu.memory_space<vmem>>, vector<1x128x128xf32>
    %37 = vector.shape_cast %36 : vector<1x128x128xf32> to vector<128x128xf32>
    %cst_31 = arith.constant dense<0.000000e+00> : vector<256x128xf32>
    %38 = tpu.matmul %35, %37, %cst_31 {dimension_numbers = #tpu.dot_dimension_numbers<[1], [0], [0], [1], [0, 0, 1, 1], [], []>} : vector<256x128xf32>, vector<128x128xf32>, vector<256x128xf32> -> vector<256x128xf32>
    %39 = arith.addf %33, %38 : vector<256x128xf32>
    %40 = vector.extract_strided_slice %14 {offsets = [1, 1, 0], sizes = [16, 16, 128], strides = [1, 1, 1]} : vector<18x18x128xf32> to vector<16x16x128xf32>
    %41 = vector.shape_cast %40 : vector<16x16x128xf32> to vector<256x128xf32>
    %c4 = arith.constant 4 : index
    %c0_32 = arith.constant 0 : index
    %c0_33 = arith.constant 0 : index
    %42 = vector.load %arg4[%c4, %c0_32, %c0_33] : memref<9x128x128xf32, #tpu.memory_space<vmem>>, vector<1x128x128xf32>
    %43 = vector.shape_cast %42 : vector<1x128x128xf32> to vector<128x128xf32>
    %cst_34 = arith.constant dense<0.000000e+00> : vector<256x128xf32>
    %44 = tpu.matmul %41, %43, %cst_34 {dimension_numbers = #tpu.dot_dimension_numbers<[1], [0], [0], [1], [0, 0, 1, 1], [], []>} : vector<256x128xf32>, vector<128x128xf32>, vector<256x128xf32> -> vector<256x128xf32>
    %45 = arith.addf %39, %44 : vector<256x128xf32>
    %46 = vector.extract_strided_slice %14 {offsets = [1, 2, 0], sizes = [16, 16, 128], strides = [1, 1, 1]} : vector<18x18x128xf32> to vector<16x16x128xf32>
    %47 = vector.shape_cast %46 : vector<16x16x128xf32> to vector<256x128xf32>
    %c5 = arith.constant 5 : index
    %c0_35 = arith.constant 0 : index
    %c0_36 = arith.constant 0 : index
    %48 = vector.load %arg4[%c5, %c0_35, %c0_36] : memref<9x128x128xf32, #tpu.memory_space<vmem>>, vector<1x128x128xf32>
    %49 = vector.shape_cast %48 : vector<1x128x128xf32> to vector<128x128xf32>
    %cst_37 = arith.constant dense<0.000000e+00> : vector<256x128xf32>
    %50 = tpu.matmul %47, %49, %cst_37 {dimension_numbers = #tpu.dot_dimension_numbers<[1], [0], [0], [1], [0, 0, 1, 1], [], []>} : vector<256x128xf32>, vector<128x128xf32>, vector<256x128xf32> -> vector<256x128xf32>
    %51 = arith.addf %45, %50 : vector<256x128xf32>
    %52 = vector.extract_strided_slice %14 {offsets = [2, 0, 0], sizes = [16, 16, 128], strides = [1, 1, 1]} : vector<18x18x128xf32> to vector<16x16x128xf32>
    %53 = vector.shape_cast %52 : vector<16x16x128xf32> to vector<256x128xf32>
    %c6 = arith.constant 6 : index
    %c0_38 = arith.constant 0 : index
    %c0_39 = arith.constant 0 : index
    %54 = vector.load %arg4[%c6, %c0_38, %c0_39] : memref<9x128x128xf32, #tpu.memory_space<vmem>>, vector<1x128x128xf32>
    %55 = vector.shape_cast %54 : vector<1x128x128xf32> to vector<128x128xf32>
    %cst_40 = arith.constant dense<0.000000e+00> : vector<256x128xf32>
    %56 = tpu.matmul %53, %55, %cst_40 {dimension_numbers = #tpu.dot_dimension_numbers<[1], [0], [0], [1], [0, 0, 1, 1], [], []>} : vector<256x128xf32>, vector<128x128xf32>, vector<256x128xf32> -> vector<256x128xf32>
    %57 = arith.addf %51, %56 : vector<256x128xf32>
    %58 = vector.extract_strided_slice %14 {offsets = [2, 1, 0], sizes = [16, 16, 128], strides = [1, 1, 1]} : vector<18x18x128xf32> to vector<16x16x128xf32>
    %59 = vector.shape_cast %58 : vector<16x16x128xf32> to vector<256x128xf32>
    %c7 = arith.constant 7 : index
    %c0_41 = arith.constant 0 : index
    %c0_42 = arith.constant 0 : index
    %60 = vector.load %arg4[%c7, %c0_41, %c0_42] : memref<9x128x128xf32, #tpu.memory_space<vmem>>, vector<1x128x128xf32>
    %61 = vector.shape_cast %60 : vector<1x128x128xf32> to vector<128x128xf32>
    %cst_43 = arith.constant dense<0.000000e+00> : vector<256x128xf32>
    %62 = tpu.matmul %59, %61, %cst_43 {dimension_numbers = #tpu.dot_dimension_numbers<[1], [0], [0], [1], [0, 0, 1, 1], [], []>} : vector<256x128xf32>, vector<128x128xf32>, vector<256x128xf32> -> vector<256x128xf32>
    %63 = arith.addf %57, %62 : vector<256x128xf32>
    %64 = vector.extract_strided_slice %14 {offsets = [2, 2, 0], sizes = [16, 16, 128], strides = [1, 1, 1]} : vector<18x18x128xf32> to vector<16x16x128xf32>
    %65 = vector.shape_cast %64 : vector<16x16x128xf32> to vector<256x128xf32>
    %c8 = arith.constant 8 : index
    %c0_44 = arith.constant 0 : index
    %c0_45 = arith.constant 0 : index
    %66 = vector.load %arg4[%c8, %c0_44, %c0_45] : memref<9x128x128xf32, #tpu.memory_space<vmem>>, vector<1x128x128xf32>
    %67 = vector.shape_cast %66 : vector<1x128x128xf32> to vector<128x128xf32>
    %cst_46 = arith.constant dense<0.000000e+00> : vector<256x128xf32>
    %68 = tpu.matmul %65, %67, %cst_46 {dimension_numbers = #tpu.dot_dimension_numbers<[1], [0], [0], [1], [0, 0, 1, 1], [], []>} : vector<256x128xf32>, vector<128x128xf32>, vector<256x128xf32> -> vector<256x128xf32>
    %69 = arith.addf %63, %68 : vector<256x128xf32>
    %c0_47 = arith.constant 0 : index
    %c0_48 = arith.constant 0 : index
    %70 = vector.load %arg5[%c0_47, %c0_48] : memref<1x128xf32, #tpu.memory_space<vmem>>, vector<1x128xf32>
    %71 = vector.broadcast %70 : vector<1x128xf32> to vector<256x128xf32>
    %72 = arith.addf %69, %71 : vector<256x128xf32>
    %cst_49 = arith.constant 0.000000e+00 : f32
    %73 = vector.broadcast %cst_49 : f32 to vector<256x128xf32>
    %74 = arith.maximumf %72, %73 : vector<256x128xf32>
    %c0_50 = arith.constant 0 : index
    %c0_51 = arith.constant 0 : index
    %75 = vector.load %arg6[%c0_50, %c0_51] : memref<128x128xf32, #tpu.memory_space<vmem>>, vector<128x128xf32>
    %cst_52 = arith.constant dense<0.000000e+00> : vector<256x128xf32>
    %76 = tpu.matmul %74, %75, %cst_52 {dimension_numbers = #tpu.dot_dimension_numbers<[1], [0], [0], [1], [0, 0, 1, 1], [], []>} : vector<256x128xf32>, vector<128x128xf32>, vector<256x128xf32> -> vector<256x128xf32>
    %c0_53 = arith.constant 0 : index
    %c0_54 = arith.constant 0 : index
    %77 = vector.load %arg7[%c0_53, %c0_54] : memref<1x128xf32, #tpu.memory_space<vmem>>, vector<1x128xf32>
    %78 = vector.broadcast %77 : vector<1x128xf32> to vector<256x128xf32>
    %79 = arith.addf %76, %78 : vector<256x128xf32>
    %80 = vector.shape_cast %1 : vector<16x16x16xf32> to vector<256x16xf32>
    %c0_55 = arith.constant 0 : index
    %c0_56 = arith.constant 0 : index
    %81 = vector.load %arg8[%c0_55, %c0_56] : memref<16x128xf32, #tpu.memory_space<vmem>>, vector<16x128xf32>
    %cst_57 = arith.constant dense<0.000000e+00> : vector<256x128xf32>
    %82 = tpu.matmul %80, %81, %cst_57 {dimension_numbers = #tpu.dot_dimension_numbers<[1], [0], [0], [1], [0, 0, 1, 1], [], []>} : vector<256x16xf32>, vector<16x128xf32>, vector<256x128xf32> -> vector<256x128xf32>
    %c0_58 = arith.constant 0 : index
    %c0_59 = arith.constant 0 : index
    %83 = vector.load %arg9[%c0_58, %c0_59] : memref<1x128xf32, #tpu.memory_space<vmem>>, vector<1x128xf32>
    %84 = vector.broadcast %83 : vector<1x128xf32> to vector<256x128xf32>
    %85 = arith.addf %82, %84 : vector<256x128xf32>
    %86 = arith.addf %79, %85 : vector<256x128xf32>
    %cst_60 = arith.constant 0.000000e+00 : f32
    %87 = vector.broadcast %cst_60 : f32 to vector<256x128xf32>
    %88 = arith.maximumf %86, %87 : vector<256x128xf32>
    %89 = vector.shape_cast %88 : vector<256x128xf32> to vector<16x16x128xf32>
    %c0_61 = arith.constant 0 : index
    %c0_62 = arith.constant 0 : index
    %c0_63 = arith.constant 0 : index
    %c0_64 = arith.constant 0 : index
    %90 = vector.load %arg10[%c0_61, %c0_62, %c0_63, %c0_64] : memref<1x16x16x128xf32, #tpu.memory_space<vmem>>, vector<1x16x16x128xf32>
    %91 = vector.shape_cast %90 : vector<1x16x16x128xf32> to vector<16x16x128xf32>
    %92 = vector.shape_cast %89 : vector<16x16x128xf32> to vector<1x16x16x128xf32>
    tpu.vector_store %arg10[%c0_61, %c0_62, %c0_63, %c0_64], %92 {strides = array<i32>} : memref<1x16x16x128xf32, #tpu.memory_space<vmem>>, vector<1x16x16x128xf32>,
    return
  }
  func.func @transform_0(%arg0: i32) -> (i32, i32, i32, i32) {
    %c0_i32 = arith.constant 0 : i32
    %c0_i32_0 = arith.constant 0 : i32
    %c0_i32_1 = arith.constant 0 : i32
    %c0_i32_2 = arith.constant 0 : i32
    return %arg0, %c0_i32, %c0_i32_0, %c0_i32_1 : i32, i32, i32, i32
  }
  func.func @transform_1(%arg0: i32) -> (i32, i32) {
    %c0_i32 = arith.constant 0 : i32
    %c0_i32_0 = arith.constant 0 : i32
    %c0_i32_1 = arith.constant 0 : i32
    return %c0_i32, %c0_i32_0 : i32, i32
  }
  func.func @transform_2(%arg0: i32) -> (i32, i32) {
    %c0_i32 = arith.constant 0 : i32
    %c0_i32_0 = arith.constant 0 : i32
    %c0_i32_1 = arith.constant 0 : i32
    return %c0_i32, %c0_i32_0 : i32, i32
  }
  func.func @transform_3(%arg0: i32) -> (i32, i32, i32) {
    %c0_i32 = arith.constant 0 : i32
    %c0_i32_0 = arith.constant 0 : i32
    %c0_i32_1 = arith.constant 0 : i32
    %c0_i32_2 = arith.constant 0 : i32
    return %c0_i32, %c0_i32_0, %c0_i32_1 : i32, i32, i32
  }
  func.func @transform_4(%arg0: i32) -> (i32, i32) {
    %c0_i32 = arith.constant 0 : i32
    %c0_i32_0 = arith.constant 0 : i32
    %c0_i32_1 = arith.constant 0 : i32
    return %c0_i32, %c0_i32_0 : i32, i32
  }
  func.func @transform_5(%arg0: i32) -> (i32, i32) {
    %c0_i32 = arith.constant 0 : i32
    %c0_i32_0 = arith.constant 0 : i32
    %c0_i32_1 = arith.constant 0 : i32
    return %c0_i32, %c0_i32_0 : i32, i32
  }
  func.func @transform_6(%arg0: i32) -> (i32, i32) {
    %c0_i32 = arith.constant 0 : i32
    %c0_i32_0 = arith.constant 0 : i32
    %c0_i32_1 = arith.constant 0 : i32
    return %c0_i32, %c0_i32_0 : i32, i32
  }
  func.func @transform_7(%arg0: i32) -> (i32, i32) {
    %c0_i32 = arith.constant 0 : i32
    %c0_i32_0 = arith.constant 0 : i32
    %c0_i32_1 = arith.constant 0 : i32
    return %c0_i32, %c0_i32_0 : i32, i32
  }
  func.func @transform_8(%arg0: i32) -> (i32, i32) {
    %c0_i32 = arith.constant 0 : i32
    %c0_i32_0 = arith.constant 0 : i32
    %c0_i32_1 = arith.constant 0 : i32
    return %c0_i32, %c0_i32_0 : i32, i32
  }
  func.func @transform_9(%arg0: i32) -> (i32, i32, i32, i32) {
    %c0_i32 = arith.constant 0 : i32
    %c0_i32_0 = arith.constant 0 : i32
    %c0_i32_1 = arith.constant 0 : i32
    %c0_i32_2 = arith.constant 0 : i32
    return %arg0, %c0_i32, %c0_i32_0, %c0_i32_1 : i32, i32, i32, i32
  }
}

</mosaic_0001>

<bundles_post_ra>
// kernel: tpu_custom_call.1
= control target key start
LH: loop header
LB: loop body
LE: loop exit
PB: predicated region body
PF: predicated region fallthrough
CT: control target
= control target key end

     0   :  { %s8389_s0 = inlined_call_operand.hbm [shape: f32[2,16,16,16], index: 0, kind: input, shape index: {}]   ;;  %s8390_s1 = inlined_call_operand.hbm [shape: f32[16,128], index: 1, kind: input, shape index: {}]   ;;  %s8391_s2 = inlined_call_operand.vmem [shape: f32[1,128], index: 2, kind: input, shape index: {}]   ;;  %s8392_s3 = inlined_call_operand.hbm [shape: f32[9,128,128], index: 3, kind: input, shape index: {}]   ;;  %s8393_s4 = inlined_call_operand.vmem [shape: f32[1,128], index: 4, kind: input, shape index: {}]   ;;  %s8394_s5 = inlined_call_operand.hbm [shape: f32[128,128], index: 5, kind: input, shape index: {}]   ;;  %s8395_s6 = inlined_call_operand.vmem [shape: f32[1,128], index: 6, kind: input, shape index: {}]   ;;  %s8396_s7 = inlined_call_operand.vmem [shape: f32[16,128], index: 7, kind: input, shape index: {}]   ;;  %s8397_s8 = inlined_call_operand.vmem [shape: f32[1,128], index: 8, kind: input, shape index: {}]   ;;  %s8398_s9 = inlined_call_operand.hbm [shape: f32[2,16,16,128], index: 9, kind: output, shape index: {}]  }
   0x1   :  { %8471 = sst [smem:[#allocation54_spill]] %s8398_s9 }
   0x2   :  { %14 = vsyncpa [#allocation4], 0 }
   0x3   :  { %16 = vsyncpa [#allocation4 + $0x1], 0 }
   0x4   :  { %17 = vsyncpa [#allocation7], 0 }
   0x5   :  { %18 = vsyncpa [#allocation10], 0 }
   0x6   :  { %19 = vsyncpa [#allocation5], 0 }
   0x7   :  { %21 = vsyncpa [#allocation5 + $0x1], 0  ;;  %s7008_s30 = smov 0   ;;  %s7010_s10 = smov 0  }
   0x8   :  { %s7012_s11 = smov 0   ;;  %s7014_s12 = smov 0  }
   0x9 LB: > { %8472 = sst [smem:[#allocation16_spill]] %s6934_s30  ;;  %s7029_s13 = sadd.s32 4294967295, %s6946_s12   ;;  %s6946_s12 = sphi %s7014_s12, %s8604_s12   ;;  %s6942_s11 = sphi %s7012_s11, %s8603_s11   ;;  %s6938_s10 = sphi %s7010_s10, %s8602_s10   ;;  %s6934_s30 = sphi %s7008_s30, %s8601_s30  }
   0xa   : > { %s4405_s14 = sadd.s32 4294967294, %s6946_s12   ;;  %p47_p0 = scmp.ne.s32.totalorder %s6938_s10, %s6934_s30 }
   0xb   : > { %p8399_p1 = scmp.eq.s32.totalorder %s7029_s13, 0  ;;  %p245_p3 = scmp.eq.s32.totalorder %s4405_s14, 1 }
   0xc   : > { %p4406_p5 = scmp.ge.s32.totalorder %s6946_s12, 1  ;;  %p252_p7 = scmp.lt.s32.totalorder %s6946_s12, 3 }
   0xd   : > { %p7038_p4 = por %p8399_p1, %p47_p0  ;;  %p7043_p6 = por %p245_p3, %p47_p0 }
   0xe   : > { %p7048_p8 = pnand %p4406_p5, %p252_p7  ;;  %s6948_s18 = smov [#allocation6]  }
   0xf   : > { %s8473_s15 = scalar_select %p7038_p4, 1, 0 }
  0x10   : > { %s8474_s16 = scalar_select %p7043_p6, 1, 0 }
  0x11   : > { %s8476_s17 = scalar_select %p7048_p8, 1, 0 }
  0x12   : > { %8475 = sst [smem:[#allocation17_spill]] %s8474_s16  ;;  %s264_s19 = sshll.u32 %s6948_s18, 4  ;;  %s7052_s19 = int_to_ptr.vmem [resolvable:$true] %s264_s19 }
  0x13   : > { %p6643_p9 = pneg %p7048_p8  ;;  %s6949_s21 = smov [#allocation8]  }
  0x14   : > { %s280_s22 = sshll.u32 %s6949_s21, 4  ;;  %s6950_s23 = smov [#allocation9]   ;;  %s7063_s22 = int_to_ptr.vmem [resolvable:$true] %s280_s22 }
  0x15   : > { %p7059_p11 = pnand %p6643_p9, %p8399_p1  ;;  %s7065_s24 = sshll.u32 %s6950_s23, 4  ;;  %s297_s24 = int_to_ptr.vmem [resolvable:$true] %s7065_s24 }
  0x16   : > { %s6758_s27 = scalar_lea.hbm %s8390_s1, 256 }
  0x17   : > { %p6759_p12 = scmp.ne.s32.totalorder %s8390_s1, %s6758_s27  ;;  %p7075_p13 = pneg %p7059_p11 }
  0x18   : > { %p6765_p5 = scmp.lt.u32.totalorder %s6758_s27, %s8390_s1 }
  0x19   : > { %p6761_p0 = pnand %p7075_p13, %p6759_p12 }
  0x1b   : > { %p6762_p3 = pneg %p6761_p0 }
  0x1d   : > { %p6767_p7 = pnand %p6765_p5, %p6762_p3 }
  0x1f   : > { %6770 = shalt.err (!%p6767_p7)
}
  0x20   : > { %s6771_s23 = scalar_lea.vmem %s7052_s19, 256  ;;  %p6779_p2 = scmp.lt.s32.totalorder %s7052_s19, %s7052_s19 }
  0x21   : > { %p6772_p9 = scmp.ne.s32.totalorder %s7052_s19, %s6771_s23  ;;  %p6780_p6 = scmp.lt.s32.totalorder %s6771_s23, %s6771_s23 }
  0x23   : > { %p6774_p10 = pnand %p6772_p9, %p7075_p13  ;;  %p6781_p12 = por %p6780_p6, %p6779_p2 }
  0x25   : > { %p6775_p1 = pneg %p6774_p10 }
  0x27   : > { %p6782_p0 = pnand %p6781_p12, %p6775_p1 }
  0x29   : > { %6785 = shalt.err (!%p6782_p0)
}
  0x2a   : > { %s6951_s25 = smov 128   ;;  %s6952_s26 = smov 8  }
  0x2b   : > { %6646 = dma.hbm_to_vmem [thread:$0]  (!%p7059_p11), %s8390_s1, 256, %s7052_s19, [#allocation7], %s6951_s25, %s6951_s25, %s6952_s26  }
  0x2c   : > { %s6786_s21 = scalar_lea.hbm %s8392_s3, 18432 }
  0x2d   : > { %p6787_p1 = scmp.ne.s32.totalorder %s8392_s3, %s6786_s21  ;;  %p6793_p10 = scmp.lt.u32.totalorder %s6786_s21, %s8392_s3 }
  0x2f   : > { %p6789_p2 = pnand %p6787_p1, %p7075_p13 }
  0x31   : > { %p6790_p6 = pneg %p6789_p2 }
  0x33   : > { %p6795_p3 = pnand %p6793_p10, %p6790_p6 }
  0x35   : > { %6798 = shalt.err (!%p6795_p3)
}
  0x36   : > { %s6799_s19 = scalar_lea.vmem %s7063_s22, 18432  ;;  %p6807_p12 = scmp.lt.s32.totalorder %s7063_s22, %s7063_s22 }
  0x37   : > { %p6800_p5 = scmp.ne.s32.totalorder %s7063_s22, %s6799_s19  ;;  %p6808_p0 = scmp.lt.s32.totalorder %s6799_s19, %s6799_s19 }
  0x39   : > { %p6802_p7 = pnand %p6800_p5, %p7075_p13  ;;  %p6809_p1 = por %p6808_p0, %p6807_p12 }
  0x3b   : > { %p6803_p9 = pneg %p6802_p7 }
  0x3d   : > { %p6810_p2 = pnand %p6809_p1, %p6803_p9 }
  0x3f   : > { %6813 = shalt.err (!%p6810_p2)
}
  0x40   : > { %6649 = dma.hbm_to_vmem [thread:$0]  (!%p7059_p11), %s8392_s3, 18432, %s7063_s22, [#allocation7], %s6951_s25, %s6951_s25, %s6952_s26  }
  0x41   : > { %s6814_s28 = scalar_lea.hbm %s8394_s5, 2048 }
  0x42   : > { %p6815_p6 = scmp.ne.s32.totalorder %s8394_s5, %s6814_s28  ;;  %p6821_p5 = scmp.lt.u32.totalorder %s6814_s28, %s8394_s5 }
  0x44   : > { %p6817_p10 = pnand %p6815_p6, %p7075_p13 }
  0x46   : > { %p6818_p3 = pneg %p6817_p10 }
  0x48   : > { %p6823_p7 = pnand %p6821_p5, %p6818_p3 }
  0x4a   : > { %6826 = shalt.err (!%p6823_p7)
}
  0x4b   : > { %s6827_s19 = scalar_lea.vmem %s297_s24, 2048  ;;  %p6835_p1 = scmp.lt.s32.totalorder %s297_s24, %s297_s24 }
  0x4c   : > { %p6828_p9 = scmp.ne.s32.totalorder %s297_s24, %s6827_s19  ;;  %p6836_p2 = scmp.lt.s32.totalorder %s6827_s19, %s6827_s19 }
  0x4e   : > { %p6830_p12 = pnand %p6828_p9, %p7075_p13  ;;  %p6837_p4 = por %p6836_p2, %p6835_p1 }
  0x50   : > { %p6831_p0 = pneg %p6830_p12 }
  0x52   : > { %p6838_p8 = pnand %p6837_p4, %p6831_p0 }
  0x54   : > { %6841 = shalt.err (!%p6838_p8)
}
  0x55   : > { %6652 = dma.hbm_to_vmem [thread:$0]  (!%p7059_p11), %s8394_s5, 2048, %s297_s24, [#allocation10], %s6951_s25, %s6951_s25, %s6952_s26  }
  0x56   : > { %s7148_s14 = sadd.s32 1, %s6946_s12   ;;  %s34_s30 = sadd.s32 1, %s6942_s11 }
  0x57   : > { %s31_s20 = ssub.s32 %s6946_s12, %s7148_s14  ;;  %p41_p8 = scmp.ne.s32.totalorder %s6942_s11, %s6938_s10 }
  0x58   : > { %p32_p4 = scmp.eq.s32.totalorder %s31_s20, 0  ;;  %p42_p13 = scmp.eq.s32.totalorder %s6946_s12, 0 }
  0x59   : > { %p6664_p6 = scmp.lt.s32.totalorder %s6946_s12, 2  ;;  %p8479_p3 = scmp.eq.s32.totalorder %s7029_s13, 1 }
  0x5a   : > { %s7158_s16 = scalar_select %p32_p4, %s6942_s11, %s34_s30  }
  0x5b   : > { %p43_p10 = por %p42_p13, %p41_p8  ;;  %p7162_p5 = por %p8479_p3, %p41_p8 }
  0x5c   : > { %s319_s28 = sand.u32 1, %s6942_s11   ;;  %s4493_s29 = sshll.u32 %s6946_s12, 12 }
  0x5d   : > { %s4411_s24 = sshll.u32 %s319_s28, 8  ;;  %s7171_s23 = scalar_lea.hbm %s8389_s0, %s4493_s29 }
  0x5e   : > { %s323_s19 = scalar_lea.vmem [#allocation3], %s4411_s24  ;;  %p7173_p11 = pnand %p6664_p6, %p43_p10 }
  0x5f   : > { %s330_s22 = sshll.u32 %s323_s19, 4  ;;  %s7179_s20 = scalar_lea.sflag [#allocation4], %s319_s28  ;;  %s7177_s22 = int_to_ptr.vmem [resolvable:$true] %s330_s22 }
  0x60   : > { %s6842_s30 = scalar_lea.hbm %s7171_s23, 4096  ;;  %p6844_p9 = pneg %p7173_p11 }
  0x61   : > { %p6843_p7 = scmp.ne.s32.totalorder %s7171_s23, %s6842_s30  ;;  %s6847_s18 = scalar_lea.hbm %s8389_s0, 8192 }
  0x62   : > { %p6848_p1 = scmp.lt.u32.totalorder %s7171_s23, %s8389_s0  ;;  %p6849_p2 = scmp.lt.u32.totalorder %s6847_s18, %s6842_s30 }
  0x63   : > { %p6845_p12 = pnand %p6844_p9, %p6843_p7  ;;  %p6851_p8 = scmp.lt.u32.totalorder %s6842_s30, %s7171_s23 }
  0x64   : > { %p6850_p4 = por %p6849_p2, %p6848_p1 }
  0x65   : > { %p6846_p0 = pneg %p6845_p12 }
  0x66   : > { %p6852_p13 = por %p6851_p8, %p6850_p4 }
  0x68   : > { %p6853_p6 = pnand %p6852_p13, %p6846_p0 }
  0x6a   : > { %6856 = shalt.err (!%p6853_p6)
}
  0x6b   : > { %s6857_s28 = scalar_lea.vmem %s7177_s22, 4096  ;;  %s6953_s29 = smov [#allocation3]  }
  0x6c   : > { %p6858_p10 = scmp.ne.s32.totalorder %s7177_s22, %s6857_s28  ;;  %s6862_s24 = sshll.u32 %s6953_s29, 4  ;;  %s6863_s24 = int_to_ptr.vmem [resolvable:$false] %s6862_s24 }
  0x6d   : > { %s6864_s21 = scalar_lea.vmem %s6863_s24, 8192  ;;  %p6865_p12 = scmp.lt.s32.totalorder %s7177_s22, %s6863_s24 }
  0x6e   : > { %p6860_p3 = pnand %p6858_p10, %p6844_p9  ;;  %p6866_p1 = scmp.lt.s32.totalorder %s6864_s21, %s6857_s28 }
  0x70   : > { %p6861_p7 = pneg %p6860_p3  ;;  %p6867_p2 = por %p6866_p1, %p6865_p12 }
  0x72   : > { %p6868_p4 = pnand %p6867_p2, %p6861_p7 }
  0x74   : > { %6871 = shalt.err (!%p6868_p4)
}
  0x75   : > { %6656 = dma.hbm_to_vmem [thread:$0]  (!%p7173_p11), %s7171_s23, 4096, %s7177_s22, %s7179_s20, %s6951_s25, %s6951_s25, %s6952_s26  }
  0x76   : > { %p8482_p9 = scmp.ne.s32.totalorder %s8476_s17, 0 }
  0x78   : > { %342 = sbr.rel (%p8482_p9) target bundleno = 1269 (0x4f5), region = 56 }
  0x7f   : > { %s7213_s30 = sand.u32 1, %s6938_s10   ;;  %p8483_p0 = scmp.ne.s32.totalorder %s8473_s15, 0 }
  0x80   : > { %s4415_s18 = sshll.u32 %s7213_s30, 8  ;;  %s345_s19 = scalar_lea.sflag [#allocation4], %s7213_s30 }
  0x81   : > { %s7219_s9 = scalar_lea.vmem [#allocation3], %s4415_s18 }
  0x82   : > { %6917 = dma.done.wait (%p8483_p0), %s345_s19, 4096  }
  0x83   : > { %6919 = vsyncadd (%p8483_p0), %s345_s19, 4294963200  ;;  %p8484_p11 = scmp.eq.s32.totalorder %s7029_s13, 0 }
  0x85   : > { %6921 = dma.done.wait (%p8484_p11), [#allocation7], 18688   ;;  %p8485_p8 = pmov %p8484_p11 }
  0x87   : > { %6923 = vsyncadd (%p8485_p8), [#allocation7], 4294948608  ;;  %p8486_p13 = pmov %p8485_p8 }
  0x88   : > { %p8487_p6 = pmov %p8485_p8 }
  0x89   : > { %6925 = dma.done.wait (%p8486_p13), [#allocation10], 2048  }
  0x8a   : > { %6927 = vsyncadd (%p8487_p6), [#allocation10], 4294965248  ;;  %vm436_vm0 = vcmask 130048   ;;  %v427_v0 = vld [vmem:[#allocation6] sm:$0xff]  ;;  %v428_v1 = vld [vmem:[#allocation6 + $0x8] sm:$0xff]  ;;  %vm995_vm1 = vcmask 1046528  }
  0x8b   : > { %v395_v2 = vld [vmem:[%s7219_s9] sm:$0xff]  ;;  %v5947_v3 = vpack.c.bf16 %v428_v1, %v427_v0  ;;  %v396_v4 = vld [vmem:[%s7219_s9 + $0x8] sm:$0xff]  ;;  %v397_v5 = vld [vmem:[%s7219_s9 + $0x10] sm:$0xff]  ;;  %vm1575_vm2 = vcmask 1045504   ;;  %s8596_s26 = sld [smem:[#allocation54_spill]]  ;;  %s6955_s20 = smov [#allocation11]  }
  0x8c   : > { %5047 = vmatprep.mubr.msk.f32.mxu0 %vm436_vm0, %v395_v2  ;;  %v398_v6 = vld [vmem:[%s7219_s9 + $0x18] sm:$0xff]  ;;  %v399_v7 = vld [vmem:[%s7219_s9 + $0x20] sm:$0xff]  ;;  %v400_v8 = vld [vmem:[%s7219_s9 + $0x28] sm:$0xff]  ;;  %s6876_s28 = sshll.u32 %s6955_s20, 4  ;;  %s6877_s28 = int_to_ptr.vmem [resolvable:$false] %s6876_s28 }
  0x8d   : > { %5948 = vmatprep.subr.bf16.mxu0 %v5947_v3  ;;  %v401_v9 = vld [vmem:[%s7219_s9 + $0x30] sm:$0xff]  ;;  %v1110_v11 = vld [vmem:[#allocation8 + $0x88] sm:$0xff]  ;;  %v1111_v15 = vld [vmem:[#allocation8 + $0x90] sm:$0xff]  ;;  %s6878_s29 = scalar_lea.vmem %s6877_s28, 8192 }
  0x8e   : > { %5950 = vmatpush3.bf16.msra.mxu0 %v5947_v3  ;;  %v1109_v10 = vld [vmem:[#allocation8 + $0x80] sm:$0xff]  ;;  %v1964_v14 = vld [vmem:[#allocation8 + $0x188] sm:$0xff]  ;;  %v1112_v17 = vld [vmem:[#allocation8 + $0x98] sm:$0xff] }
  0x8f   : > { %v5951_v12 = vpack.c.bf16 %v1110_v11, %v1109_v10  ;;  %v1963_v13 = vld [vmem:[#allocation8 + $0x180] sm:$0xff]  ;;  %v1965_v18 = vld [vmem:[#allocation8 + $0x190] sm:$0xff]  ;;  %v1966_v19 = vld [vmem:[#allocation8 + $0x198] sm:$0xff]  ;;  %v5955_v20 = vpack.c.bf16 %v1112_v17, %v1111_v15 }
  0x90   : > { %v6047_v16 = vpack.c.bf16 %v1964_v14, %v1963_v13  ;;  %v6051_v21 = vpack.c.bf16 %v1966_v19, %v1965_v18  ;;  %v1113_v22 = vld [vmem:[#allocation8 + $0xa0] sm:$0xff]  ;;  %v1114_v23 = vld [vmem:[#allocation8 + $0xa8] sm:$0xff]  ;;  %v403_v27 = vld [vmem:[%s7219_s9 + $0x40] sm:$0xff] }
  0x91   : > { %5048 = vmatmul.mubr.msk.f32.vlgmr.msra.gmra.mrb[0].mxu0 %vm436_vm0, %v396_v4  ;;  %5952 = vmatprep.subr.bf16.mxu0 %v5951_v12  ;;  %v1967_v24 = vld [vmem:[#allocation8 + $0x1a0] sm:$0xff]  ;;  %v1968_v25 = vld [vmem:[#allocation8 + $0x1a8] sm:$0xff]  ;;  %v5959_v28 = vpack.c.bf16 %v1114_v23, %v1113_v22  ;;  %v1115_v30 = vld [vmem:[#allocation8 + $0xb0] sm:$0xff] }
  0x92   : > { %5050 = vmatprep.mubr.msk.f32.mxu0 %vm436_vm0, %v397_v5  ;;  %6048 = vmatprep.subr.bf16.mxu1 %v6047_v16  ;;  %v402_v26 = vld [vmem:[%s7219_s9 + $0x38] sm:$0xff]  ;;  %v6055_v29 = vpack.c.bf16 %v1968_v25, %v1967_v24  ;;  %v1116_v31 = vld [vmem:[#allocation8 + $0xb8] sm:$0xff]  ;;  %v1969_v32 = vld [vmem:[#allocation8 + $0x1b0] sm:$0xff] }
  0x93   : > { %5954 = vmatpush3.bf16.msra.mxu0 %v5951_v12  ;;  %6050 = vmatpush3.bf16.msra.mxu1 %v6047_v16  ;;  %v1970_v33 = vld [vmem:[#allocation8 + $0x1b8] sm:$0xff]  ;;  %v405_v35 = vld [vmem:[%s7219_s9 + $0x50] sm:$0xff]  ;;  %v5963_v36 = vpack.c.bf16 %v1116_v31, %v1115_v30  ;;  %v1118_v39 = vld [vmem:[#allocation8 + $0xc8] sm:$0xff] }
  0x94   : > { %5956 = vmatprep.subr.bf16.mxu0 %v5955_v20  ;;  %6052 = vmatprep.subr.bf16.mxu1 %v6051_v21  ;;  %v404_v34 = vld [vmem:[%s7219_s9 + $0x48] sm:$0xff]  ;;  %v6059_v37 = vpack.c.bf16 %v1970_v33, %v1969_v32  ;;  %v1117_v38 = vld [vmem:[#allocation8 + $0xc0] sm:$0xff]  ;;  %v1972_v41 = vld [vmem:[#allocation8 + $0x1c8] sm:$0xff] }
  0x95   : > { %5051 = vmatmul.mubr.msk.f32.gmra.mrb[2].mxu0 %vm436_vm0, %v398_v6  ;;  %v1971_v40 = vld [vmem:[#allocation8 + $0x1c0] sm:$0xff]  ;;  %v406_v42 = vld [vmem:[%s7219_s9 + $0x58] sm:$0xff]  ;;  %v407_v43 = vld [vmem:[%s7219_s9 + $0x60] sm:$0xff]  ;;  %v5967_v44 = vpack.c.bf16 %v1118_v39, %v1117_v38 }
  0x96   : > { %5053 = vmatprep.mubr.msk.f32.mxu0 %vm436_vm0, %v399_v7  ;;  %v6063_v45 = vpack.c.bf16 %v1972_v41, %v1971_v40  ;;  %v408_v46 = vld [vmem:[%s7219_s9 + $0x68] sm:$0xff]  ;;  %v409_v47 = vld [vmem:[%s7219_s9 + $0x70] sm:$0xff]  ;;  %v410_v48 = vld [vmem:[%s7219_s9 + $0x78] sm:$0xff]  ;;  %v8405_v7 = vmov 0.0  }
  0x97   : > { %5958 = vmatpush3.bf16.msra.mxu0 %v5955_v20  ;;  %6054 = vmatpush3.bf16.msra.mxu1 %v6051_v21  ;;  %v411_v49 = vld [vmem:[%s7219_s9 + $0x80] sm:$0xff]  ;;  %v412_v50 = vld [vmem:[%s7219_s9 + $0x88] sm:$0xff]  ;;  %v413_v51 = vld [vmem:[%s7219_s9 + $0x90] sm:$0xff]  ;;  %794 = vst [vmem:[#allocation2 + $0x20] sm:$0xff] %v8405_v7  ;;  %v996_v20 = vrot.slane %v8405_v7, 1 }
  0x98   : > { %5960 = vmatprep.subr.bf16.mxu0 %v5959_v28  ;;  %6056 = vmatprep.subr.bf16.mxu1 %v6055_v29  ;;  %v414_v52 = vld [vmem:[%s7219_s9 + $0x98] sm:$0xff]  ;;  %v415_v53 = vld [vmem:[%s7219_s9 + $0xa0] sm:$0xff]  ;;  %v416_v54 = vld [vmem:[%s7219_s9 + $0xa8] sm:$0xff]  ;;  %795 = vst [vmem:[#allocation2 + $0x28] sm:$0x3] %v8405_v7 }
  0x99   : > { %5054 = vmatmul.mubr.msk.f32.gmra.mrb[4].mxu0 %vm436_vm0, %v400_v8  ;;  %v417_v55 = vld [vmem:[%s7219_s9 + $0xb0] sm:$0xff]  ;;  %v418_v56 = vld [vmem:[%s7219_s9 + $0xb8] sm:$0xff]  ;;  %v419_v57 = vld [vmem:[%s7219_s9 + $0xc0] sm:$0xff]  ;;  %790 = vst [vmem:[#allocation2] sm:$0xff] %v8405_v7 }
  0x9a   : > { %5056 = vmatprep.mubr.msk.f32.mxu0 %vm436_vm0, %v401_v9  ;;  %v420_v58 = vld [vmem:[%s7219_s9 + $0xc8] sm:$0xff]  ;;  %v421_v59 = vld [vmem:[%s7219_s9 + $0xd0] sm:$0xff]  ;;  %v422_v60 = vld [vmem:[%s7219_s9 + $0xd8] sm:$0xff]  ;;  %792 = vst [vmem:[#allocation2 + $0x10] sm:$0x3] %v8405_v7 }
  0x9b   : > { %5962 = vmatpush3.bf16.msra.mxu0 %v5959_v28  ;;  %6058 = vmatpush3.bf16.msra.mxu1 %v6055_v29  ;;  %v423_v61 = vld [vmem:[%s7219_s9 + $0xe0] sm:$0xff]  ;;  %v424_v62 = vld [vmem:[%s7219_s9 + $0xe8] sm:$0xff]  ;;  %v425_v63 = vld [vmem:[%s7219_s9 + $0xf0] sm:$0xff]  ;;  %793 = vst [vmem:[#allocation2 + $0x18] sm:$0xff] %v8405_v7 }
  0x9c   : > { %5964 = vmatprep.subr.bf16.mxu0 %v5963_v36  ;;  %6060 = vmatprep.subr.bf16.mxu1 %v6059_v37  ;;  %v426_v0 = vld [vmem:[%s7219_s9 + $0xf8] sm:$0xff]  ;;  %v1119_v1 = vld [vmem:[#allocation8 + $0xd0] sm:$0xff]  ;;  %v1120_v2 = vld [vmem:[#allocation8 + $0xd8] sm:$0xff]  ;;  %796 = vst [vmem:[#allocation2 + $0x30] sm:$0xff] %v8405_v7 }
  0x9d   : > { %5057 = vmatmul.mubr.msk.f32.gmra.mrb[6].mxu0 %vm436_vm0, %v402_v26  ;;  %v5971_v3 = vpack.c.bf16 %v1120_v2, %v1119_v1  ;;  %v1973_v4 = vld [vmem:[#allocation8 + $0x1d0] sm:$0xff]  ;;  %v1974_v5 = vld [vmem:[#allocation8 + $0x1d8] sm:$0xff]  ;;  %797 = vst [vmem:[#allocation2 + $0x38] sm:$0xff] %v8405_v7  ;;  %798 = vst [vmem:[#allocation2 + $0x40] sm:$0x3] %v8405_v7 }
  0x9e   : > { %5059 = vmatprep.mubr.msk.f32.mxu0 %vm436_vm0, %v403_v27  ;;  %v6067_v6 = vpack.c.bf16 %v1974_v5, %v1973_v4  ;;  %799 = vst [vmem:[#allocation2 + $0x48] sm:$0xff] %v8405_v7  ;;  %800 = vst [vmem:[#allocation2 + $0x50] sm:$0xff] %v8405_v7  ;;  %v1121_v8 = vld [vmem:[#allocation8 + $0xe0] sm:$0xff]  ;;  %v1122_v9 = vld [vmem:[#allocation8 + $0xe8] sm:$0xff] }
  0x9f   : > { %5966 = vmatpush3.bf16.msra.mxu0 %v5963_v36  ;;  %6062 = vmatpush3.bf16.msra.mxu1 %v6059_v37  ;;  %801 = vst [vmem:[#allocation2 + $0x58] sm:$0x3] %v8405_v7  ;;  %802 = vst [vmem:[#allocation2 + $0x60] sm:$0xff] %v8405_v7  ;;  %v5975_v10 = vpack.c.bf16 %v1122_v9, %v1121_v8  ;;  %v1975_v11 = vld [vmem:[#allocation8 + $0x1e0] sm:$0xff]  ;;  %v1976_v12 = vld [vmem:[#allocation8 + $0x1e8] sm:$0xff] }
  0xa0   : > { %5968 = vmatprep.subr.bf16.mxu0 %v5967_v44  ;;  %6064 = vmatprep.subr.bf16.mxu1 %v6063_v45  ;;  %803 = vst [vmem:[#allocation2 + $0x68] sm:$0xff] %v8405_v7  ;;  %804 = vst [vmem:[#allocation2 + $0x70] sm:$0x3] %v8405_v7  ;;  %v6071_v13 = vpack.c.bf16 %v1976_v12, %v1975_v11  ;;  %v1123_v14 = vld [vmem:[#allocation8 + $0xf0] sm:$0xff]  ;;  %v1124_v15 = vld [vmem:[#allocation8 + $0xf8] sm:$0xff] }
  0xa1   : > { %5060 = vmatmul.mubr.msk.f32.gmra.mrb[8].mxu0 %vm436_vm0, %v404_v34  ;;  %805 = vst [vmem:[#allocation2 + $0x78] sm:$0xff] %v8405_v7  ;;  %806 = vst [vmem:[#allocation2 + $0x80] sm:$0xff] %v8405_v7  ;;  %v5979_v16 = vpack.c.bf16 %v1124_v15, %v1123_v14  ;;  %v1977_v17 = vld [vmem:[#allocation8 + $0x1f0] sm:$0xff]  ;;  %v1978_v18 = vld [vmem:[#allocation8 + $0x1f8] sm:$0xff] }
  0xa2   : > { %5062 = vmatprep.mubr.msk.f32.mxu0 %vm436_vm0, %v405_v35  ;;  %807 = vst [vmem:[#allocation2 + $0x88] sm:$0x3] %v8405_v7  ;;  %808 = vst [vmem:[#allocation2 + $0x90] sm:$0xff] %v8405_v7  ;;  %v6075_v19 = vpack.c.bf16 %v1978_v18, %v1977_v17  ;;  %v879_v21 = vld [vmem:[#allocation2 + $0x10] sm:$0x3]  ;;  %v2247_v24 = vld [vmem:[#allocation8 + $0x200] sm:$0xff] }
  0xa3   : > { %5970 = vmatpush3.bf16.msra.mxu0 %v5967_v44  ;;  %6066 = vmatpush3.bf16.msra.mxu1 %v6063_v45  ;;  %809 = vst [vmem:[#allocation2 + $0x98] sm:$0xff] %v8405_v7  ;;  %810 = vst [vmem:[#allocation2 + $0xa0] sm:$0x3] %v8405_v7  ;;  %v999_v22 = vrot.slane %v879_v21, 1  ;;  %v2248_v25 = vld [vmem:[#allocation8 + $0x208] sm:$0xff]  ;;  %v931_v27 = vld [vmem:[#allocation8] sm:$0xff] }
  0xa4   : > { %5972 = vmatprep.subr.bf16.mxu0 %v5971_v3  ;;  %811 = vst [vmem:[#allocation2 + $0xa8] sm:$0xff] %v8405_v7  ;;  %812 = vst [vmem:[#allocation2 + $0xb0] sm:$0xff] %v8405_v7  ;;  %6068 = vmatprep.subr.bf16.mxu1 %v6067_v6  ;;  %v7350_v26 = vpack.c.bf16 %v2248_v25, %v2247_v24  ;;  %v932_v28 = vld [vmem:[#allocation8 + $0x8] sm:$0xff]  ;;  %v933_v30 = vld [vmem:[#allocation8 + $0x10] sm:$0xff] }
  0xa5   : > { %5063 = vmatmul.mubr.msk.f32.gmra.mrb[10].mxu0 %vm436_vm0, %v406_v42  ;;  %813 = vst [vmem:[#allocation2 + $0xb8] sm:$0x3] %v8405_v7  ;;  %814 = vst [vmem:[#allocation2 + $0xc0] sm:$0xff] %v8405_v7  ;;  %v1000_v23 = vsel %vm995_vm1, %v996_v20, %v999_v22  ;;  %v5983_v29 = vpack.c.bf16 %v932_v28, %v931_v27  ;;  %v934_v31 = vld [vmem:[#allocation8 + $0x18] sm:$0xff]  ;;  %v935_v33 = vld [vmem:[#allocation8 + $0x20] sm:$0xff] }
  0xa6   : > { %5065 = vmatprep.mubr.msk.f32.mxu0 %vm436_vm0, %v407_v43  ;;  %815 = vst [vmem:[#allocation2 + $0xc8] sm:$0xff] %v8405_v7  ;;  %816 = vst [vmem:[#allocation2 + $0xd0] sm:$0x3] %v8405_v7  ;;  %v5987_v32 = vpack.c.bf16 %v934_v31, %v933_v30  ;;  %v936_v34 = vld [vmem:[#allocation8 + $0x28] sm:$0xff]  ;;  %v937_v36 = vld [vmem:[#allocation8 + $0x30] sm:$0xff] }
  0xa7   : > { %817 = vst [vmem:[#allocation2 + $0xd8] sm:$0xff] %v8405_v7  ;;  %818 = vst [vmem:[#allocation2 + $0xe0] sm:$0xff] %v8405_v7  ;;  %5974 = vmatpush3.bf16.msra.mxu0 %v5971_v3  ;;  %6070 = vmatpush3.bf16.msra.mxu1 %v6067_v6  ;;  %v5991_v35 = vpack.c.bf16 %v936_v34, %v935_v33  ;;  %v938_v37 = vld [vmem:[#allocation8 + $0x38] sm:$0xff]  ;;  %v939_v39 = vld [vmem:[#allocation8 + $0x40] sm:$0xff] }
  0xa8   : > { %819 = vst [vmem:[#allocation2 + $0xe8] sm:$0x3] %v8405_v7  ;;  %820 = vst [vmem:[#allocation2 + $0xf0] sm:$0xff] %v8405_v7  ;;  %5976 = vmatprep.subr.bf16.mxu0 %v5975_v10  ;;  %6072 = vmatprep.subr.bf16.mxu1 %v6071_v13  ;;  %v5995_v38 = vpack.c.bf16 %v938_v37, %v937_v36  ;;  %v940_v40 = vld [vmem:[#allocation8 + $0x48] sm:$0xff]  ;;  %v941_v42 = vld [vmem:[#allocation8 + $0x50] sm:$0xff] }
  0xa9   : > { %5066 = vmatmul.mubr.msk.f32.gmra.mrb[12].mxu0 %vm436_vm0, %v408_v46  ;;  %821 = vst [vmem:[#allocation2 + $0xf8] sm:$0xff] %v8405_v7  ;;  %822 = vst [vmem:[#allocation2 + $0x100] sm:$0x3] %v8405_v7  ;;  %v5999_v41 = vpack.c.bf16 %v940_v40, %v939_v39  ;;  %v942_v43 = vld [vmem:[#allocation8 + $0x58] sm:$0xff]  ;;  %v943_v45 = vld [vmem:[#allocation8 + $0x60] sm:$0xff] }
  0xaa   : > { %5068 = vmatprep.mubr.msk.f32.mxu0 %vm436_vm0, %v409_v47  ;;  %823 = vst [vmem:[#allocation2 + $0x108] sm:$0xff] %v8405_v7  ;;  %824 = vst [vmem:[#allocation2 + $0x110] sm:$0xff] %v8405_v7  ;;  %v6003_v44 = vpack.c.bf16 %v942_v43, %v941_v42  ;;  %v944_v46 = vld [vmem:[#allocation8 + $0x68] sm:$0xff]  ;;  %v2249_v8 = vld [vmem:[#allocation8 + $0x210] sm:$0xff] }
  0xab   : > { %825 = vst [vmem:[#allocation2 + $0x118] sm:$0x3] %v8405_v7  ;;  %826 = vst [vmem:[#allocation2 + $0x120] sm:$0xff] %v8405_v7  ;;  %5978 = vmatpush3.bf16.msra.mxu0 %v5975_v10  ;;  %6074 = vmatpush3.bf16.msra.mxu1 %v6071_v13  ;;  %v6007_v47 = vpack.c.bf16 %v944_v46, %v943_v45  ;;  %v2250_v9 = vld [vmem:[#allocation8 + $0x218] sm:$0xff]  ;;  %v2252_v24 = vld [vmem:[#allocation8 + $0x228] sm:$0xff] }
  0xac   : > { %827 = vst [vmem:[#allocation2 + $0x128] sm:$0xff] %v8405_v7  ;;  %828 = vst [vmem:[#allocation2 + $0x130] sm:$0x3] %v8405_v7  ;;  %5980 = vmatprep.subr.bf16.mxu0 %v5979_v16  ;;  %6076 = vmatprep.subr.bf16.mxu1 %v6075_v19  ;;  %v2253_v40 = vld [vmem:[#allocation8 + $0x230] sm:$0xff] }
  0xad   : > { %5069 = vmatmul.mubr.msk.f32.gmra.mrb[14].mxu0 %vm436_vm0, %v410_v48  ;;  %829 = vst [vmem:[#allocation2 + $0x138] sm:$0xff] %v8405_v7  ;;  %830 = vst [vmem:[#allocation2 + $0x140] sm:$0xff] %v8405_v7  ;;  %v945_v48 = vld [vmem:[#allocation8 + $0x70] sm:$0xff] }
  0xae   : > { %5071 = vmatprep.mubr.msk.f32.mxu0 %vm436_vm0, %v411_v49  ;;  %831 = vst [vmem:[#allocation2 + $0x148] sm:$0x3] %v8405_v7  ;;  %832 = vst [vmem:[#allocation2 + $0x150] sm:$0xff] %v8405_v7  ;;  %v946_v49 = vld [vmem:[#allocation8 + $0x78] sm:$0xff] }
  0xaf   : > { %833 = vst [vmem:[#allocation2 + $0x158] sm:$0xff] %v8405_v7  ;;  %834 = vst [vmem:[#allocation2 + $0x160] sm:$0x3] %v8405_v7  ;;  %5982 = vmatpush3.bf16.msra.mxu0 %v5979_v16  ;;  %6078 = vmatpush3.bf16.msra.mxu1 %v6075_v19  ;;  %v6083_v19 = vpack.c.bf16 %v2250_v9, %v2249_v8 }
  0xb0   : > { %835 = vst [vmem:[#allocation2 + $0x168] sm:$0xff] %v8405_v7  ;;  %836 = vst [vmem:[#allocation2 + $0x170] sm:$0xff] %v8405_v7  ;;  %6080 = vmatprep.subr.bf16.mxu1 %v7350_v26  ;;  %5984 = vmatprep.subr.bf16.mxu0 %v5983_v29 }
  0xb1   : > { %5072 = vmatmul.mubr.msk.f32.gmra.mrb[16].mxu0 %vm436_vm0, %v412_v50  ;;  %837 = vst [vmem:[#allocation2 + $0x178] sm:$0x3] %v8405_v7  ;;  %838 = vst [vmem:[#allocation2 + $0x180] sm:$0xff] %v8405_v7  ;;  %v6011_v50 = vpack.c.bf16 %v946_v49, %v945_v48 }
  0xb2   : > { %5074 = vmatprep.mubr.msk.f32.mxu0 %vm436_vm0, %v413_v51  ;;  %839 = vst [vmem:[#allocation2 + $0x188] sm:$0xff] %v8405_v7  ;;  %840 = vst [vmem:[#allocation2 + $0x190] sm:$0x3] %v8405_v7  ;;  %v1689_v51 = vld [vmem:[#allocation8 + $0x100] sm:$0xff] }
  0xb3   : > { %843 = vst [vmem:[#allocation2 + $0x1a8] sm:$0x3] %v8405_v7 }
  0xb5   : > { %5075 = vmatmul.mubr.msk.f32.gmra.mrb[18].mxu0 %vm436_vm0, %v414_v52  ;;  %v1690_v52 = vld [vmem:[#allocation8 + $0x108] sm:$0xff] }
  0xb6   : > { %5077 = vmatprep.mubr.msk.f32.mxu0 %vm436_vm0, %v415_v53  ;;  %v7353_v53 = vpack.c.bf16 %v1690_v52, %v1689_v51 }
  0xb9   : > { %5078 = vmatmul.mubr.msk.f32.gmra.mrb[20].mxu0 %vm436_vm0, %v416_v54  ;;  %v7359_v54 = vld [vmem:[%s8391_s2] ss:$0 sm:$0xff] }
  0xba   : > { %5080 = vmatprep.mubr.msk.f32.mxu0 %vm436_vm0, %v417_v55 }
  0xbd   : > { %5081 = vmatmul.mubr.msk.f32.gmra.mrb[22].mxu0 %vm436_vm0, %v418_v56 }
  0xbe   : > { %5083 = vmatprep.mubr.msk.f32.mxu0 %vm436_vm0, %v419_v57 }
  0xc1   : > { %5084 = vmatmul.mubr.msk.f32.gmra.mrb[24].mxu0 %vm436_vm0, %v420_v58 }
  0xc2   : > { %5086 = vmatprep.mubr.msk.f32.mxu0 %vm436_vm0, %v421_v59 }
  0xc5   : > { %5087 = vmatmul.mubr.msk.f32.gmra.mrb[26].mxu0 %vm436_vm0, %v422_v60 }
  0xc6   : > { %5089 = vmatprep.mubr.msk.f32.mxu0 %vm436_vm0, %v423_v61 }
  0xc9   : > { %5090 = vmatmul.mubr.msk.f32.gmra.mrb[28].mxu0 %vm436_vm0, %v424_v62 }
  0xca   : > { %5092 = vmatprep.mubr.msk.f32.mxu0 %vm436_vm0, %v425_v63 }
  0xcd   : > { %5093 = vmatmul.mubr.msk.f32.gmra.mrb[30].mxu0 %vm436_vm0, %v426_v0 }
  0xce   : > { %5127 = vmatprep.mubr.f32.mxu0 %v996_v20 }
  0xd1   : > { %5128 = vmatmul.mubr.f32.vlgmr.msra.gmra.mrb[32].mxu0 %v1000_v23  ;;  %v2251_v23 = vld [vmem:[#allocation8 + $0x220] sm:$0xff] }
  0xd2   : > { %5986 = vmatpush3.bf16.msra.mxu0 %v5983_v29  ;;  %v6087_v36 = vpack.c.bf16 %v2252_v24, %v2251_v23 }
  0xd3   : > { %5988 = vmatprep.subr.bf16.mxu0 %v5987_v32 }
  0xd6   : > { %5990 = vmatpush3.bf16.msra.mxu0 %v5987_v32 }
  0xd7   : > { %5992 = vmatprep.subr.bf16.mxu0 %v5991_v35 }
  0xda   : > { %5994 = vmatpush3.bf16.msra.mxu0 %v5991_v35 }
  0xdb   : > { %5996 = vmatprep.subr.bf16.mxu0 %v5995_v38 }
  0xde   : > { %5998 = vmatpush3.bf16.msra.mxu0 %v5995_v38 }
  0xdf   : > { %6000 = vmatprep.subr.bf16.mxu0 %v5999_v41 }
  0xe2   : > { %6002 = vmatpush3.bf16.msra.mxu0 %v5999_v41  ;;  %v2254_v41 = vld [vmem:[#allocation8 + $0x238] sm:$0xff] }
  0xe3   : > { %6004 = vmatprep.subr.bf16.mxu0 %v6003_v44 }
  0xe6   : > { %6006 = vmatpush3.bf16.msra.mxu0 %v6003_v44 }
  0xe7   : > { %6008 = vmatprep.subr.bf16.mxu0 %v6007_v47 }
  0xea   : > { %6010 = vmatpush3.bf16.msra.mxu0 %v6007_v47 }
  0xeb   : > { %6012 = vmatprep.subr.bf16.mxu0 %v6011_v50 }
  0xee   : > { %6014 = vmatpush3.bf16.msra.mxu0 %v6011_v50 }
  0xef   : > { %6016 = vmatprep.subr.bf16.mxu0 %v7353_v53 }
 0x164   : > { %v5049_v55 = vpop.f32.mrb[0].mxu0 }
 0x165   : > { %v605_v56 = vadd.f32 %v5049_v55, %v7359_v54  ;;  %v599_v57 = vpop.f32.mrb[1].mxu0  ;;  %v6091_v55 = vpack.c.bf16 %v2254_v41, %v2253_v40 }
 0x166   : > { %v600_v58 = vadd.f32 %v7359_v54, %v599_v57 }
 0x167   : > { %v759_v59 = vmax.f32 %v605_v56, 0.0 }
 0x168   : > { %v758_v60 = vmax.f32 %v600_v58, 0.0  ;;  %v5052_v61 = vpop.f32.mrb[2].mxu0 }
 0x169   : > { %846 = vst [vmem:[#allocation2 + $0x21] sm:$0xff] %v759_v59  ;;  %v615_v62 = vadd.f32 %v5052_v61, %v7359_v54  ;;  %v609_v63 = vpop.f32.mrb[3].mxu0  ;;  %v2255_v59 = vld [vmem:[#allocation8 + $0x240] sm:$0xff] }
 0x16a   : > { %845 = vst [vmem:[#allocation2 + $0x19] sm:$0xff] %v758_v60  ;;  %v610_v0 = vadd.f32 %v7359_v54, %v609_v63  ;;  %v2256_v60 = vld [vmem:[#allocation8 + $0x248] sm:$0xff] }
 0x16b   : > { %v761_v1 = vmax.f32 %v615_v62, 0.0  ;;  %v6095_v9 = vpack.c.bf16 %v2256_v60, %v2255_v59 }
 0x16c   : > { %v760_v2 = vmax.f32 %v610_v0, 0.0  ;;  %v5055_v3 = vpop.f32.mrb[4].mxu0 }
 0x16d   : > { %848 = vst [vmem:[#allocation2 + $0x39] sm:$0xff] %v761_v1  ;;  %v625_v4 = vadd.f32 %v5055_v3, %v7359_v54  ;;  %v619_v5 = vpop.f32.mrb[5].mxu0 }
 0x16e   : > { %847 = vst [vmem:[#allocation2 + $0x31] sm:$0xff] %v760_v2  ;;  %v620_v6 = vadd.f32 %v7359_v54, %v619_v5 }
 0x16f   : > { %v763_v10 = vmax.f32 %v625_v4, 0.0 }
 0x170   : > { %v762_v11 = vmax.f32 %v620_v6, 0.0  ;;  %v5058_v12 = vpop.f32.mrb[6].mxu0  ;;  %v7367_v13 = vld [vmem:[#allocation2 + $0x28] sm:$0x3] }
 0x171   : > { %8488 = vst [vmem:[#allocation18_spill] sm:$0xff] %v7367_v13  ;;  %850 = vst [vmem:[#allocation2 + $0x51] sm:$0xff] %v763_v10  ;;  %v635_v14 = vadd.f32 %v5058_v12, %v7359_v54  ;;  %v629_v15 = vpop.f32.mrb[7].mxu0  ;;  %v7370_v16 = vld [vmem:[#allocation2 + $0x18] sm:$0xff]  ;;  %v7372_v17 = vld [vmem:[#allocation2 + $0x20] sm:$0xff]  ;;  %v1004_v18 = vrot.slane %v7367_v13, 1 }
 0x172   : > { %849 = vst [vmem:[#allocation2 + $0x49] sm:$0xff] %v762_v11  ;;  %v630_v20 = vadd.f32 %v7359_v54, %v629_v15  ;;  %5367 = vmatprep.mubr.f32.mxu1 %v7370_v16  ;;  %v1001_v21 = vrot.slane %v7370_v16, 1  ;;  %v1002_v22 = vrot.slane %v7372_v17, 1  ;;  %v2258_v15 = vld [vmem:[#allocation8 + $0x258] sm:$0xff] }
 0x173   : > { %v765_v25 = vmax.f32 %v635_v14, 0.0  ;;  %5368 = vmatmul.mubr.f32.vlgmr.msra.gmra.mrb[0].mxu1 %v7372_v17  ;;  %v2257_v14 = vld [vmem:[#allocation8 + $0x250] sm:$0xff] }
 0x174   : > { %v764_v27 = vmax.f32 %v630_v20, 0.0  ;;  %6082 = vmatpush3.bf16.msra.mxu1 %v7350_v26  ;;  %v5061_v28 = vpop.f32.mrb[8].mxu0  ;;  %v7382_v29 = vsel %vm995_vm1, %v1001_v21, %v1002_v22  ;;  %v7385_v30 = vsel %vm995_vm1, %v1002_v22, %v1004_v18  ;;  %v7387_v31 = vld [vmem:[#allocation2 + $0x40] sm:$0x3] }
 0x175   : > { %8489 = vst [vmem:[#allocation19_spill] sm:$0xff] %v7387_v31  ;;  %852 = vst [vmem:[#allocation2 + $0x69] sm:$0xff] %v765_v25  ;;  %v645_v32 = vadd.f32 %v5061_v28, %v7359_v54  ;;  %v639_v33 = vpop.f32.mrb[9].mxu0  ;;  %5130 = vmatprep.mubr.f32.mxu0 %v7382_v29  ;;  %v7391_v34 = vld [vmem:[#allocation2 + $0x30] sm:$0xff]  ;;  %v7393_v35 = vld [vmem:[#allocation2 + $0x38] sm:$0xff]  ;;  %v1009_v26 = vrot.slane %v7387_v31, 1  ;;  %6084 = vmatprep.subr.bf16.mxu1 %v6083_v19 }
 0x176   : > { %851 = vst [vmem:[#allocation2 + $0x61] sm:$0xff] %v764_v27  ;;  %v640_v37 = vadd.f32 %v7359_v54, %v639_v33  ;;  %5131 = vmatmul.mubr.f32.gmra.mrb[34].mxu0 %v7385_v30  ;;  %5370 = vmatprep.mubr.f32.mxu1 %v7391_v34  ;;  %v1006_v38 = vrot.slane %v7391_v34, 1  ;;  %v1007_v39 = vrot.slane %v7393_v35, 1  ;;  %v6099_v33 = vpack.c.bf16 %v2258_v15, %v2257_v14 }
 0x177   : > { %v767_v42 = vmax.f32 %v645_v32, 0.0  ;;  %5371 = vmatmul.mubr.f32.gmra.mrb[2].mxu1 %v7393_v35 }
 0x178   : > { %v766_v43 = vmax.f32 %v640_v37, 0.0  ;;  %v5064_v44 = vpop.f32.mrb[10].mxu0  ;;  %v7403_v45 = vsel %vm995_vm1, %v1006_v38, %v1007_v39  ;;  %v7406_v46 = vsel %vm995_vm1, %v1007_v39, %v1009_v26  ;;  %6086 = vmatpush3.bf16.msra.mxu1 %v6083_v19  ;;  %v7408_v47 = vld [vmem:[#allocation2 + $0x58] sm:$0x3]  ;;  %v2259_v38 = vld [vmem:[#allocation8 + $0x260] sm:$0xff]  ;;  %v2260_v39 = vld [vmem:[#allocation8 + $0x268] sm:$0xff] }
 0x179   : > { %8490 = vst [vmem:[#allocation20_spill] sm:$0xff] %v7408_v47  ;;  %854 = vst [vmem:[#allocation2 + $0x81] sm:$0xff] %v767_v42  ;;  %v655_v48 = vadd.f32 %v5064_v44, %v7359_v54  ;;  %v649_v49 = vpop.f32.mrb[11].mxu0  ;;  %5133 = vmatprep.mubr.f32.mxu0 %v7403_v45  ;;  %v7412_v50 = vld [vmem:[#allocation2 + $0x48] sm:$0xff]  ;;  %v7414_v51 = vld [vmem:[#allocation2 + $0x50] sm:$0xff]  ;;  %v1014_v52 = vrot.slane %v7408_v47, 1  ;;  %6088 = vmatprep.subr.bf16.mxu1 %v6087_v36 }
 0x17a   : > { %853 = vst [vmem:[#allocation2 + $0x79] sm:$0xff] %v766_v43  ;;  %v650_v56 = vadd.f32 %v7359_v54, %v649_v49  ;;  %5134 = vmatmul.mubr.f32.gmra.mrb[36].mxu0 %v7406_v46  ;;  %5373 = vmatprep.mubr.f32.mxu1 %v7412_v50  ;;  %v1011_v57 = vrot.slane %v7412_v50, 1  ;;  %v1012_v58 = vrot.slane %v7414_v51, 1 }
 0x17b   : > { %v769_v61 = vmax.f32 %v655_v48, 0.0  ;;  %5374 = vmatmul.mubr.f32.gmra.mrb[4].mxu1 %v7414_v51 }
 0x17c   : > { %v768_v62 = vmax.f32 %v650_v56, 0.0  ;;  %v5067_v63 = vpop.f32.mrb[12].mxu0  ;;  %v7424_v0 = vsel %vm995_vm1, %v1011_v57, %v1012_v58  ;;  %v7427_v1 = vsel %vm995_vm1, %v1012_v58, %v1014_v52  ;;  %v7429_v2 = vld [vmem:[#allocation2 + $0x70] sm:$0x3]  ;;  %6090 = vmatpush3.bf16.msra.mxu1 %v6087_v36  ;;  %v6103_v58 = vpack.c.bf16 %v2260_v39, %v2259_v38 }
 0x17d   : > { %8491 = vst [vmem:[#allocation21_spill] sm:$0xff] %v7429_v2  ;;  %856 = vst [vmem:[#allocation2 + $0x99] sm:$0xff] %v769_v61  ;;  %v665_v3 = vadd.f32 %v5067_v63, %v7359_v54  ;;  %v659_v4 = vpop.f32.mrb[13].mxu0  ;;  %5136 = vmatprep.mubr.f32.mxu0 %v7424_v0  ;;  %v7433_v5 = vld [vmem:[#allocation2 + $0x60] sm:$0xff]  ;;  %v7435_v6 = vld [vmem:[#allocation2 + $0x68] sm:$0xff]  ;;  %v1019_v8 = vrot.slane %v7429_v2, 1  ;;  %6092 = vmatprep.subr.bf16.mxu1 %v6091_v55 }
 0x17e   : > { %855 = vst [vmem:[#allocation2 + $0x91] sm:$0xff] %v768_v62  ;;  %v660_v10 = vadd.f32 %v7359_v54, %v659_v4  ;;  %5137 = vmatmul.mubr.f32.gmra.mrb[38].mxu0 %v7427_v1  ;;  %5376 = vmatprep.mubr.f32.mxu1 %v7433_v5  ;;  %v1016_v11 = vrot.slane %v7433_v5, 1  ;;  %v1017_v12 = vrot.slane %v7435_v6, 1  ;;  %v2261_v62 = vld [vmem:[#allocation8 + $0x270] sm:$0xff]  ;;  %v2262_v63 = vld [vmem:[#allocation8 + $0x278] sm:$0xff] }
 0x17f   : > { %v771_v18 = vmax.f32 %v665_v3, 0.0  ;;  %5377 = vmatmul.mubr.f32.gmra.mrb[6].mxu1 %v7435_v6 }
 0x180   : > { %v770_v19 = vmax.f32 %v660_v10, 0.0  ;;  %v5070_v20 = vpop.f32.mrb[14].mxu0  ;;  %v7445_v21 = vsel %vm995_vm1, %v1016_v11, %v1017_v12  ;;  %v7448_v22 = vsel %vm995_vm1, %v1017_v12, %v1019_v8  ;;  %v7450_v23 = vld [vmem:[#allocation2 + $0x88] sm:$0x3]  ;;  %6094 = vmatpush3.bf16.msra.mxu1 %v6091_v55 }
 0x181   : > { %8492 = vst [vmem:[#allocation22_spill] sm:$0xff] %v7450_v23  ;;  %858 = vst [vmem:[#allocation2 + $0xb1] sm:$0xff] %v771_v18  ;;  %v675_v24 = vadd.f32 %v5070_v20, %v7359_v54  ;;  %v669_v25 = vpop.f32.mrb[15].mxu0  ;;  %5139 = vmatprep.mubr.f32.mxu0 %v7445_v21  ;;  %v7454_v27 = vld [vmem:[#allocation2 + $0x78] sm:$0xff]  ;;  %v7456_v28 = vld [vmem:[#allocation2 + $0x80] sm:$0xff]  ;;  %v1024_v32 = vrot.slane %v7450_v23, 1  ;;  %6096 = vmatprep.subr.bf16.mxu1 %v6095_v9  ;;  %v6107_v20 = vpack.c.bf16 %v2262_v63, %v2261_v62 }
 0x182   : > { %857 = vst [vmem:[#allocation2 + $0xa9] sm:$0xff] %v770_v19  ;;  %v670_v26 = vadd.f32 %v7359_v54, %v669_v25  ;;  %5140 = vmatmul.mubr.f32.gmra.mrb[40].mxu0 %v7448_v22  ;;  %5379 = vmatprep.mubr.f32.mxu1 %v7454_v27  ;;  %v1021_v36 = vrot.slane %v7454_v27, 1  ;;  %v1022_v37 = vrot.slane %v7456_v28, 1 }
 0x183   : > { %v773_v40 = vmax.f32 %v675_v24, 0.0  ;;  %5380 = vmatmul.mubr.f32.gmra.mrb[8].mxu1 %v7456_v28 }
 0x184   : > { %v772_v41 = vmax.f32 %v670_v26, 0.0  ;;  %v5073_v42 = vpop.f32.mrb[16].mxu0  ;;  %v7466_v43 = vsel %vm995_vm1, %v1021_v36, %v1022_v37  ;;  %v7469_v44 = vsel %vm995_vm1, %v1022_v37, %v1024_v32  ;;  %v7471_v48 = vld [vmem:[#allocation2 + $0xa0] sm:$0x3]  ;;  %6098 = vmatpush3.bf16.msra.mxu1 %v6095_v9  ;;  %v2529_v26 = vld [vmem:[#allocation8 + $0x288] sm:$0xff] }
 0x185   : > { %8493 = vst [vmem:[#allocation23_spill] sm:$0xff] %v7471_v48  ;;  %860 = vst [vmem:[#allocation2 + $0xc9] sm:$0xff] %v773_v40  ;;  %v685_v49 = vadd.f32 %v5073_v42, %v7359_v54  ;;  %v679_v52 = vpop.f32.mrb[17].mxu0  ;;  %5142 = vmatprep.mubr.f32.mxu0 %v7466_v43  ;;  %v7475_v55 = vld [vmem:[#allocation2 + $0x90] sm:$0xff]  ;;  %v7477_v56 = vld [vmem:[#allocation2 + $0x98] sm:$0xff]  ;;  %v1029_v57 = vrot.slane %v7471_v48, 1  ;;  %6100 = vmatprep.subr.bf16.mxu1 %v6099_v33 }
 0x186   : > { %859 = vst [vmem:[#allocation2 + $0xc1] sm:$0xff] %v772_v41  ;;  %v680_v59 = vadd.f32 %v7359_v54, %v679_v52  ;;  %5143 = vmatmul.mubr.f32.gmra.mrb[42].mxu0 %v7469_v44  ;;  %5382 = vmatprep.mubr.f32.mxu1 %v7475_v55  ;;  %v1026_v60 = vrot.slane %v7475_v55, 1  ;;  %v1027_v61 = vrot.slane %v7477_v56, 1 }
 0x187   : > { %v775_v3 = vmax.f32 %v685_v49, 0.0  ;;  %5383 = vmatmul.mubr.f32.gmra.mrb[10].mxu1 %v7477_v56 }
 0x188   : > { %v774_v4 = vmax.f32 %v680_v59, 0.0  ;;  %v5076_v8 = vpop.f32.mrb[18].mxu0  ;;  %v7487_v9 = vsel %vm995_vm1, %v1026_v60, %v1027_v61  ;;  %v7490_v10 = vsel %vm995_vm1, %v1027_v61, %v1029_v57  ;;  %v7492_v11 = vld [vmem:[#allocation2 + $0xb8] sm:$0x3]  ;;  %6102 = vmatpush3.bf16.msra.mxu1 %v6099_v33  ;;  %v2528_v33 = vld [vmem:[#allocation8 + $0x280] sm:$0xff] }
 0x189   : > { %8494 = vst [vmem:[#allocation24_spill] sm:$0xff] %v7492_v11  ;;  %862 = vst [vmem:[#allocation2 + $0xe1] sm:$0xff] %v775_v3  ;;  %v695_v12 = vadd.f32 %v5076_v8, %v7359_v54  ;;  %v689_v14 = vpop.f32.mrb[19].mxu0  ;;  %5145 = vmatprep.mubr.f32.mxu0 %v7487_v9  ;;  %v7496_v15 = vld [vmem:[#allocation2 + $0xa8] sm:$0xff]  ;;  %v7498_v18 = vld [vmem:[#allocation2 + $0xb0] sm:$0xff]  ;;  %v1034_v19 = vrot.slane %v7492_v11, 1  ;;  %6104 = vmatprep.subr.bf16.mxu1 %v6103_v58  ;;  %v7522_v60 = vpack.c.bf16 %v2529_v26, %v2528_v33 }
 0x18a   : > { %861 = vst [vmem:[#allocation2 + $0xd9] sm:$0xff] %v774_v4  ;;  %v690_v24 = vadd.f32 %v7359_v54, %v689_v14  ;;  %5146 = vmatmul.mubr.f32.gmra.mrb[44].mxu0 %v7490_v10  ;;  %5385 = vmatprep.mubr.f32.mxu1 %v7496_v15  ;;  %v1031_v25 = vrot.slane %v7496_v15, 1  ;;  %v1032_v32 = vrot.slane %v7498_v18, 1 }
 0x18b   : > { %v777_v36 = vmax.f32 %v695_v12, 0.0  ;;  %5386 = vmatmul.mubr.f32.gmra.mrb[12].mxu1 %v7498_v18 }
 0x18c   : > { %v776_v37 = vmax.f32 %v690_v24, 0.0  ;;  %v5079_v38 = vpop.f32.mrb[20].mxu0  ;;  %v7508_v39 = vsel %vm995_vm1, %v1031_v25, %v1032_v32  ;;  %v7511_v40 = vsel %vm995_vm1, %v1032_v32, %v1034_v19  ;;  %v7513_v41 = vld [vmem:[#allocation2 + $0xd0] sm:$0x3]  ;;  %6106 = vmatpush3.bf16.msra.mxu1 %v6103_v58 }
 0x18d   : > { %8495 = vst [vmem:[#allocation25_spill] sm:$0xff] %v7513_v41  ;;  %864 = vst [vmem:[#allocation2 + $0xf9] sm:$0xff] %v777_v36  ;;  %v705_v42 = vadd.f32 %v5079_v38, %v7359_v54  ;;  %v699_v49 = vpop.f32.mrb[21].mxu0  ;;  %5148 = vmatprep.mubr.f32.mxu0 %v7508_v39  ;;  %v7517_v52 = vld [vmem:[#allocation2 + $0xc0] sm:$0xff]  ;;  %v7519_v57 = vld [vmem:[#allocation2 + $0xc8] sm:$0xff]  ;;  %v1039_v59 = vrot.slane %v7513_v41, 1  ;;  %6108 = vmatprep.subr.bf16.mxu1 %v6107_v20 }
 0x18e   : > { %863 = vst [vmem:[#allocation2 + $0xf1] sm:$0xff] %v776_v37  ;;  %v700_v61 = vadd.f32 %v7359_v54, %v699_v49  ;;  %5149 = vmatmul.mubr.f32.gmra.mrb[46].mxu0 %v7511_v40  ;;  %5388 = vmatprep.mubr.f32.mxu1 %v7517_v52  ;;  %v1036_v58 = vrot.slane %v7517_v52, 1  ;;  %v1037_v62 = vrot.slane %v7519_v57, 1 }
 0x18f   : > { %v779_v63 = vmax.f32 %v705_v42, 0.0  ;;  %5389 = vmatmul.mubr.f32.gmra.mrb[14].mxu1 %v7519_v57 }
 0x190   : > { %v778_v3 = vmax.f32 %v700_v61, 0.0  ;;  %v5082_v4 = vpop.f32.mrb[22].mxu0  ;;  %v7531_v8 = vsel %vm995_vm1, %v1036_v58, %v1037_v62  ;;  %v7534_v12 = vsel %vm995_vm1, %v1037_v62, %v1039_v59  ;;  %v7536_v14 = vld [vmem:[#allocation2 + $0xe8] sm:$0x3]  ;;  %6110 = vmatpush3.bf16.msra.mxu1 %v6107_v20 }
 0x191   : > { %8496 = vst [vmem:[#allocation26_spill] sm:$0xff] %v7536_v14  ;;  %866 = vst [vmem:[#allocation2 + $0x111] sm:$0xff] %v779_v63  ;;  %v715_v19 = vadd.f32 %v5082_v4, %v7359_v54  ;;  %v709_v24 = vpop.f32.mrb[23].mxu0  ;;  %5151 = vmatprep.mubr.f32.mxu0 %v7531_v8  ;;  %v7540_v25 = vld [vmem:[#allocation2 + $0xd8] sm:$0xff]  ;;  %v7542_v32 = vld [vmem:[#allocation2 + $0xe0] sm:$0xff]  ;;  %v1044_v33 = vrot.slane %v7536_v14, 1  ;;  %6112 = vmatprep.subr.bf16.mxu1 %v7522_v60 }
 0x192   : > { %865 = vst [vmem:[#allocation2 + $0x109] sm:$0xff] %v778_v3  ;;  %v710_v26 = vadd.f32 %v7359_v54, %v709_v24  ;;  %5152 = vmatmul.mubr.f32.gmra.mrb[48].mxu0 %v7534_v12  ;;  %5391 = vmatprep.mubr.f32.mxu1 %v7540_v25  ;;  %v1041_v20 = vrot.slane %v7540_v25, 1  ;;  %v1042_v36 = vrot.slane %v7542_v32, 1 }
 0x193   : > { %v781_v37 = vmax.f32 %v715_v19, 0.0  ;;  %5392 = vmatmul.mubr.f32.gmra.mrb[16].mxu1 %v7542_v32 }
 0x194   : > { %v780_v38 = vmax.f32 %v710_v26, 0.0  ;;  %v5085_v42 = vpop.f32.mrb[24].mxu0  ;;  %v7553_v49 = vsel %vm995_vm1, %v1041_v20, %v1042_v36  ;;  %v7556_v59 = vsel %vm995_vm1, %v1042_v36, %v1044_v33  ;;  %v7558_v61 = vld [vmem:[#allocation2 + $0x100] sm:$0x3] }
 0x195   : > { %8497 = vst [vmem:[#allocation27_spill] sm:$0xff] %v7553_v49  ;;  %8498 = vst [vmem:[#allocation28_spill] sm:$0xff] %v7556_v59  ;;  %v725_v58 = vadd.f32 %v5085_v42, %v7359_v54  ;;  %v719_v62 = vpop.f32.mrb[25].mxu0  ;;  %5154 = vmatprep.mubr.f32.mxu0 %v7553_v49  ;;  %v7562_v63 = vld [vmem:[#allocation2 + $0xf0] sm:$0xff]  ;;  %v7564_v3 = vld [vmem:[#allocation2 + $0xf8] sm:$0xff]  ;;  %v1049_v4 = vrot.slane %v7558_v61, 1 }
 0x196   : > { %8499 = vst [vmem:[#allocation29_spill] sm:$0xff] %v7558_v61  ;;  %868 = vst [vmem:[#allocation2 + $0x129] sm:$0xff] %v781_v37  ;;  %v720_v19 = vadd.f32 %v7359_v54, %v719_v62  ;;  %5155 = vmatmul.mubr.f32.gmra.mrb[50].mxu0 %v7556_v59  ;;  %5394 = vmatprep.mubr.f32.mxu1 %v7562_v63  ;;  %v1046_v24 = vrot.slane %v7562_v63, 1  ;;  %v1047_v33 = vrot.slane %v7564_v3, 1 }
 0x197   : > { %867 = vst [vmem:[#allocation2 + $0x121] sm:$0xff] %v780_v38  ;;  %v783_v26 = vmax.f32 %v725_v58, 0.0  ;;  %5395 = vmatmul.mubr.f32.gmra.mrb[18].mxu1 %v7564_v3 }
 0x198   : > { %v782_v20 = vmax.f32 %v720_v19, 0.0  ;;  %v5088_v36 = vpop.f32.mrb[26].mxu0  ;;  %v7574_v37 = vsel %vm995_vm1, %v1046_v24, %v1047_v33  ;;  %v7577_v38 = vsel %vm995_vm1, %v1047_v33, %v1049_v4  ;;  %v7579_v42 = vld [vmem:[#allocation2 + $0x118] sm:$0x3] }
 0x199   : > { %8500 = vst [vmem:[#allocation30_spill] sm:$0xff] %v7574_v37  ;;  %8501 = vst [vmem:[#allocation31_spill] sm:$0xff] %v7577_v38  ;;  %v735_v62 = vadd.f32 %v5088_v36, %v7359_v54  ;;  %v729_v7 = vpop.f32.mrb[27].mxu0  ;;  %5157 = vmatprep.mubr.f32.mxu0 %v7574_v37  ;;  %v7583_v61 = vld [vmem:[#allocation2 + $0x108] sm:$0xff]  ;;  %v7585_v58 = vld [vmem:[#allocation2 + $0x110] sm:$0xff]  ;;  %v1054_v19 = vrot.slane %v7579_v42, 1 }
 0x19a   : > { %8502 = vst [vmem:[#allocation32_spill] sm:$0xff] %v7579_v42  ;;  %870 = vst [vmem:[#allocation2 + $0x141] sm:$0xff] %v783_v26  ;;  %v730_v24 = vadd.f32 %v7359_v54, %v729_v7  ;;  %5158 = vmatmul.mubr.f32.gmra.mrb[52].mxu0 %v7577_v38  ;;  %5397 = vmatprep.mubr.f32.mxu1 %v7583_v61  ;;  %v1051_v4 = vrot.slane %v7583_v61, 1  ;;  %v1052_v33 = vrot.slane %v7585_v58, 1 }
 0x19b   : > { %869 = vst [vmem:[#allocation2 + $0x139] sm:$0xff] %v782_v20  ;;  %v785_v26 = vmax.f32 %v735_v62, 0.0  ;;  %5398 = vmatmul.mubr.f32.gmra.mrb[20].mxu1 %v7585_v58 }
 0x19c   : > { %v784_v36 = vmax.f32 %v730_v24, 0.0  ;;  %v5091_v14 = vpop.f32.mrb[28].mxu0  ;;  %v7595_v41 = vsel %vm995_vm1, %v1051_v4, %v1052_v33  ;;  %v7598_v20 = vsel %vm995_vm1, %v1052_v33, %v1054_v19 }
 0x19d   : > { %8503 = vst [vmem:[#allocation33_spill] sm:$0xff] %v7595_v41  ;;  %8504 = vst [vmem:[#allocation34_spill] sm:$0xff] %v7598_v20  ;;  %v7600_v7 = vld [vmem:[#allocation2 + $0x130] sm:$0x3]  ;;  %v745_v42 = vadd.f32 %v5091_v14, %v7359_v54  ;;  %v739_v11 = vpop.f32.mrb[29].mxu0  ;;  %5160 = vmatprep.mubr.f32.mxu0 %v7595_v41 }
 0x19e   : > { %8505 = vst [vmem:[#allocation35_spill] sm:$0xff] %v7600_v7  ;;  %872 = vst [vmem:[#allocation2 + $0x159] sm:$0xff] %v785_v26  ;;  %v7604_v48 = vld [vmem:[#allocation2 + $0x120] sm:$0xff]  ;;  %v7606_v62 = vld [vmem:[#allocation2 + $0x128] sm:$0xff]  ;;  %v1059_v24 = vrot.slane %v7600_v7, 1  ;;  %v740_v4 = vadd.f32 %v7359_v54, %v739_v11  ;;  %5161 = vmatmul.mubr.f32.gmra.mrb[54].mxu0 %v7598_v20 }
 0x19f   : > { %871 = vst [vmem:[#allocation2 + $0x151] sm:$0xff] %v784_v36  ;;  %5400 = vmatprep.mubr.f32.mxu1 %v7604_v48  ;;  %v1056_v19 = vrot.slane %v7604_v48, 1  ;;  %v1057_v14 = vrot.slane %v7606_v62, 1  ;;  %v787_v33 = vmax.f32 %v745_v42, 0.0 }
 0x1a0   : > { %5401 = vmatmul.mubr.f32.gmra.mrb[22].mxu1 %v7606_v62  ;;  %v786_v26 = vmax.f32 %v740_v4, 0.0  ;;  %v5094_v23 = vpop.f32.mrb[30].mxu0 }
 0x1a1   : > { %v7616_v2 = vsel %vm995_vm1, %v1056_v19, %v1057_v14  ;;  %v7619_v36 = vsel %vm995_vm1, %v1057_v14, %v1059_v24  ;;  %v7621_v11 = vld [vmem:[#allocation2 + $0x148] sm:$0x3]  ;;  %874 = vst [vmem:[#allocation2 + $0x171] sm:$0xff] %v787_v33  ;;  %v755_v7 = vadd.f32 %v5094_v23, %v7359_v54  ;;  %v749_v47 = vpop.f32.mrb[31].mxu0 }
 0x1a2   : > { %8506 = vst [vmem:[#allocation36_spill] sm:$0xff] %v7616_v2  ;;  %8507 = vst [vmem:[#allocation37_spill] sm:$0xff] %v7619_v36  ;;  %5163 = vmatprep.mubr.f32.mxu0 %v7616_v2  ;;  %v7625_v31 = vld [vmem:[#allocation2 + $0x138] sm:$0xff]  ;;  %v7627_v42 = vld [vmem:[#allocation2 + $0x140] sm:$0xff]  ;;  %v1064_v4 = vrot.slane %v7621_v11, 1  ;;  %v750_v19 = vadd.f32 %v7359_v54, %v749_v47 }
 0x1a3   : > { %8508 = vst [vmem:[#allocation38_spill] sm:$0xff] %v7621_v11  ;;  %8509 = vst [vmem:[#allocation39_spill] sm:$0xff] %v7627_v42  ;;  %5164 = vmatmul.mubr.f32.gmra.mrb[56].mxu0 %v7619_v36  ;;  %5403 = vmatprep.mubr.f32.mxu1 %v7625_v31  ;;  %v1061_v24 = vrot.slane %v7625_v31, 1  ;;  %v1062_v23 = vrot.slane %v7627_v42, 1  ;;  %v789_v14 = vmax.f32 %v755_v7, 0.0 }
 0x1a4   : > { %873 = vst [vmem:[#allocation2 + $0x169] sm:$0xff] %v786_v26  ;;  %5404 = vmatmul.mubr.f32.gmra.mrb[24].mxu1 %v7627_v42  ;;  %v788_v33 = vmax.f32 %v750_v19, 0.0 }
 0x1a5   : > { %v7637_v13 = vsel %vm995_vm1, %v1061_v24, %v1062_v23  ;;  %v7640_v11 = vsel %vm995_vm1, %v1062_v23, %v1064_v4  ;;  %v7642_v26 = vld [vmem:[#allocation2 + $0x160] sm:$0x3]  ;;  %876 = vst [vmem:[#allocation2 + $0x189] sm:$0xff] %v789_v14 }
 0x1a6   : > { %8510 = vst [vmem:[#allocation40_spill] sm:$0xff] %v7637_v13  ;;  %8511 = vst [vmem:[#allocation41_spill] sm:$0xff] %v7640_v11  ;;  %5166 = vmatprep.mubr.f32.mxu0 %v7637_v13  ;;  %v7645_v54 = vld [vmem:[#allocation2 + $0x150] sm:$0xff]  ;;  %v7647_v47 = vld [vmem:[#allocation2 + $0x158] sm:$0xff]  ;;  %v1069_v7 = vrot.slane %v7642_v26, 1 }
 0x1a7   : > { %8512 = vst [vmem:[#allocation42_spill] sm:$0xff] %v7642_v26  ;;  %8513 = vst [vmem:[#allocation43_spill] sm:$0xff] %v7645_v54  ;;  %5167 = vmatmul.mubr.f32.gmra.mrb[58].mxu0 %v7640_v11  ;;  %5406 = vmatprep.mubr.f32.mxu1 %v7645_v54  ;;  %v1066_v19 = vrot.slane %v7645_v54, 1  ;;  %v1067_v4 = vrot.slane %v7647_v47, 1 }
 0x1a8   : > { %8514 = vst [vmem:[#allocation44_spill] sm:$0xff] %v7647_v47  ;;  %875 = vst [vmem:[#allocation2 + $0x181] sm:$0xff] %v788_v33  ;;  %5407 = vmatmul.mubr.f32.gmra.mrb[26].mxu1 %v7647_v47  ;;  %v7661_v14 = vld [vmem:[#allocation2 + $0x178] sm:$0x3] }
 0x1a9   : > { %v7656_v24 = vsel %vm995_vm1, %v1066_v19, %v1067_v4  ;;  %v7659_v23 = vsel %vm995_vm1, %v1067_v4, %v1069_v7  ;;  %8517 = vst [vmem:[#allocation47_spill] sm:$0xff] %v7661_v14  ;;  %v1074_v54 = vrot.slane %v7661_v14, 1 }
 0x1aa   : > { %8515 = vst [vmem:[#allocation45_spill] sm:$0xff] %v7656_v24  ;;  %8516 = vst [vmem:[#allocation46_spill] sm:$0xff] %v7659_v23  ;;  %5169 = vmatprep.mubr.f32.mxu0 %v7656_v24  ;;  %v1692_v24 = vld [vmem:[#allocation8 + $0x118] sm:$0xff] }
 0x1ab   : > { %v7664_v33 = vld [vmem:[#allocation2 + $0x168] sm:$0xff]  ;;  %v7666_v26 = vld [vmem:[#allocation2 + $0x170] sm:$0xff]  ;;  %5170 = vmatmul.mubr.f32.gmra.mrb[60].mxu0 %v7659_v23  ;;  %v2531_v23 = vld [vmem:[#allocation8 + $0x298] sm:$0xff] }
 0x1ac   : > { %8518 = vst [vmem:[#allocation48_spill] sm:$0xff] %v7664_v33  ;;  %8519 = vst [vmem:[#allocation49_spill] sm:$0xff] %v7666_v26  ;;  %5409 = vmatprep.mubr.f32.mxu1 %v7664_v33  ;;  %v1071_v19 = vrot.slane %v7664_v33, 1  ;;  %v1072_v47 = vrot.slane %v7666_v26, 1  ;;  %v2530_v33 = vld [vmem:[#allocation8 + $0x290] sm:$0xff] }
 0x1ad   : > { %5410 = vmatmul.mubr.f32.gmra.mrb[28].mxu1 %v7666_v26  ;;  %v8524_v26 = vmov 0.0  }
 0x1ae   : > { %v7675_v7 = vsel %vm995_vm1, %v1071_v19, %v1072_v47  ;;  %v7678_v4 = vsel %vm995_vm1, %v1072_v47, %v1074_v54  ;;  %v1691_v19 = vld [vmem:[#allocation8 + $0x110] sm:$0xff]  ;;  %v6115_v54 = vpack.c.bf16 %v2531_v23, %v2530_v33  ;;  %v2532_v47 = vld [vmem:[#allocation8 + $0x2a0] sm:$0xff]  ;;  %v1696_v23 = vld [vmem:[#allocation8 + $0x138] sm:$0xff] }
 0x1af   : > { %8520 = vst [vmem:[#allocation50_spill] sm:$0xff] %v7675_v7  ;;  %8521 = vst [vmem:[#allocation51_spill] sm:$0xff] %v7678_v4  ;;  %5172 = vmatprep.mubr.f32.mxu0 %v7675_v7  ;;  %v7681_v42 = vld [vmem:[#allocation2 + $0x180] sm:$0xff]  ;;  %v7683_v14 = vld [vmem:[#allocation2 + $0x188] sm:$0xff]  ;;  %v6019_v11 = vpack.c.bf16 %v1692_v24, %v1691_v19 }
 0x1b0   : > { %8522 = vst [vmem:[#allocation52_spill] sm:$0xff] %v7681_v42  ;;  %8523 = vst [vmem:[#allocation53_spill] sm:$0xff] %v7683_v14  ;;  %5173 = vmatmul.mubr.f32.gmra.mrb[62].mxu0 %v7678_v4  ;;  %5412 = vmatprep.mubr.f32.mxu1 %v7681_v42  ;;  %v2533_v7 = vld [vmem:[#allocation8 + $0x2a8] sm:$0xff]  ;;  %v1693_v4 = vld [vmem:[#allocation8 + $0x120] sm:$0xff] }
 0x1b1   : > { %5413 = vmatmul.mubr.f32.gmra.mrb[30].mxu1 %v7683_v14  ;;  %5207 = vmatprep.mubr.f32.mxu0 %v8524_v26  ;;  %v1694_v42 = vld [vmem:[#allocation8 + $0x128] sm:$0xff]  ;;  %v6119_v14 = vpack.c.bf16 %v2533_v7, %v2532_v47 }
 0x1b2   : > { %5447 = vmatprep.mubr.f32.mxu1 %v7382_v29  ;;  %v2534_v29 = vld [vmem:[#allocation8 + $0x2b0] sm:$0xff]  ;;  %v6023_v24 = vpack.c.bf16 %v1694_v42, %v1693_v4  ;;  %v2537_v33 = vld [vmem:[#allocation8 + $0x2c8] sm:$0xff]  ;;  %v1697_v42 = vld [vmem:[#allocation8 + $0x140] sm:$0xff] }
 0x1b3   : > { %v1698_v4 = vld [vmem:[#allocation8 + $0x148] sm:$0xff] }
 0x1b4   : > { %5208 = vmatmul.mubr.f32.vlgmr.msra.gmra.mrb[32].mxu0 %v8524_v26  ;;  %v2535_v26 = vld [vmem:[#allocation8 + $0x2b8] sm:$0xff]  ;;  %v6031_v47 = vpack.c.bf16 %v1698_v4, %v1697_v42  ;;  %v2542_v42 = vld [vmem:[#allocation8 + $0x2f0] sm:$0xff] }
 0x1b5   : > { %5210 = vmatprep.mubr.f32.mxu0 %v7370_v16  ;;  %5448 = vmatmul.mubr.f32.vlgmr.msra.gmra.mrb[0].mxu1 %v7385_v30  ;;  %v1695_v30 = vld [vmem:[#allocation8 + $0x130] sm:$0xff]  ;;  %v2543_v4 = vld [vmem:[#allocation8 + $0x2f8] sm:$0xff] }
 0x1b6   : > { %6114 = vmatpush3.bf16.msra.mxu1 %v7522_v60  ;;  %5450 = vmatprep.mubr.f32.mxu1 %v7403_v45  ;;  %v6123_v60 = vpack.c.bf16 %v2535_v26, %v2534_v29  ;;  %v6027_v7 = vpack.c.bf16 %v1696_v23, %v1695_v30  ;;  %v1699_v29 = vld [vmem:[#allocation8 + $0x150] sm:$0xff]  ;;  %v1700_v26 = vld [vmem:[#allocation8 + $0x158] sm:$0xff]  ;;  %v2541_v30 = vld [vmem:[#allocation8 + $0x2e8] sm:$0xff] }
 0x1b7   : > { %6116 = vmatprep.subr.bf16.mxu1 %v6115_v54  ;;  %6018 = vmatpush3.bf16.msra.mxu0 %v7353_v53  ;;  %v2536_v53 = vld [vmem:[#allocation8 + $0x2c0] sm:$0xff]  ;;  %v6035_v23 = vpack.c.bf16 %v1700_v26, %v1699_v29  ;;  %v2803_v26 = vld [vmem:[#allocation8 + $0x308] sm:$0xff] }
 0x1b8   : > { %5211 = vmatmul.mubr.f32.gmra.mrb[34].mxu0 %v7372_v17  ;;  %6020 = vmatprep.subr.bf16.mxu0 %v6019_v11  ;;  %v6127_v19 = vpack.c.bf16 %v2537_v33, %v2536_v53  ;;  %v1701_v53 = vld [vmem:[#allocation8 + $0x160] sm:$0xff]  ;;  %v1702_v33 = vld [vmem:[#allocation8 + $0x168] sm:$0xff] }
 0x1b9   : > { %5213 = vmatprep.mubr.f32.mxu0 %v7391_v34  ;;  %5451 = vmatmul.mubr.f32.gmra.mrb[2].mxu1 %v7406_v46  ;;  %v2802_v29 = vld [vmem:[#allocation8 + $0x300] sm:$0xff] }
 0x1ba   : > { %5453 = vmatprep.mubr.f32.mxu1 %v7424_v0  ;;  %6118 = vmatpush3.bf16.msra.mxu1 %v6115_v54  ;;  %v2539_v54 = vld [vmem:[#allocation8 + $0x2d8] sm:$0xff] }
 0x1bb   : > { %6120 = vmatprep.subr.bf16.mxu1 %v6119_v14  ;;  %6022 = vmatpush3.bf16.msra.mxu0 %v6019_v11  ;;  %v2538_v11 = vld [vmem:[#allocation8 + $0x2d0] sm:$0xff] }
 0x1bc   : > { %5214 = vmatmul.mubr.f32.gmra.mrb[36].mxu0 %v7393_v35  ;;  %6024 = vmatprep.subr.bf16.mxu0 %v6023_v24 }
 0x1bd   : > { %5216 = vmatprep.mubr.f32.mxu0 %v7412_v50  ;;  %5454 = vmatmul.mubr.f32.gmra.mrb[4].mxu1 %v7427_v1 }
 0x1be   : > { %5456 = vmatprep.mubr.f32.mxu1 %v7445_v21  ;;  %6122 = vmatpush3.bf16.msra.mxu1 %v6119_v14  ;;  %v6131_v14 = vpack.c.bf16 %v2539_v54, %v2538_v11  ;;  %v1703_v11 = vld [vmem:[#allocation8 + $0x170] sm:$0xff]  ;;  %v1704_v54 = vld [vmem:[#allocation8 + $0x178] sm:$0xff] }
 0x1bf   : > { %6124 = vmatprep.subr.bf16.mxu1 %v6123_v60  ;;  %6026 = vmatpush3.bf16.msra.mxu0 %v6023_v24  ;;  %v2540_v24 = vld [vmem:[#allocation8 + $0x2e0] sm:$0xff] }
 0x1c0   : > { %5217 = vmatmul.mubr.f32.gmra.mrb[38].mxu0 %v7414_v51  ;;  %6028 = vmatprep.subr.bf16.mxu0 %v6027_v7 }
 0x1c1   : > { %5219 = vmatprep.mubr.f32.mxu0 %v7433_v5  ;;  %5457 = vmatmul.mubr.f32.gmra.mrb[6].mxu1 %v7448_v22 }
 0x1c2   : > { %5459 = vmatprep.mubr.f32.mxu1 %v7466_v43  ;;  %6126 = vmatpush3.bf16.msra.mxu1 %v6123_v60  ;;  %v6135_v60 = vpack.c.bf16 %v2541_v30, %v2540_v24  ;;  %v7720_v24 = vpack.c.bf16 %v2803_v26, %v2802_v29  ;;  %v8526_v30 = vld [vmem:[#allocation45_spill] sm:$0xff]  ;;  %v8534_v29 = vld [vmem:[#allocation44_spill] sm:$0xff] }
 0x1c3   : > { %6128 = vmatprep.subr.bf16.mxu1 %v6127_v19  ;;  %6030 = vmatpush3.bf16.msra.mxu0 %v6027_v7  ;;  %v6039_v7 = vpack.c.bf16 %v1702_v33, %v1701_v53  ;;  %v8528_v53 = vld [vmem:[#allocation43_spill] sm:$0xff]  ;;  %v8529_v33 = vld [vmem:[#allocation46_spill] sm:$0xff] }
 0x1c4   : > { %5220 = vmatmul.mubr.f32.gmra.mrb[40].mxu0 %v7435_v6  ;;  %6032 = vmatprep.subr.bf16.mxu0 %v6031_v47 }
 0x1c5   : > { %5222 = vmatprep.mubr.f32.mxu0 %v7454_v27  ;;  %5460 = vmatmul.mubr.f32.gmra.mrb[8].mxu1 %v7469_v44 }
 0x1c6   : > { %5462 = vmatprep.mubr.f32.mxu1 %v7487_v9  ;;  %6130 = vmatpush3.bf16.msra.mxu1 %v6127_v19  ;;  %v6139_v19 = vpack.c.bf16 %v2543_v4, %v2542_v42  ;;  %v8531_v42 = vld [vmem:[#allocation53_spill] sm:$0xff] }
 0x1c7   : > { %6132 = vmatprep.subr.bf16.mxu1 %v6131_v14  ;;  %6034 = vmatpush3.bf16.msra.mxu0 %v6031_v47  ;;  %v6043_v47 = vpack.c.bf16 %v1704_v54, %v1703_v11  ;;  %v2240_v4 = vrot.slane %v8531_v42, 1  ;;  %v7752_v11 = vld [vmem:[#allocation2 + $0x190] sm:$0x3]  ;;  %v8532_v54 = vld [vmem:[#allocation50_spill] sm:$0xff] }
 0x1c8   : > { %5223 = vmatmul.mubr.f32.gmra.mrb[42].mxu0 %v7456_v28  ;;  %6036 = vmatprep.subr.bf16.mxu0 %v6035_v23  ;;  %v2242_v26 = vrot.slane %v7752_v11, 1 }
 0x1c9   : > { %5225 = vmatprep.mubr.f32.mxu0 %v7475_v55  ;;  %5463 = vmatmul.mubr.f32.gmra.mrb[10].mxu1 %v7490_v10 }
 0x1ca   : > { %5465 = vmatprep.mubr.f32.mxu1 %v7508_v39  ;;  %6134 = vmatpush3.bf16.msra.mxu1 %v6131_v14  ;;  %v8525_v14 = vld [vmem:[#allocation41_spill] sm:$0xff] }
 0x1cb   : > { %6136 = vmatprep.subr.bf16.mxu1 %v6135_v60  ;;  %6038 = vmatpush3.bf16.msra.mxu0 %v6035_v23  ;;  %v8527_v23 = vld [vmem:[#allocation39_spill] sm:$0xff] }
 0x1cc   : > { %5226 = vmatmul.mubr.f32.gmra.mrb[44].mxu0 %v7477_v56  ;;  %6040 = vmatprep.subr.bf16.mxu0 %v6039_v7 }
 0x1cd   : > { %5228 = vmatprep.mubr.f32.mxu0 %v7496_v15  ;;  %5466 = vmatmul.mubr.f32.gmra.mrb[12].mxu1 %v7511_v40 }
 0x1ce   : > { %5468 = vmatprep.mubr.f32.mxu1 %v7531_v8  ;;  %6138 = vmatpush3.bf16.msra.mxu1 %v6135_v60  ;;  %v8530_v60 = vld [vmem:[#allocation52_spill] sm:$0xff] }
 0x1cf   : > { %6140 = vmatprep.subr.bf16.mxu1 %v6139_v19  ;;  %6042 = vmatpush3.bf16.msra.mxu0 %v6039_v7  ;;  %v2239_v7 = vrot.slane %v8530_v60, 1 }
 0x1d0   : > { %5229 = vmatmul.mubr.f32.gmra.mrb[46].mxu0 %v7498_v18  ;;  %6044 = vmatprep.subr.bf16.mxu0 %v6043_v47 }
 0x1d1   : > { %5231 = vmatprep.mubr.f32.mxu0 %v7517_v52  ;;  %5469 = vmatmul.mubr.f32.gmra.mrb[14].mxu1 %v7534_v12 }
 0x1d2   : > { %5471 = vmatprep.mubr.f32.mxu1 %v7553_v49  ;;  %6142 = vmatpush3.bf16.msra.mxu1 %v6139_v19  ;;  %v7755_v19 = vld [vmem:[#allocation2] sm:$0xff] }
 0x1d3   : > { %6046 = vmatpush3.bf16.msra.mxu0 %v6043_v47  ;;  %6144 = vmatprep.subr.bf16.mxu1 %v7720_v24  ;;  %v7758_v47 = vrot.slane %v7755_v19, 2  ;;  %v2806_v49 = vld [vmem:[#allocation8 + $0x320] sm:$0xff] }
 0x1d4   : > { %5232 = vmatmul.mubr.f32.gmra.mrb[48].mxu0 %v7519_v57 }
 0x1d5   : > { %5234 = vmatprep.mubr.f32.mxu0 %v7540_v25  ;;  %5472 = vmatmul.mubr.f32.gmra.mrb[16].mxu1 %v7556_v59  ;;  %8533 = vst [vmem:[#allocation39_spill] sm:$0xff] %v7758_v47  ;;  %v2804_v59 = vld [vmem:[#allocation8 + $0x310] sm:$0xff] }
 0x1d6   : > { %5474 = vmatprep.mubr.f32.mxu1 %v7574_v37  ;;  %v7773_v37 = vsel %vm995_vm1, %v2240_v4, %v2242_v26  ;;  %v8541_v26 = vld [vmem:[#allocation19_spill] sm:$0xff] }
 0x1d7   : > { %8540 = vst [vmem:[#allocation52_spill] sm:$0xff] %v7773_v37 }
 0x1d8   : > { %5235 = vmatmul.mubr.f32.gmra.mrb[50].mxu0 %v7542_v32 }
 0x1d9   : > { %5237 = vmatprep.mubr.f32.mxu0 %v7562_v63  ;;  %5475 = vmatmul.mubr.f32.gmra.mrb[18].mxu1 %v7577_v38  ;;  %v8539_v38 = vld [vmem:[#allocation49_spill] sm:$0xff] }
 0x1da   : > { %5477 = vmatprep.mubr.f32.mxu1 %v7595_v41 }
 0x1dc   : > { %5238 = vmatmul.mubr.f32.gmra.mrb[52].mxu0 %v7564_v3 }
 0x1dd   : > { %5240 = vmatprep.mubr.f32.mxu0 %v7583_v61  ;;  %5478 = vmatmul.mubr.f32.gmra.mrb[20].mxu1 %v7598_v20  ;;  %v8538_v20 = vld [vmem:[#allocation18_spill] sm:$0xff] }
 0x1de   : > { %5480 = vmatprep.mubr.f32.mxu1 %v7616_v2  ;;  %v1584_v41 = vrot.slane %v8538_v20, 2  ;;  %v1587_v20 = vrot.slane %v7393_v35, 2 }
 0x1e0   : > { %5241 = vmatmul.mubr.f32.gmra.mrb[54].mxu0 %v7585_v58 }
 0x1e1   : > { %5243 = vmatprep.mubr.f32.mxu0 %v7604_v48  ;;  %5481 = vmatmul.mubr.f32.gmra.mrb[22].mxu1 %v7619_v36  ;;  %v6710_v36 = vld [vmem:[#allocation2 + $0x10] sm:$0x3] }
 0x1e2   : > { %5483 = vmatprep.mubr.f32.mxu1 %v7637_v13  ;;  %v1581_v13 = vrot.slane %v7370_v16, 2  ;;  %v1579_v2 = vrot.slane %v6710_v36, 2 }
 0x1e4   : > { %5244 = vmatmul.mubr.f32.gmra.mrb[56].mxu0 %v7606_v62  ;;  %v1580_v16 = vsel %vm1575_vm2, %v7758_v47, %v1579_v2  ;;  %v1591_v2 = vrot.slane %v7412_v50, 2 }
 0x1e5   : > { %5246 = vmatprep.mubr.f32.mxu0 %v7625_v31  ;;  %5484 = vmatmul.mubr.f32.gmra.mrb[24].mxu1 %v8525_v14  ;;  %v7765_v14 = vsel %vm995_vm1, %v2239_v7, %v2240_v4 }
 0x1e6   : > { %5486 = vmatprep.mubr.f32.mxu1 %v8526_v30  ;;  %v8535_v30 = vld [vmem:[#allocation48_spill] sm:$0xff]  ;;  %8537 = vst [vmem:[#allocation43_spill] sm:$0xff] %v7765_v14 }
 0x1e8   : > { %5247 = vmatmul.mubr.f32.gmra.mrb[58].mxu0 %v8527_v23 }
 0x1e9   : > { %5249 = vmatprep.mubr.f32.mxu0 %v8528_v53  ;;  %5487 = vmatmul.mubr.f32.gmra.mrb[26].mxu1 %v8529_v33  ;;  %v8536_v33 = vld [vmem:[#allocation51_spill] sm:$0xff] }
 0x1ea   : > { %5489 = vmatprep.mubr.f32.mxu1 %v8532_v54  ;;  %v1582_v54 = vrot.slane %v7372_v17, 2  ;;  %v1586_v17 = vrot.slane %v7391_v34, 2  ;;  %v1592_v34 = vrot.slane %v7414_v51, 2  ;;  %v1596_v51 = vrot.slane %v7433_v5, 2 }
 0x1ec   : > { %5250 = vmatmul.mubr.f32.gmra.mrb[60].mxu0 %v8534_v29  ;;  %v1583_v7 = vsel %vm1575_vm2, %v1581_v13, %v1582_v54  ;;  %v1585_v4 = vsel %vm1575_vm2, %v1582_v54, %v1584_v41  ;;  %v7785_v13 = vsel %vm1575_vm2, %v1586_v17, %v1587_v20  ;;  %v2808_v54 = vld [vmem:[#allocation8 + $0x330] sm:$0xff]  ;;  %v7798_v50 = vsel %vm1575_vm2, %v1591_v2, %v1592_v34  ;;  %v2810_v17 = vld [vmem:[#allocation8 + $0x340] sm:$0xff] }
 0x1ed   : > { %5252 = vmatprep.mubr.f32.mxu0 %v8535_v30  ;;  %5490 = vmatmul.mubr.f32.gmra.mrb[28].mxu1 %v8536_v33  ;;  %v2805_v33 = vld [vmem:[#allocation8 + $0x318] sm:$0xff]  ;;  %v8544_v2 = vld [vmem:[#allocation22_spill] sm:$0xff] }
 0x1ee   : > { %5492 = vmatprep.mubr.f32.mxu1 %v7765_v14  ;;  %v6147_v36 = vpack.c.bf16 %v2805_v33, %v2804_v59  ;;  %v1589_v14 = vrot.slane %v8541_v26, 2  ;;  %v8542_v59 = vld [vmem:[#allocation20_spill] sm:$0xff] }
 0x1ef   : > { %v1594_v33 = vrot.slane %v8542_v59, 2  ;;  %v2812_v59 = vld [vmem:[#allocation8 + $0x350] sm:$0xff] }
 0x1f0   : > { %5253 = vmatmul.mubr.f32.gmra.mrb[62].mxu0 %v8539_v38  ;;  %v7792_v41 = vsel %vm1575_vm2, %v1587_v20, %v1589_v14  ;;  %v8543_v14 = vld [vmem:[#allocation21_spill] sm:$0xff]  ;;  %v2811_v20 = vld [vmem:[#allocation8 + $0x348] sm:$0xff] }
 0x1f1   : > { %5493 = vmatmul.mubr.f32.gmra.mrb[30].mxu1 %v7773_v37  ;;  %5287 = vmatprep.mubr.f32.mxu0 %v7758_v47  ;;  %v2807_v37 = vld [vmem:[#allocation8 + $0x328] sm:$0xff]  ;;  %v1651_v47 = vrot.slane %v8535_v30, 2 }
 0x1f2   : > { %5527 = vmatprep.mubr.f32.mxu1 %v1583_v7  ;;  %v6151_v35 = vpack.c.bf16 %v2807_v37, %v2806_v49  ;;  %v7805_v37 = vsel %vm1575_vm2, %v1592_v34, %v1594_v33  ;;  %v1604_v34 = vrot.slane %v8544_v2, 2  ;;  %v2813_v33 = vld [vmem:[#allocation8 + $0x358] sm:$0xff]  ;;  %v2816_v2 = vld [vmem:[#allocation8 + $0x370] sm:$0xff] }
 0x1f4   : > { %5288 = vmatmul.mubr.f32.vlgmr.msra.gmra.mrb[32].mxu0 %v1580_v16  ;;  %v1599_v16 = vrot.slane %v8543_v14, 2  ;;  %v2814_v14 = vld [vmem:[#allocation8 + $0x360] sm:$0xff] }
 0x1f5   : > { %5290 = vmatprep.mubr.f32.mxu0 %v1583_v7  ;;  %5528 = vmatmul.mubr.f32.vlgmr.msra.gmra.mrb[0].mxu1 %v1585_v4  ;;  %v2809_v7 = vld [vmem:[#allocation8 + $0x338] sm:$0xff] }
 0x1f6   : > { %6146 = vmatpush3.bf16.msra.mxu1 %v7720_v24  ;;  %5530 = vmatprep.mubr.f32.mxu1 %v7785_v13  ;;  %v1597_v24 = vrot.slane %v7435_v6, 2  ;;  %v6155_v49 = vpack.c.bf16 %v2809_v7, %v2808_v54  ;;  %v1601_v6 = vrot.slane %v7454_v27, 2  ;;  %v6163_v54 = vpack.c.bf16 %v2813_v33, %v2812_v59 }
 0x1f7   : > { %6148 = vmatprep.subr.bf16.mxu1 %v6147_v36 }
 0x1f8   : > { %5291 = vmatmul.mubr.f32.gmra.mrb[34].mxu0 %v1585_v4  ;;  %v7811_v5 = vsel %vm1575_vm2, %v1596_v51, %v1597_v24  ;;  %v6159_v4 = vpack.c.bf16 %v2811_v20, %v2810_v17  ;;  %v7818_v26 = vsel %vm1575_vm2, %v1597_v24, %v1599_v16  ;;  %v8545_v51 = vld [vmem:[#allocation23_spill] sm:$0xff] }
 0x1f9   : > { %5293 = vmatprep.mubr.f32.mxu0 %v7785_v13  ;;  %5531 = vmatmul.mubr.f32.gmra.mrb[2].mxu1 %v7792_v41  ;;  %v1609_v24 = vrot.slane %v8545_v51, 2  ;;  %v2815_v16 = vld [vmem:[#allocation8 + $0x368] sm:$0xff]  ;;  %v3086_v51 = vld [vmem:[#allocation8 + $0x380] sm:$0xff] }
 0x1fa   : > { %5533 = vmatprep.mubr.f32.mxu1 %v7798_v50  ;;  %6150 = vmatpush3.bf16.msra.mxu1 %v6147_v36  ;;  %v1602_v36 = vrot.slane %v7456_v28, 2  ;;  %v1606_v28 = vrot.slane %v7475_v55, 2  ;;  %v6167_v17 = vpack.c.bf16 %v2815_v16, %v2814_v14 }
 0x1fb   : > { %6152 = vmatprep.subr.bf16.mxu1 %v6151_v35 }
 0x1fc   : > { %5294 = vmatmul.mubr.f32.gmra.mrb[36].mxu0 %v7792_v41  ;;  %v7824_v27 = vsel %vm1575_vm2, %v1601_v6, %v1602_v36  ;;  %v7831_v7 = vsel %vm1575_vm2, %v1602_v36, %v1604_v34  ;;  %v8546_v6 = vld [vmem:[#allocation24_spill] sm:$0xff]  ;;  %v2817_v34 = vld [vmem:[#allocation8 + $0x378] sm:$0xff] }
 0x1fd   : > { %5296 = vmatprep.mubr.f32.mxu0 %v7798_v50  ;;  %5534 = vmatmul.mubr.f32.gmra.mrb[4].mxu1 %v7805_v37  ;;  %v1614_v36 = vrot.slane %v8546_v6, 2  ;;  %v6171_v59 = vpack.c.bf16 %v2817_v34, %v2816_v2  ;;  %v8549_v2 = vld [vmem:[#allocation29_spill] sm:$0xff] }
 0x1fe   : > { %5536 = vmatprep.mubr.f32.mxu1 %v7811_v5  ;;  %6154 = vmatpush3.bf16.msra.mxu1 %v6151_v35  ;;  %v1607_v35 = vrot.slane %v7477_v56, 2  ;;  %v1611_v56 = vrot.slane %v7496_v15, 2  ;;  %v1629_v34 = vrot.slane %v8549_v2, 2  ;;  %v1641_v2 = vrot.slane %v7625_v31, 2 }
 0x1ff   : > { %6156 = vmatprep.subr.bf16.mxu1 %v6155_v49 }
 0x200   : > { %5297 = vmatmul.mubr.f32.gmra.mrb[38].mxu0 %v7805_v37  ;;  %v7837_v55 = vsel %vm1575_vm2, %v1606_v28, %v1607_v35  ;;  %v7844_v20 = vsel %vm1575_vm2, %v1607_v35, %v1609_v24  ;;  %v8547_v28 = vld [vmem:[#allocation25_spill] sm:$0xff]  ;;  %v3087_v24 = vld [vmem:[#allocation8 + $0x388] sm:$0xff] }
 0x201   : > { %5299 = vmatprep.mubr.f32.mxu0 %v7811_v5  ;;  %5537 = vmatmul.mubr.f32.gmra.mrb[6].mxu1 %v7818_v26  ;;  %v1619_v35 = vrot.slane %v8547_v28, 2  ;;  %v7868_v14 = vpack.c.bf16 %v3087_v24, %v3086_v51 }
 0x202   : > { %5539 = vmatprep.mubr.f32.mxu1 %v7824_v27  ;;  %6158 = vmatpush3.bf16.msra.mxu1 %v6155_v49  ;;  %v1612_v49 = vrot.slane %v7498_v18, 2  ;;  %v1616_v18 = vrot.slane %v7517_v52, 2 }
 0x203   : > { %6160 = vmatprep.subr.bf16.mxu1 %v6159_v4 }
 0x204   : > { %5300 = vmatmul.mubr.f32.gmra.mrb[40].mxu0 %v7818_v26  ;;  %v7850_v15 = vsel %vm1575_vm2, %v1611_v56, %v1612_v49  ;;  %v7857_v33 = vsel %vm1575_vm2, %v1612_v49, %v1614_v36  ;;  %v8548_v56 = vld [vmem:[#allocation26_spill] sm:$0xff] }
 0x205   : > { %5302 = vmatprep.mubr.f32.mxu0 %v7824_v27  ;;  %5540 = vmatmul.mubr.f32.gmra.mrb[8].mxu1 %v7831_v7  ;;  %v1624_v49 = vrot.slane %v8548_v56, 2 }
 0x206   : > { %5542 = vmatprep.mubr.f32.mxu1 %v7837_v55  ;;  %6162 = vmatpush3.bf16.msra.mxu1 %v6159_v4  ;;  %v1617_v4 = vrot.slane %v7519_v57, 2  ;;  %v1621_v57 = vrot.slane %v7540_v25, 2 }
 0x207   : > { %6164 = vmatprep.subr.bf16.mxu1 %v6163_v54 }
 0x208   : > { %5303 = vmatmul.mubr.f32.gmra.mrb[42].mxu0 %v7831_v7  ;;  %v7863_v52 = vsel %vm1575_vm2, %v1616_v18, %v1617_v4  ;;  %v7872_v16 = vsel %vm1575_vm2, %v1617_v4, %v1619_v35  ;;  %v1631_v4 = vrot.slane %v7583_v61, 2  ;;  %v8550_v35 = vld [vmem:[#allocation32_spill] sm:$0xff] }
 0x209   : > { %5305 = vmatprep.mubr.f32.mxu0 %v7837_v55  ;;  %5543 = vmatmul.mubr.f32.gmra.mrb[10].mxu1 %v7844_v20  ;;  %v1634_v51 = vrot.slane %v8550_v35, 2 }
 0x20a   : > { %5545 = vmatprep.mubr.f32.mxu1 %v7850_v15  ;;  %6166 = vmatpush3.bf16.msra.mxu1 %v6163_v54  ;;  %v1622_v54 = vrot.slane %v7542_v32, 2  ;;  %v1626_v32 = vrot.slane %v7562_v63, 2 }
 0x20b   : > { %6168 = vmatprep.subr.bf16.mxu1 %v6167_v17 }
 0x20c   : > { %5306 = vmatmul.mubr.f32.gmra.mrb[44].mxu0 %v7844_v20  ;;  %v7878_v6 = vsel %vm1575_vm2, %v1621_v57, %v1622_v54  ;;  %v7886_v36 = vsel %vm1575_vm2, %v1622_v54, %v1624_v49  ;;  %v1636_v57 = vrot.slane %v7604_v48, 2  ;;  %v1637_v54 = vrot.slane %v7606_v62, 2  ;;  %v8553_v49 = vld [vmem:[#allocation35_spill] sm:$0xff] }
 0x20d   : > { %5308 = vmatprep.mubr.f32.mxu0 %v7850_v15  ;;  %5546 = vmatmul.mubr.f32.gmra.mrb[12].mxu1 %v7857_v33 }
 0x20e   : > { %5548 = vmatprep.mubr.f32.mxu1 %v7863_v52  ;;  %6170 = vmatpush3.bf16.msra.mxu1 %v6167_v17  ;;  %v1627_v17 = vrot.slane %v7564_v3, 2 }
 0x20f   : > { %6172 = vmatprep.subr.bf16.mxu1 %v6171_v59 }
 0x210   : > { %5309 = vmatmul.mubr.f32.gmra.mrb[46].mxu0 %v7857_v33  ;;  %v7892_v18 = vsel %vm1575_vm2, %v1626_v32, %v1627_v17  ;;  %v7899_v28 = vsel %vm1575_vm2, %v1627_v17, %v1629_v34  ;;  %v1639_v32 = vrot.slane %v8553_v49, 2  ;;  %v7918_v17 = vsel %vm1575_vm2, %v1636_v57, %v1637_v54 }
 0x211   : > { %5311 = vmatprep.mubr.f32.mxu0 %v7863_v52  ;;  %5549 = vmatmul.mubr.f32.gmra.mrb[14].mxu1 %v7872_v16  ;;  %8554 = vst [vmem:[#allocation48_spill] sm:$0xff] %v7918_v17  ;;  %v1642_v34 = vrot.slane %v8527_v23, 2  ;;  %v1646_v57 = vrot.slane %v8528_v53, 2  ;;  %v1647_v49 = vrot.slane %v8534_v29, 2 }
 0x212   : > { %5551 = vmatprep.mubr.f32.mxu1 %v7878_v6  ;;  %6174 = vmatpush3.bf16.msra.mxu1 %v6171_v59  ;;  %v1632_v59 = vrot.slane %v7585_v58, 2 }
 0x213   : > { %6176 = vmatprep.subr.bf16.mxu1 %v7868_v14 }
 0x214   : > { %5312 = vmatmul.mubr.f32.gmra.mrb[48].mxu0 %v7872_v16  ;;  %v7905_v24 = vsel %vm1575_vm2, %v1631_v4, %v1632_v59  ;;  %v7912_v56 = vsel %vm1575_vm2, %v1632_v59, %v1634_v51  ;;  %v7925_v4 = vsel %vm1575_vm2, %v1637_v54, %v1639_v32  ;;  %v8556_v59 = vld [vmem:[#allocation38_spill] sm:$0xff]  ;;  %v7931_v51 = vsel %vm1575_vm2, %v1641_v2, %v1642_v34 }
 0x215   : > { %5314 = vmatprep.mubr.f32.mxu0 %v7878_v6  ;;  %5552 = vmatmul.mubr.f32.gmra.mrb[16].mxu1 %v7886_v36  ;;  %8551 = vst [vmem:[#allocation53_spill] sm:$0xff] %v7905_v24  ;;  %8552 = vst [vmem:[#allocation44_spill] sm:$0xff] %v7912_v56  ;;  %v1644_v35 = vrot.slane %v8556_v59, 2  ;;  %v8559_v32 = vld [vmem:[#allocation42_spill] sm:$0xff]  ;;  %v7944_v2 = vsel %vm1575_vm2, %v1646_v57, %v1647_v49 }
 0x216   : > { %5554 = vmatprep.mubr.f32.mxu1 %v7892_v18  ;;  %8555 = vst [vmem:[#allocation18_spill] sm:$0xff] %v7925_v4  ;;  %8557 = vst [vmem:[#allocation49_spill] sm:$0xff] %v7931_v51  ;;  %v1649_v59 = vrot.slane %v8559_v32, 2 }
 0x217   : > { %v7938_v54 = vsel %vm1575_vm2, %v1642_v34, %v1644_v35  ;;  %8560 = vst [vmem:[#allocation20_spill] sm:$0xff] %v7944_v2  ;;  %v8562_v35 = vld [vmem:[#allocation47_spill] sm:$0xff] }
 0x218   : > { %5315 = vmatmul.mubr.f32.gmra.mrb[50].mxu0 %v7886_v36  ;;  %8558 = vst [vmem:[#allocation19_spill] sm:$0xff] %v7938_v54  ;;  %v7951_v34 = vsel %vm1575_vm2, %v1647_v49, %v1649_v59  ;;  %v1654_v32 = vrot.slane %v8562_v35, 2  ;;  %v2523_v59 = vrot.slane %v7752_v11, 2 }
 0x219   : > { %5317 = vmatprep.mubr.f32.mxu0 %v7892_v18  ;;  %5555 = vmatmul.mubr.f32.gmra.mrb[18].mxu1 %v7899_v28  ;;  %8561 = vst [vmem:[#allocation21_spill] sm:$0xff] %v7951_v34 }
 0x21a   : > { %5557 = vmatprep.mubr.f32.mxu1 %v7905_v24 }
 0x21c   : > { %5318 = vmatmul.mubr.f32.gmra.mrb[52].mxu0 %v7899_v28 }
 0x21d   : > { %5320 = vmatprep.mubr.f32.mxu0 %v7905_v24  ;;  %5558 = vmatmul.mubr.f32.gmra.mrb[20].mxu1 %v7912_v56  ;;  %v6719_v24 = vld [vmem:[#allocation2 + $0x90] sm:$0xff] }
 0x21e   : > { %5560 = vmatprep.mubr.f32.mxu1 %v7918_v17 }
 0x220   : > { %5321 = vmatmul.mubr.f32.gmra.mrb[54].mxu0 %v7912_v56  ;;  %v6715_v56 = vld [vmem:[#allocation2 + $0x60] sm:$0xff] }
 0x221   : > { %5323 = vmatprep.mubr.f32.mxu0 %v7918_v17  ;;  %5561 = vmatmul.mubr.f32.gmra.mrb[22].mxu1 %v7925_v4  ;;  %v1652_v17 = vrot.slane %v8539_v38, 2 }
 0x222   : > { %5563 = vmatprep.mubr.f32.mxu1 %v7931_v51 }
 0x223   : > { %v7957_v57 = vsel %vm1575_vm2, %v1651_v47, %v1652_v17  ;;  %v7964_v49 = vsel %vm1575_vm2, %v1652_v17, %v1654_v32  ;;  %v6711_v17 = vld [vmem:[#allocation2 + $0x30] sm:$0xff]  ;;  %v3090_v32 = vld [vmem:[#allocation8 + $0x3a0] sm:$0xff] }
 0x224   : > { %5324 = vmatmul.mubr.f32.gmra.mrb[56].mxu0 %v7925_v4  ;;  %8563 = vst [vmem:[#allocation22_spill] sm:$0xff] %v7957_v57  ;;  %v2521_v4 = vrot.slane %v8531_v42, 2  ;;  %8564 = vst [vmem:[#allocation23_spill] sm:$0xff] %v7964_v49 }
 0x225   : > { %5326 = vmatprep.mubr.f32.mxu0 %v7931_v51  ;;  %5564 = vmatmul.mubr.f32.gmra.mrb[24].mxu1 %v7938_v54  ;;  %v2520_v51 = vrot.slane %v8530_v60, 2 }
 0x226   : > { %5566 = vmatprep.mubr.f32.mxu1 %v7944_v2  ;;  %v7975_v35 = vsel %vm1575_vm2, %v2521_v4, %v2523_v59  ;;  %v6714_v59 = vld [vmem:[#allocation2 + $0x50] sm:$0xff] }
 0x227   : > { %v7970_v47 = vsel %vm1575_vm2, %v2520_v51, %v2521_v4  ;;  %8566 = vst [vmem:[#allocation25_spill] sm:$0xff] %v7975_v35  ;;  %v6713_v51 = vld [vmem:[#allocation2 + $0x48] sm:$0xff]  ;;  %v3093_v4 = vld [vmem:[#allocation8 + $0x3b8] sm:$0xff] }
 0x228   : > { %5327 = vmatmul.mubr.f32.gmra.mrb[58].mxu0 %v7938_v54  ;;  %8565 = vst [vmem:[#allocation24_spill] sm:$0xff] %v7970_v47  ;;  %v6712_v54 = vld [vmem:[#allocation2 + $0x38] sm:$0xff] }
 0x229   : > { %5329 = vmatprep.mubr.f32.mxu0 %v7944_v2  ;;  %5567 = vmatmul.mubr.f32.gmra.mrb[26].mxu1 %v7951_v34  ;;  %v3089_v2 = vld [vmem:[#allocation8 + $0x398] sm:$0xff] }
 0x22a   : > { %5569 = vmatprep.mubr.f32.mxu1 %v7957_v57 }
 0x22c   : > { %5330 = vmatmul.mubr.f32.gmra.mrb[60].mxu0 %v7951_v34  ;;  %v3088_v34 = vld [vmem:[#allocation8 + $0x390] sm:$0xff] }
 0x22d   : > { %5332 = vmatprep.mubr.f32.mxu0 %v7957_v57  ;;  %5570 = vmatmul.mubr.f32.gmra.mrb[28].mxu1 %v7964_v49  ;;  %v6179_v11 = vpack.c.bf16 %v3089_v2, %v3088_v34  ;;  %v3091_v57 = vld [vmem:[#allocation8 + $0x3a8] sm:$0xff]  ;;  %v3094_v2 = vld [vmem:[#allocation8 + $0x3c0] sm:$0xff] }
 0x22e   : > { %5572 = vmatprep.mubr.f32.mxu1 %v7970_v47  ;;  %v6183_v47 = vpack.c.bf16 %v3091_v57, %v3090_v32  ;;  %v3095_v34 = vld [vmem:[#allocation8 + $0x3c8] sm:$0xff]  ;;  %v3097_v57 = vld [vmem:[#allocation8 + $0x3d8] sm:$0xff]  ;;  %v6718_v32 = vld [vmem:[#allocation2 + $0x80] sm:$0xff] }
 0x230   : > { %5333 = vmatmul.mubr.f32.gmra.mrb[62].mxu0 %v7964_v49  ;;  %v3092_v49 = vld [vmem:[#allocation8 + $0x3b0] sm:$0xff] }
 0x231   : > { %5573 = vmatmul.mubr.f32.gmra.mrb[30].mxu1 %v7975_v35  ;;  %v6716_v35 = vld [vmem:[#allocation2 + $0x68] sm:$0xff] }
 0x232   : > { %5607 = vmatprep.mubr.f32.mxu1 %v6711_v17  ;;  %v6187_v17 = vpack.c.bf16 %v3093_v4, %v3092_v49  ;;  %v3099_v49 = vld [vmem:[#allocation8 + $0x3e8] sm:$0xff]  ;;  %v6720_v4 = vld [vmem:[#allocation2 + $0x98] sm:$0xff] }
 0x235   : > { %5608 = vmatmul.mubr.f32.vlgmr.msra.gmra.mrb[0].mxu1 %v6712_v54  ;;  %v6717_v54 = vld [vmem:[#allocation2 + $0x78] sm:$0xff] }
 0x236   : > { %6178 = vmatpush3.bf16.msra.mxu1 %v7868_v14  ;;  %5610 = vmatprep.mubr.f32.mxu1 %v6713_v51  ;;  %v6191_v14 = vpack.c.bf16 %v3095_v34, %v3094_v2  ;;  %v3096_v51 = vld [vmem:[#allocation8 + $0x3d0] sm:$0xff]  ;;  %v3101_v2 = vld [vmem:[#allocation8 + $0x3f8] sm:$0xff] }
 0x237   : > { %6180 = vmatprep.subr.bf16.mxu1 %v6179_v11  ;;  %v6722_v34 = vld [vmem:[#allocation2 + $0xb0] sm:$0xff] }
 0x239   : > { %5611 = vmatmul.mubr.f32.gmra.mrb[2].mxu1 %v6714_v59  ;;  %v6721_v59 = vld [vmem:[#allocation2 + $0xa8] sm:$0xff] }
 0x23a   : > { %5613 = vmatprep.mubr.f32.mxu1 %v6715_v56  ;;  %6182 = vmatpush3.bf16.msra.mxu1 %v6179_v11  ;;  %v6195_v56 = vpack.c.bf16 %v3097_v57, %v3096_v51  ;;  %v3098_v11 = vld [vmem:[#allocation8 + $0x3e0] sm:$0xff]  ;;  %v3368_v51 = vld [vmem:[#allocation8 + $0x408] sm:$0xff] }
 0x23b   : > { %6184 = vmatprep.subr.bf16.mxu1 %v6183_v47  ;;  %v6724_v57 = vld [vmem:[#allocation2 + $0xc8] sm:$0xff] }
 0x23d   : > { %5614 = vmatmul.mubr.f32.gmra.mrb[4].mxu1 %v6716_v35  ;;  %v3100_v35 = vld [vmem:[#allocation8 + $0x3f0] sm:$0xff] }
 0x23e   : > { %5616 = vmatprep.mubr.f32.mxu1 %v6717_v54  ;;  %6186 = vmatpush3.bf16.msra.mxu1 %v6183_v47  ;;  %v6199_v47 = vpack.c.bf16 %v3099_v49, %v3098_v11  ;;  %v6723_v54 = vld [vmem:[#allocation2 + $0xc0] sm:$0xff]  ;;  %v3381_v49 = vld [vmem:[#allocation8 + $0x470] sm:$0xff] }
 0x23f   : > { %6188 = vmatprep.subr.bf16.mxu1 %v6187_v17  ;;  %v3715_v11 = vld [vmem:[#allocation9 + $0x20] sm:$0xff] }
 0x241   : > { %5617 = vmatmul.mubr.f32.gmra.mrb[6].mxu1 %v6718_v32  ;;  %v6725_v32 = vld [vmem:[#allocation2 + $0xe0] sm:$0xff] }
 0x242   : > { %5619 = vmatprep.mubr.f32.mxu1 %v6719_v24  ;;  %6190 = vmatpush3.bf16.msra.mxu1 %v6187_v17  ;;  %v6203_v24 = vpack.c.bf16 %v3101_v2, %v3100_v35  ;;  %v3367_v17 = vld [vmem:[#allocation8 + $0x400] sm:$0xff]  ;;  %v8567_v2 = vld [vmem:[#allocation27_spill] sm:$0xff] }
 0x243   : > { %6192 = vmatprep.subr.bf16.mxu1 %v6191_v14 }
 0x245   : > { %5620 = vmatmul.mubr.f32.gmra.mrb[8].mxu1 %v6720_v4  ;;  %v3382_v4 = vld [vmem:[#allocation8 + $0x478] sm:$0xff] }
 0x246   : > { %5622 = vmatprep.mubr.f32.mxu1 %v6721_v59  ;;  %6194 = vmatpush3.bf16.msra.mxu1 %v6191_v14  ;;  %v6207_v14 = vpack.c.bf16 %v3368_v51, %v3367_v17  ;;  %v3721_v17 = vld [vmem:[#allocation9 + $0x50] sm:$0xff]  ;;  %v3722_v51 = vld [vmem:[#allocation9 + $0x58] sm:$0xff] }
 0x247   : > { %6196 = vmatprep.subr.bf16.mxu1 %v6195_v56 }
 0x249   : > { %5623 = vmatmul.mubr.f32.gmra.mrb[10].mxu1 %v6722_v34  ;;  %v3719_v34 = vld [vmem:[#allocation9 + $0x40] sm:$0xff] }
 0x24a   : > { %5625 = vmatprep.mubr.f32.mxu1 %v6723_v54  ;;  %6198 = vmatpush3.bf16.msra.mxu1 %v6195_v56  ;;  %v3720_v54 = vld [vmem:[#allocation9 + $0x48] sm:$0xff] }
 0x24b   : > { %6200 = vmatprep.subr.bf16.mxu1 %v6199_v47 }
 0x24d   : > { %5626 = vmatmul.mubr.f32.gmra.mrb[12].mxu1 %v6724_v57  ;;  %v6259_v57 = vpack.c.bf16 %v3722_v51, %v3721_v17 }
 0x24e   : > { %5628 = vmatprep.mubr.f32.mxu1 %v7540_v25  ;;  %6202 = vmatpush3.bf16.msra.mxu1 %v6199_v47  ;;  %v3370_v25 = vld [vmem:[#allocation8 + $0x418] sm:$0xff] }
 0x24f   : > { %6204 = vmatprep.subr.bf16.mxu1 %v6203_v24  ;;  %v3718_v47 = vld [vmem:[#allocation9 + $0x38] sm:$0xff] }
 0x251   : > { %5629 = vmatmul.mubr.f32.gmra.mrb[14].mxu1 %v6725_v32  ;;  %v3723_v32 = vld [vmem:[#allocation9 + $0x60] sm:$0xff] }
 0x252   : > { %5631 = vmatprep.mubr.f32.mxu1 %v7562_v63  ;;  %6206 = vmatpush3.bf16.msra.mxu1 %v6203_v24  ;;  %v3372_v63 = vld [vmem:[#allocation8 + $0x428] sm:$0xff]  ;;  %v8569_v24 = vld [vmem:[#allocation30_spill] sm:$0xff] }
 0x253   : > { %6208 = vmatprep.subr.bf16.mxu1 %v6207_v14 }
 0x255   : > { %5632 = vmatmul.mubr.f32.gmra.mrb[16].mxu1 %v7564_v3 }
 0x256   : > { %5634 = vmatprep.mubr.f32.mxu1 %v7583_v61  ;;  %v3371_v61 = vld [vmem:[#allocation8 + $0x420] sm:$0xff] }
 0x257   : > { %v6215_v3 = vpack.c.bf16 %v3372_v63, %v3371_v61  ;;  %v8573_v61 = vld [vmem:[#allocation36_spill] sm:$0xff]  ;;  %v8574_v63 = vld [vmem:[#allocation37_spill] sm:$0xff] }
 0x259   : > { %5635 = vmatmul.mubr.f32.gmra.mrb[18].mxu1 %v7585_v58  ;;  %v3374_v58 = vld [vmem:[#allocation8 + $0x438] sm:$0xff] }
 0x25a   : > { %5637 = vmatprep.mubr.f32.mxu1 %v7604_v48  ;;  %v3369_v48 = vld [vmem:[#allocation8 + $0x410] sm:$0xff] }
 0x25d   : > { %5638 = vmatmul.mubr.f32.gmra.mrb[20].mxu1 %v7606_v62 }
 0x25e   : > { %5640 = vmatprep.mubr.f32.mxu1 %v7625_v31  ;;  %v6211_v31 = vpack.c.bf16 %v3370_v25, %v3369_v48  ;;  %v3724_v48 = vld [vmem:[#allocation9 + $0x68] sm:$0xff]  ;;  %v8572_v25 = vld [vmem:[#allocation34_spill] sm:$0xff] }
 0x261   : > { %5641 = vmatmul.mubr.f32.gmra.mrb[22].mxu1 %v8527_v23  ;;  %v3378_v23 = vld [vmem:[#allocation8 + $0x458] sm:$0xff] }
 0x262   : > { %5643 = vmatprep.mubr.f32.mxu1 %v8528_v53  ;;  %v3380_v53 = vld [vmem:[#allocation8 + $0x468] sm:$0xff] }
 0x265   : > { %5644 = vmatmul.mubr.f32.gmra.mrb[24].mxu1 %v8534_v29  ;;  %v3713_v29 = vld [vmem:[#allocation9 + $0x10] sm:$0xff] }
 0x266   : > { %5646 = vmatprep.mubr.f32.mxu1 %v8535_v30  ;;  %v3376_v30 = vld [vmem:[#allocation8 + $0x448] sm:$0xff] }
 0x269   : > { %5647 = vmatmul.mubr.f32.gmra.mrb[26].mxu1 %v8539_v38  ;;  %v3373_v38 = vld [vmem:[#allocation8 + $0x430] sm:$0xff] }
 0x26a   : > { %5649 = vmatprep.mubr.f32.mxu1 %v8530_v60  ;;  %v6219_v62 = vpack.c.bf16 %v3374_v58, %v3373_v38  ;;  %v3711_v60 = vld [vmem:[#allocation9] sm:$0xff]  ;;  %v8576_v38 = vld [vmem:[#allocation41_spill] sm:$0xff] }
 0x26b   : > { %v8577_v58 = vld [vmem:[#allocation45_spill] sm:$0xff] }
 0x26d   : > { %5650 = vmatmul.mubr.f32.gmra.mrb[28].mxu1 %v8531_v42  ;;  %v3712_v42 = vld [vmem:[#allocation9 + $0x8] sm:$0xff] }
 0x26e   : > { %5652 = vmatprep.mubr.f32.mxu1 %v7755_v19 }
 0x271   : > { %5653 = vmatmul.mubr.f32.gmra.mrb[30].mxu1 %v7755_v19 }
 0x272   : > { %5687 = vmatprep.mubr.f32.mxu1 %v7403_v45  ;;  %v3375_v45 = vld [vmem:[#allocation8 + $0x440] sm:$0xff] }
 0x275   : > { %5688 = vmatmul.mubr.f32.vlgmr.msra.gmra.mrb[0].mxu1 %v7406_v46  ;;  %v6223_v46 = vpack.c.bf16 %v3376_v30, %v3375_v45  ;;  %v8579_v45 = vld [vmem:[#allocation50_spill] sm:$0xff]  ;;  %v3078_v30 = vrot.slane %v7755_v19, 1 }
 0x276   : > { %6210 = vmatpush3.bf16.msra.mxu1 %v6207_v14  ;;  %5690 = vmatprep.mubr.f32.mxu1 %v7424_v0  ;;  %v3377_v0 = vld [vmem:[#allocation8 + $0x450] sm:$0xff]  ;;  %v8571_v14 = vld [vmem:[#allocation33_spill] sm:$0xff] }
 0x277   : > { %6212 = vmatprep.subr.bf16.mxu1 %v6211_v31 }
 0x279   : > { %5691 = vmatmul.mubr.f32.gmra.mrb[2].mxu1 %v7427_v1  ;;  %v6227_v1 = vpack.c.bf16 %v3378_v23, %v3377_v0  ;;  %v8580_v0 = vld [vmem:[#allocation51_spill] sm:$0xff] }
 0x27a   : > { %5693 = vmatprep.mubr.f32.mxu1 %v7445_v21  ;;  %6214 = vmatpush3.bf16.msra.mxu1 %v6211_v31  ;;  %v3379_v21 = vld [vmem:[#allocation8 + $0x460] sm:$0xff]  ;;  %v6263_v31 = vpack.c.bf16 %v3724_v48, %v3723_v32  ;;  %v8581_v23 = vld [vmem:[#allocation43_spill] sm:$0xff]  ;;  %v3725_v48 = vld [vmem:[#allocation9 + $0x70] sm:$0xff] }
 0x27b   : > { %6216 = vmatprep.subr.bf16.mxu1 %v6215_v3 }
 0x27d   : > { %5694 = vmatmul.mubr.f32.gmra.mrb[4].mxu1 %v7448_v22  ;;  %v6239_v22 = vpack.c.bf16 %v3712_v42, %v3711_v60  ;;  %v8588_v60 = vld [vmem:[#allocation19_spill] sm:$0xff]  ;;  %v8589_v42 = vld [vmem:[#allocation20_spill] sm:$0xff] }
 0x27e   : > { %5696 = vmatprep.mubr.f32.mxu1 %v7466_v43  ;;  %6218 = vmatpush3.bf16.msra.mxu1 %v6215_v3  ;;  %v3714_v43 = vld [vmem:[#allocation9 + $0x18] sm:$0xff]  ;;  %v8575_v3 = vld [vmem:[#allocation40_spill] sm:$0xff] }
 0x27f   : > { %6220 = vmatprep.subr.bf16.mxu1 %v6219_v62  ;;  %v6243_v56 = vpack.c.bf16 %v3714_v43, %v3713_v29  ;;  %6240 = vmatprep.subr.bf16.mxu0 %v6239_v22  ;;  %v8590_v43 = vld [vmem:[#allocation21_spill] sm:$0xff] }
 0x280   : > { %6242 = vmatpush3.bf16.msra.mxu0 %v6239_v22 }
 0x281   : > { %5697 = vmatmul.mubr.f32.gmra.mrb[6].mxu1 %v7469_v44  ;;  %v3716_v44 = vld [vmem:[#allocation9 + $0x28] sm:$0xff]  ;;  %6244 = vmatprep.subr.bf16.mxu0 %v6243_v56 }
 0x282   : > { %5699 = vmatprep.mubr.f32.mxu1 %v7487_v9  ;;  %6222 = vmatpush3.bf16.msra.mxu1 %v6219_v62  ;;  %v6231_v9 = vpack.c.bf16 %v3380_v53, %v3379_v21  ;;  %v6247_v59 = vpack.c.bf16 %v3716_v44, %v3715_v11  ;;  %v8578_v62 = vld [vmem:[#allocation46_spill] sm:$0xff]  ;;  %v8582_v21 = vld [vmem:[#allocation52_spill] sm:$0xff] }
 0x283   : > { %6224 = vmatprep.subr.bf16.mxu1 %v6223_v46 }
 0x284   : > { %6246 = vmatpush3.bf16.msra.mxu0 %v6243_v56  ;;  %v8591_v56 = vld [vmem:[#allocation22_spill] sm:$0xff] }
 0x285   : > { %5700 = vmatmul.mubr.f32.gmra.mrb[8].mxu1 %v7490_v10  ;;  %v3717_v10 = vld [vmem:[#allocation9 + $0x30] sm:$0xff]  ;;  %6248 = vmatprep.subr.bf16.mxu0 %v6247_v59 }
 0x286   : > { %5702 = vmatprep.mubr.f32.mxu1 %v7508_v39  ;;  %6226 = vmatpush3.bf16.msra.mxu1 %v6223_v46  ;;  %v6235_v39 = vpack.c.bf16 %v3382_v4, %v3381_v49  ;;  %v6251_v35 = vpack.c.bf16 %v3718_v47, %v3717_v10  ;;  %v930_v46 = vld [vmem:[#allocation2 + $0x1a8] sm:$0x3]  ;;  %v8593_v49 = vld [vmem:[#allocation24_spill] sm:$0xff]  ;;  %v8594_v47 = vld [vmem:[#allocation25_spill] sm:$0xff] }
 0x287   : > { %6228 = vmatprep.subr.bf16.mxu1 %v6227_v1  ;;  %v3362_v4 = vrot.slane %v930_v46, 2 }
 0x288   : > { %6250 = vmatpush3.bf16.msra.mxu0 %v6247_v59 }
 0x289   : > { %5703 = vmatmul.mubr.f32.gmra.mrb[10].mxu1 %v7511_v40  ;;  %v8568_v40 = vld [vmem:[#allocation28_spill] sm:$0xff]  ;;  %6252 = vmatprep.subr.bf16.mxu0 %v6251_v35 }
 0x28a   : > { %5705 = vmatprep.mubr.f32.mxu1 %v7531_v8  ;;  %6230 = vmatpush3.bf16.msra.mxu1 %v6227_v1  ;;  %v6255_v8 = vpack.c.bf16 %v3720_v54, %v3719_v34  ;;  %v3081_v1 = vrot.slane %v930_v46, 1 }
 0x28b   : > { %6232 = vmatprep.subr.bf16.mxu1 %v6231_v9 }
 0x28c   : > { %6254 = vmatpush3.bf16.msra.mxu0 %v6251_v35  ;;  %v3082_v53 = vsel %vm995_vm1, %v3078_v30, %v3081_v1 }
 0x28d   : > { %5706 = vmatmul.mubr.f32.gmra.mrb[12].mxu1 %v7534_v12  ;;  %v8570_v12 = vld [vmem:[#allocation31_spill] sm:$0xff]  ;;  %6256 = vmatprep.subr.bf16.mxu0 %v6255_v8 }
 0x28e   : > { %5708 = vmatprep.mubr.f32.mxu1 %v8567_v2  ;;  %6234 = vmatpush3.bf16.msra.mxu1 %v6231_v9  ;;  %v8592_v9 = vld [vmem:[#allocation23_spill] sm:$0xff] }
 0x28f   : > { %6236 = vmatprep.subr.bf16.mxu1 %v6235_v39 }
 0x290   : > { %6258 = vmatpush3.bf16.msra.mxu0 %v6255_v8 }
 0x291   : > { %5709 = vmatmul.mubr.f32.gmra.mrb[14].mxu1 %v8568_v40  ;;  %6260 = vmatprep.subr.bf16.mxu0 %v6259_v57 }
 0x292   : > { %5711 = vmatprep.mubr.f32.mxu1 %v8569_v24  ;;  %6238 = vmatpush3.bf16.msra.mxu1 %v6235_v39  ;;  %v8595_v39 = vld [vmem:[#allocation39_spill] sm:$0xff] }
 0x293   : > { %v3363_v35 = vsel %vm1575_vm2, %v8595_v39, %v3362_v4 }
 0x294   : > { %6262 = vmatpush3.bf16.msra.mxu0 %v6259_v57 }
 0x295   : > { %5712 = vmatmul.mubr.f32.gmra.mrb[16].mxu1 %v8570_v12  ;;  %6264 = vmatprep.subr.bf16.mxu0 %v6263_v31 }
 0x296   : > { %5714 = vmatprep.mubr.f32.mxu1 %v8571_v14 }
 0x298   : > { %6266 = vmatpush3.bf16.msra.mxu0 %v6263_v31 }
 0x299   : > { %5715 = vmatmul.mubr.f32.gmra.mrb[18].mxu1 %v8572_v25  ;;  %v3726_v25 = vld [vmem:[#allocation9 + $0x78] sm:$0xff] }
 0x29a   : > { %5717 = vmatprep.mubr.f32.mxu1 %v8573_v61  ;;  %v6267_v31 = vpack.c.bf16 %v3726_v25, %v3725_v48  ;;  %v3959_v61 = vld [vmem:[%s8396_s7] sm:$0xff] }
 0x29c   : > { %6268 = vmatprep.subr.bf16.mxu0 %v6267_v31 }
 0x29d   : > { %5718 = vmatmul.mubr.f32.gmra.mrb[20].mxu1 %v8574_v63  ;;  %6270 = vmatpush3.bf16.msra.mxu0 %v6267_v31  ;;  %v3960_v63 = vld [vmem:[%s8396_s7 + $0x8] sm:$0xff] }
 0x29e   : > { %5720 = vmatprep.mubr.f32.mxu1 %v8575_v3  ;;  %v6271_v3 = vpack.c.bf16 %v3960_v63, %v3959_v61 }
 0x2a0   : > { %6272 = vmatprep.subr.bf16.mxu0 %v6271_v3 }
 0x2a1   : > { %5721 = vmatmul.mubr.f32.gmra.mrb[22].mxu1 %v8576_v38 }
 0x2a2   : > { %5723 = vmatprep.mubr.f32.mxu1 %v8577_v58  ;;  %v8134_v58 = vld [vmem:[%s8393_s4] ss:$0 sm:$0xff] }
 0x2a5   : > { %5724 = vmatmul.mubr.f32.gmra.mrb[24].mxu1 %v8578_v62 }
 0x2a6   : > { %5726 = vmatprep.mubr.f32.mxu1 %v8579_v45 }
 0x2a9   : > { %5727 = vmatmul.mubr.f32.gmra.mrb[26].mxu1 %v8580_v0 }
 0x2aa   : > { %5729 = vmatprep.mubr.f32.mxu1 %v8581_v23 }
 0x2ad   : > { %5730 = vmatmul.mubr.f32.gmra.mrb[28].mxu1 %v8582_v21 }
 0x2ae   : > { %5732 = vmatprep.mubr.f32.mxu1 %v3078_v30 }
 0x2b1   : > { %5733 = vmatmul.mubr.f32.gmra.mrb[30].mxu1 %v3082_v53 }
 0x2b2   : > { %5767 = vmatprep.mubr.f32.mxu1 %v7785_v13 }
 0x2b5   : > { %5768 = vmatmul.mubr.f32.vlgmr.msra.gmra.mrb[0].mxu1 %v7792_v41 }
 0x2b6   : > { %5770 = vmatprep.mubr.f32.mxu1 %v7798_v50 }
 0x2b9   : > { %5771 = vmatmul.mubr.f32.gmra.mrb[2].mxu1 %v7805_v37 }
 0x2ba   : > { %5773 = vmatprep.mubr.f32.mxu1 %v7811_v5 }
 0x2bd   : > { %5774 = vmatmul.mubr.f32.gmra.mrb[4].mxu1 %v7818_v26 }
 0x2be   : > { %5776 = vmatprep.mubr.f32.mxu1 %v7824_v27 }
 0x2c1   : > { %5777 = vmatmul.mubr.f32.gmra.mrb[6].mxu1 %v7831_v7  ;;  %v8583_v7 = vld [vmem:[#allocation53_spill] sm:$0xff] }
 0x2c2   : > { %5779 = vmatprep.mubr.f32.mxu1 %v7837_v55 }
 0x2c5   : > { %5780 = vmatmul.mubr.f32.gmra.mrb[8].mxu1 %v7844_v20 }
 0x2c6   : > { %5782 = vmatprep.mubr.f32.mxu1 %v7850_v15  ;;  %v8584_v15 = vld [vmem:[#allocation44_spill] sm:$0xff] }
 0x2c7   : > { %v8039_v19 = vpop.f32.mrb[32].mxu0 }
 0x2c8   : > { %v8041_v13 = vpop.f32.mrb[33].mxu0 }
 0x2c9   : > { %5783 = vmatmul.mubr.f32.gmra.mrb[10].mxu1 %v7857_v33  ;;  %v8585_v33 = vld [vmem:[#allocation48_spill] sm:$0xff] }
 0x2ca   : > { %5785 = vmatprep.mubr.f32.mxu1 %v7863_v52 }
 0x2cb   : > { %v8045_v41 = vpop.f32.mrb[34].mxu0 }
 0x2cc   : > { %v8047_v50 = vpop.f32.mrb[35].mxu0 }
 0x2cd   : > { %5786 = vmatmul.mubr.f32.gmra.mrb[12].mxu1 %v7872_v16 }
 0x2ce   : > { %5788 = vmatprep.mubr.f32.mxu1 %v7878_v6  ;;  %v8586_v6 = vld [vmem:[#allocation18_spill] sm:$0xff] }
 0x2cf   : > { %v8051_v37 = vpop.f32.mrb[36].mxu0 }
 0x2d0   : > { %v8053_v5 = vpop.f32.mrb[37].mxu0 }
 0x2d1   : > { %5789 = vmatmul.mubr.f32.gmra.mrb[14].mxu1 %v7886_v36  ;;  %v8587_v36 = vld [vmem:[#allocation49_spill] sm:$0xff] }
 0x2d2   : > { %5791 = vmatprep.mubr.f32.mxu1 %v7892_v18 }
 0x2d3   : > { %v8057_v26 = vpop.f32.mrb[38].mxu0 }
 0x2d4   : > { %v8059_v27 = vpop.f32.mrb[39].mxu0 }
 0x2d5   : > { %5792 = vmatmul.mubr.f32.gmra.mrb[16].mxu1 %v7899_v28 }
 0x2d6   : > { %5794 = vmatprep.mubr.f32.mxu1 %v8583_v7 }
 0x2d7   : > { %v8063_v55 = vpop.f32.mrb[40].mxu0 }
 0x2d8   : > { %v8065_v20 = vpop.f32.mrb[41].mxu0 }
 0x2d9   : > { %5795 = vmatmul.mubr.f32.gmra.mrb[18].mxu1 %v8584_v15 }
 0x2da   : > { %5797 = vmatprep.mubr.f32.mxu1 %v8585_v33 }
 0x2db   : > { %v8069_v52 = vpop.f32.mrb[42].mxu0 }
 0x2dc   : > { %v8071_v16 = vpop.f32.mrb[43].mxu0 }
 0x2dd   : > { %5798 = vmatmul.mubr.f32.gmra.mrb[20].mxu1 %v8586_v6 }
 0x2de   : > { %5800 = vmatprep.mubr.f32.mxu1 %v8587_v36 }
 0x2df   : > { %v8075_v18 = vpop.f32.mrb[44].mxu0 }
 0x2e0   : > { %v8077_v28 = vpop.f32.mrb[45].mxu0 }
 0x2e1   : > { %5801 = vmatmul.mubr.f32.gmra.mrb[22].mxu1 %v8588_v60 }
 0x2e2   : > { %5803 = vmatprep.mubr.f32.mxu1 %v8589_v42 }
 0x2e3   : > { %v8081_v29 = vpop.f32.mrb[46].mxu0 }
 0x2e4   : > { %v8083_v22 = vpop.f32.mrb[47].mxu0 }
 0x2e5   : > { %5804 = vmatmul.mubr.f32.gmra.mrb[24].mxu1 %v8590_v43 }
 0x2e6   : > { %5806 = vmatprep.mubr.f32.mxu1 %v8591_v56 }
 0x2e7   : > { %v8087_v11 = vpop.f32.mrb[48].mxu0 }
 0x2e8   : > { %v8089_v44 = vpop.f32.mrb[49].mxu0 }
 0x2e9   : > { %5807 = vmatmul.mubr.f32.gmra.mrb[26].mxu1 %v8592_v9 }
 0x2ea   : > { %5809 = vmatprep.mubr.f32.mxu1 %v8593_v49 }
 0x2eb   : > { %v8093_v59 = vpop.f32.mrb[50].mxu0 }
 0x2ec   : > { %v8095_v10 = vpop.f32.mrb[51].mxu0 }
 0x2ed   : > { %5810 = vmatmul.mubr.f32.gmra.mrb[28].mxu1 %v8594_v47 }
 0x2ee   : > { %5812 = vmatprep.mubr.f32.mxu1 %v8595_v39 }
 0x2ef   : > { %v8101_v2 = vpop.f32.mrb[52].mxu0 }
 0x2f0   : > { %v8103_v34 = vpop.f32.mrb[53].mxu0 }
 0x2f1   : > { %5813 = vmatmul.mubr.f32.gmra.mrb[30].mxu1 %v3363_v35 }
 0x2f3   : > { %v8105_v54 = vpop.f32.mrb[54].mxu0 }
 0x2f4   : > { %v8107_v40 = vpop.f32.mrb[55].mxu0 }
 0x2f7   : > { %v8109_v8 = vpop.f32.mrb[56].mxu0 }
 0x2f8   : > { %v8111_v24 = vpop.f32.mrb[57].mxu0 }
 0x2fb   : > { %v8113_v17 = vpop.f32.mrb[58].mxu0 }
 0x2fc   : > { %v8115_v51 = vpop.f32.mrb[59].mxu0 }
 0x2ff   : > { %v8117_v12 = vpop.f32.mrb[60].mxu0 }
 0x300   : > { %v8119_v57 = vpop.f32.mrb[61].mxu0 }
 0x303   : > { %v8121_v14 = vpop.f32.mrb[62].mxu0 }
 0x304   : > { %v8123_v32 = vpop.f32.mrb[63].mxu0 }
 0x388   : > { %v5769_v38 = vpop.f32.mrb[0].mxu1 }
 0x389   : > { %v6275_v62 = vadd.f32 %v5769_v38, %v8039_v19  ;;  %v3449_v45 = vpop.f32.mrb[1].mxu1 }
 0x38a   : > { %v6276_v30 = vadd.f32 %v3449_v45, %v8041_v13 }
 0x38b   : > { %v3648_v46 = vadd.f32 %v6275_v62, %v8134_v58 }
 0x38c   : > { %v3647_v0 = vadd.f32 %v6276_v30, %v8134_v58  ;;  %v5772_v23 = vpop.f32.mrb[2].mxu1 }
 0x38d   : > { %v6277_v1 = vadd.f32 %v5772_v23, %v8045_v41  ;;  %v3459_v21 = vpop.f32.mrb[3].mxu1  ;;  %v3680_v15 = vmax.f32 %v3648_v46, 0.0 }
 0x38e   : > { %v3679_v53 = vmax.f32 %v3647_v0, 0.0  ;;  %v6278_v7 = vadd.f32 %v3459_v21, %v8047_v50 }
 0x38f   : > { %v3650_v33 = vadd.f32 %v6277_v1, %v8134_v58 }
 0x390   : > { %v3649_v6 = vadd.f32 %v6278_v7, %v8134_v58  ;;  %v5775_v19 = vpop.f32.mrb[4].mxu1  ;;  %5847 = vmatprep.mubr.f32.mxu0 %v3679_v53 }
 0x391   : > { %v6279_v13 = vadd.f32 %v5775_v19, %v8051_v37  ;;  %v3469_v36 = vpop.f32.mrb[5].mxu1  ;;  %5848 = vmatmul.mubr.f32.vlgmr.msra.gmra.mrb[64].mxu0 %v3680_v15  ;;  %v3682_v41 = vmax.f32 %v3650_v33, 0.0 }
 0x392   : > { %v3681_v60 = vmax.f32 %v3649_v6, 0.0  ;;  %v6280_v42 = vadd.f32 %v3469_v36, %v8053_v5  ;;  %6274 = vmatpush3.bf16.msra.mxu0 %v6271_v3 }
 0x393   : > { %v3652_v43 = vadd.f32 %v6279_v13, %v8134_v58 }
 0x394   : > { %v3651_v50 = vadd.f32 %v6280_v42, %v8134_v58  ;;  %v5778_v56 = vpop.f32.mrb[6].mxu1  ;;  %5850 = vmatprep.mubr.f32.mxu0 %v3681_v60 }
 0x395   : > { %v6281_v9 = vadd.f32 %v5778_v56, %v8057_v26  ;;  %v3479_v49 = vpop.f32.mrb[7].mxu1  ;;  %5851 = vmatmul.mubr.f32.gmra.mrb[66].mxu0 %v3682_v41  ;;  %v3684_v47 = vmax.f32 %v3652_v43, 0.0 }
 0x396   : > { %v3683_v4 = vmax.f32 %v3651_v50, 0.0  ;;  %v6282_v37 = vadd.f32 %v3479_v49, %v8059_v27 }
 0x397   : > { %v3654_v39 = vadd.f32 %v6281_v9, %v8134_v58 }
 0x398   : > { %v3653_v5 = vadd.f32 %v6282_v37, %v8134_v58  ;;  %v5781_v35 = vpop.f32.mrb[8].mxu1  ;;  %5853 = vmatprep.mubr.f32.mxu0 %v3683_v4 }
 0x399   : > { %v6283_v48 = vadd.f32 %v5781_v35, %v8063_v55  ;;  %v3489_v25 = vpop.f32.mrb[9].mxu1  ;;  %5854 = vmatmul.mubr.f32.gmra.mrb[68].mxu0 %v3684_v47  ;;  %v3686_v26 = vmax.f32 %v3654_v39, 0.0 }
 0x39a   : > { %v3685_v31 = vmax.f32 %v3653_v5, 0.0  ;;  %v6284_v61 = vadd.f32 %v3489_v25, %v8065_v20 }
 0x39b   : > { %v3656_v63 = vadd.f32 %v6283_v48, %v8134_v58 }
 0x39c   : > { %v3655_v3 = vadd.f32 %v6284_v61, %v8134_v58  ;;  %v5784_v27 = vpop.f32.mrb[10].mxu1  ;;  %5856 = vmatprep.mubr.f32.mxu0 %v3685_v31 }
 0x39d   : > { %v6285_v38 = vadd.f32 %v5784_v27, %v8069_v52  ;;  %v3499_v62 = vpop.f32.mrb[11].mxu1  ;;  %5857 = vmatmul.mubr.f32.gmra.mrb[70].mxu0 %v3686_v26  ;;  %v3688_v55 = vmax.f32 %v3656_v63, 0.0 }
 0x39e   : > { %v3687_v45 = vmax.f32 %v3655_v3, 0.0  ;;  %v6286_v30 = vadd.f32 %v3499_v62, %v8071_v16 }
 0x39f   : > { %v3658_v46 = vadd.f32 %v6285_v38, %v8134_v58 }
 0x3a0   : > { %v3657_v0 = vadd.f32 %v6286_v30, %v8134_v58  ;;  %v5787_v20 = vpop.f32.mrb[12].mxu1  ;;  %5859 = vmatprep.mubr.f32.mxu0 %v3687_v45 }
 0x3a1   : > { %v6287_v23 = vadd.f32 %v5787_v20, %v8075_v18  ;;  %v3509_v1 = vpop.f32.mrb[13].mxu1  ;;  %5860 = vmatmul.mubr.f32.gmra.mrb[72].mxu0 %v3688_v55  ;;  %v3690_v52 = vmax.f32 %v3658_v46, 0.0 }
 0x3a2   : > { %v3689_v21 = vmax.f32 %v3657_v0, 0.0  ;;  %v6288_v53 = vadd.f32 %v3509_v1, %v8077_v28 }
 0x3a3   : > { %v3660_v7 = vadd.f32 %v6287_v23, %v8134_v58 }
 0x3a4   : > { %v3659_v15 = vadd.f32 %v6288_v53, %v8134_v58  ;;  %v5790_v16 = vpop.f32.mrb[14].mxu1  ;;  %5862 = vmatprep.mubr.f32.mxu0 %v3689_v21 }
 0x3a5   : > { %v6289_v33 = vadd.f32 %v5790_v16, %v8081_v29  ;;  %v3519_v6 = vpop.f32.mrb[15].mxu1  ;;  %5863 = vmatmul.mubr.f32.gmra.mrb[74].mxu0 %v3690_v52  ;;  %v3692_v18 = vmax.f32 %v3660_v7, 0.0 }
 0x3a6   : > { %v3691_v19 = vmax.f32 %v3659_v15, 0.0  ;;  %v6290_v13 = vadd.f32 %v3519_v6, %v8083_v22 }
 0x3a7   : > { %v3662_v36 = vadd.f32 %v6289_v33, %v8134_v58 }
 0x3a8   : > { %v3661_v60 = vadd.f32 %v6290_v13, %v8134_v58  ;;  %v5793_v28 = vpop.f32.mrb[16].mxu1  ;;  %5865 = vmatprep.mubr.f32.mxu0 %v3691_v19 }
 0x3a9   : > { %v6291_v42 = vadd.f32 %v5793_v28, %v8087_v11  ;;  %v3529_v41 = vpop.f32.mrb[17].mxu1  ;;  %5866 = vmatmul.mubr.f32.gmra.mrb[76].mxu0 %v3692_v18  ;;  %v3694_v29 = vmax.f32 %v3662_v36, 0.0 }
 0x3aa   : > { %v3693_v43 = vmax.f32 %v3661_v60, 0.0  ;;  %v6292_v50 = vadd.f32 %v3529_v41, %v8089_v44 }
 0x3ab   : > { %v3664_v56 = vadd.f32 %v6291_v42, %v8134_v58 }
 0x3ac   : > { %v3663_v9 = vadd.f32 %v6292_v50, %v8134_v58  ;;  %v5796_v22 = vpop.f32.mrb[18].mxu1  ;;  %5868 = vmatprep.mubr.f32.mxu0 %v3693_v43  ;;  %v6726_v50 = vld [vmem:[%s7219_s9] sm:$0xff] }
 0x3ad   : > { %v6293_v49 = vadd.f32 %v5796_v22, %v8093_v59  ;;  %v3539_v4 = vpop.f32.mrb[19].mxu1  ;;  %5869 = vmatmul.mubr.f32.gmra.mrb[78].mxu0 %v3694_v29  ;;  %v3696_v11 = vmax.f32 %v3664_v56, 0.0  ;;  %v6728_v29 = vld [vmem:[%s7219_s9 + $0x10] sm:$0xff]  ;;  %v6730_v56 = vld [vmem:[%s7219_s9 + $0x20] sm:$0xff] }
 0x3ae   : > { %v3695_v37 = vmax.f32 %v3663_v9, 0.0  ;;  %v6294_v47 = vadd.f32 %v3539_v4, %v8095_v10  ;;  %v6731_v9 = vld [vmem:[%s7219_s9 + $0x28] sm:$0xff]  ;;  %v6732_v22 = vld [vmem:[%s7219_s9 + $0x30] sm:$0xff]  ;;  %v6734_v4 = vld [vmem:[%s7219_s9 + $0x40] sm:$0xff] }
 0x3af   : > { %v3666_v39 = vadd.f32 %v6293_v49, %v8134_v58  ;;  %v6733_v49 = vld [vmem:[%s7219_s9 + $0x38] sm:$0xff] }
 0x3b0   : > { %v3665_v5 = vadd.f32 %v6294_v47, %v8134_v58  ;;  %v5799_v44 = vpop.f32.mrb[20].mxu1  ;;  %5871 = vmatprep.mubr.f32.mxu0 %v3695_v37  ;;  %v6735_v37 = vld [vmem:[%s7219_s9 + $0x48] sm:$0xff]  ;;  %v6736_v47 = vld [vmem:[%s7219_s9 + $0x50] sm:$0xff] }
 0x3b1   : > { %v6295_v35 = vadd.f32 %v5799_v44, %v8101_v2  ;;  %v3549_v48 = vpop.f32.mrb[21].mxu1  ;;  %5872 = vmatmul.mubr.f32.gmra.mrb[80].mxu0 %v3696_v11  ;;  %v3698_v59 = vmax.f32 %v3666_v39, 0.0  ;;  %v6737_v11 = vld [vmem:[%s7219_s9 + $0x58] sm:$0xff]  ;;  %v6738_v39 = vld [vmem:[%s7219_s9 + $0x60] sm:$0xff]  ;;  %v6740_v44 = vld [vmem:[%s7219_s9 + $0x70] sm:$0xff] }
 0x3b2   : > { %v3697_v25 = vmax.f32 %v3665_v5, 0.0  ;;  %v6296_v31 = vadd.f32 %v3549_v48, %v8103_v34  ;;  %v6739_v5 = vld [vmem:[%s7219_s9 + $0x68] sm:$0xff]  ;;  %v6742_v48 = vld [vmem:[%s7219_s9 + $0x80] sm:$0xff] }
 0x3b3   : > { %v3668_v61 = vadd.f32 %v6295_v35, %v8134_v58  ;;  %v6741_v35 = vld [vmem:[%s7219_s9 + $0x78] sm:$0xff] }
 0x3b4   : > { %v3667_v26 = vadd.f32 %v6296_v31, %v8134_v58  ;;  %v5802_v10 = vpop.f32.mrb[22].mxu1  ;;  %5874 = vmatprep.mubr.f32.mxu0 %v3697_v25  ;;  %v6743_v25 = vld [vmem:[%s7219_s9 + $0x88] sm:$0xff]  ;;  %v6744_v31 = vld [vmem:[%s7219_s9 + $0x90] sm:$0xff] }
 0x3b5   : > { %v6297_v63 = vadd.f32 %v5802_v10, %v8105_v54  ;;  %v3559_v3 = vpop.f32.mrb[23].mxu1  ;;  %5875 = vmatmul.mubr.f32.gmra.mrb[82].mxu0 %v3698_v59  ;;  %v3700_v2 = vmax.f32 %v3668_v61, 0.0  ;;  %v6745_v59 = vld [vmem:[%s7219_s9 + $0x98] sm:$0xff]  ;;  %v6746_v61 = vld [vmem:[%s7219_s9 + $0xa0] sm:$0xff]  ;;  %v6748_v10 = vld [vmem:[%s7219_s9 + $0xb0] sm:$0xff] }
 0x3b6   : > { %v3699_v27 = vmax.f32 %v3667_v26, 0.0  ;;  %v6298_v38 = vadd.f32 %v3559_v3, %v8107_v40  ;;  %v6747_v26 = vld [vmem:[%s7219_s9 + $0xa8] sm:$0xff]  ;;  %v6750_v3 = vld [vmem:[%s7219_s9 + $0xc0] sm:$0xff] }
 0x3b7   : > { %v3670_v62 = vadd.f32 %v6297_v63, %v8134_v58  ;;  %v6749_v63 = vld [vmem:[%s7219_s9 + $0xb8] sm:$0xff] }
 0x3b8   : > { %v3669_v45 = vadd.f32 %v6298_v38, %v8134_v58  ;;  %v5805_v34 = vpop.f32.mrb[24].mxu1  ;;  %5877 = vmatprep.mubr.f32.mxu0 %v3699_v27  ;;  %v6751_v27 = vld [vmem:[%s7219_s9 + $0xc8] sm:$0xff]  ;;  %v6752_v38 = vld [vmem:[%s7219_s9 + $0xd0] sm:$0xff] }
 0x3b9   : > { %v6299_v30 = vadd.f32 %v5805_v34, %v8109_v8  ;;  %v3569_v55 = vpop.f32.mrb[25].mxu1  ;;  %5878 = vmatmul.mubr.f32.gmra.mrb[84].mxu0 %v3700_v2  ;;  %v3702_v54 = vmax.f32 %v3670_v62, 0.0  ;;  %v6753_v2 = vld [vmem:[%s7219_s9 + $0xd8] sm:$0xff]  ;;  %v6754_v62 = vld [vmem:[%s7219_s9 + $0xe0] sm:$0xff]  ;;  %v6756_v34 = vld [vmem:[%s7219_s9 + $0xf0] sm:$0xff] }
 0x3ba   : > { %v3701_v46 = vmax.f32 %v3669_v45, 0.0  ;;  %v6300_v0 = vadd.f32 %v3569_v55, %v8111_v24  ;;  %v6755_v45 = vld [vmem:[%s7219_s9 + $0xe8] sm:$0xff]  ;;  %v4454_v55 = vld [vmem:[%s8395_s6] ss:$0 sm:$0xff] }
 0x3bb   : > { %v3672_v20 = vadd.f32 %v6299_v30, %v8134_v58  ;;  %v6757_v30 = vld [vmem:[%s7219_s9 + $0xf8] sm:$0xff] }
 0x3bc   : > { %v3671_v23 = vadd.f32 %v6300_v0, %v8134_v58  ;;  %v5808_v40 = vpop.f32.mrb[26].mxu1  ;;  %5880 = vmatprep.mubr.f32.mxu0 %v3701_v46  ;;  %v4455_v46 = vld [vmem:[%s8397_s8] ss:$0 sm:$0xff] }
 0x3bd   : > { %v6301_v1 = vadd.f32 %v5808_v40, %v8113_v17  ;;  %v3579_v21 = vpop.f32.mrb[27].mxu1  ;;  %5881 = vmatmul.mubr.f32.gmra.mrb[86].mxu0 %v3702_v54  ;;  %v3704_v8 = vmax.f32 %v3672_v20, 0.0  ;;  %v8270_v20 = vadd.f32 %v4455_v46, %v4454_v55 }
 0x3be   : > { %v3703_v53 = vmax.f32 %v3671_v23, 0.0  ;;  %v6302_v52 = vadd.f32 %v3579_v21, %v8115_v51 }
 0x3bf   : > { %v3674_v7 = vadd.f32 %v6301_v1, %v8134_v58 }
 0x3c0   : > { %v3673_v15 = vadd.f32 %v6302_v52, %v8134_v58  ;;  %v5811_v24 = vpop.f32.mrb[28].mxu1  ;;  %5883 = vmatprep.mubr.f32.mxu0 %v3703_v53 }
 0x3c1   : > { %v6303_v16 = vadd.f32 %v5811_v24, %v8117_v12  ;;  %v3589_v33 = vpop.f32.mrb[29].mxu1  ;;  %5884 = vmatmul.mubr.f32.gmra.mrb[88].mxu0 %v3704_v8  ;;  %v3706_v17 = vmax.f32 %v3674_v7, 0.0 }
 0x3c2   : > { %v3705_v6 = vmax.f32 %v3673_v15, 0.0  ;;  %v6304_v19 = vadd.f32 %v3589_v33, %v8119_v57 }
 0x3c3   : > { %v3676_v13 = vadd.f32 %v6303_v16, %v8134_v58 }
 0x3c4   : > { %v3675_v18 = vadd.f32 %v6304_v19, %v8134_v58  ;;  %v5814_v51 = vpop.f32.mrb[30].mxu1  ;;  %5886 = vmatprep.mubr.f32.mxu0 %v3705_v6 }
 0x3c5   : > { %v6305_v36 = vadd.f32 %v5814_v51, %v8121_v14  ;;  %v3599_v60 = vpop.f32.mrb[31].mxu1  ;;  %5887 = vmatmul.mubr.f32.gmra.mrb[90].mxu0 %v3706_v17  ;;  %v3708_v42 = vmax.f32 %v3676_v13, 0.0 }
 0x3c6   : > { %v3707_v12 = vmax.f32 %v3675_v18, 0.0  ;;  %v6306_v28 = vadd.f32 %v3599_v60, %v8123_v32  ;;  %v6727_v32 = vld [vmem:[%s7219_s9 + $0x8] sm:$0xff] }
 0x3c7   : > { %v3678_v57 = vadd.f32 %v6305_v36, %v8134_v58 }
 0x3c8   : > { %v3677_v41 = vadd.f32 %v6306_v28, %v8134_v58  ;;  %5889 = vmatprep.mubr.f32.mxu0 %v3707_v12  ;;  %v6729_v58 = vld [vmem:[%s7219_s9 + $0x18] sm:$0xff]  ;;  %s8276_s9 = scalar_lea.vmem [#allocation11], %s4415_s18  ;;  %s4494_s18 = sshll.u32 %s7029_s13, 12 }
 0x3c9   : > { %5890 = vmatmul.mubr.f32.gmra.mrb[92].mxu0 %v3708_v42  ;;  %v3710_v14 = vmax.f32 %v3678_v57, 0.0  ;;  %s4303_s15 = sshll.u32 %s8276_s9, 4  ;;  %s8341_s23 = scalar_lea.hbm %s8596_s26, %s4494_s18  ;;  %s8343_s15 = int_to_ptr.vmem [resolvable:$true] %s4303_s15 }
 0x3ca   : > { %v3709_v43 = vmax.f32 %v3677_v41, 0.0  ;;  %s4290_s13 = scalar_lea.sflag [#allocation5], %s7213_s30  ;;  %s6872_s22 = scalar_lea.vmem %s8343_s15, 4096 }
 0x3cb   : > { %p6873_p10 = scmp.ne.s32.totalorder %s8343_s15, %s6872_s22  ;;  %p6879_p12 = scmp.lt.s32.totalorder %s8343_s15, %s6877_s28 }
 0x3cc   : > { %5892 = vmatprep.mubr.f32.mxu0 %v3709_v43  ;;  %p6880_p1 = scmp.lt.s32.totalorder %s6878_s29, %s6872_s22 }
 0x3cd   : > { %5893 = vmatmul.mubr.f32.gmra.mrb[94].mxu0 %v3710_v14  ;;  %p6874_p3 = pnand %p6873_p10, %p7162_p5 }
 0x3ce   : > { %5899 = vmatprep.mubr.msk.f32.mxu0 %vm436_vm0, %v6726_v50  ;;  %p6881_p2 = por %p6880_p1, %p6879_p12 }
 0x3cf   : > { %p6875_p7 = pneg %p6874_p3 }
 0x3d1   : > { %5900 = vmatmul.mubr.msk.f32.vlgmr.msra.gmra.mrb[64].mxu0 %vm436_vm0, %v6727_v32  ;;  %p6882_p4 = pnand %p6881_p2, %p6875_p7 }
 0x3d2   : > { %5902 = vmatprep.mubr.msk.f32.mxu0 %vm436_vm0, %v6728_v29 }
 0x3d5   : > { %5903 = vmatmul.mubr.msk.f32.gmra.mrb[66].mxu0 %vm436_vm0, %v6729_v58 }
 0x3d6   : > { %5905 = vmatprep.mubr.msk.f32.mxu0 %vm436_vm0, %v6730_v56 }
 0x3d9   : > { %5906 = vmatmul.mubr.msk.f32.gmra.mrb[68].mxu0 %vm436_vm0, %v6731_v9 }
 0x3da   : > { %5908 = vmatprep.mubr.msk.f32.mxu0 %vm436_vm0, %v6732_v22 }
 0x3dd   : > { %5909 = vmatmul.mubr.msk.f32.gmra.mrb[70].mxu0 %vm436_vm0, %v6733_v49 }
 0x3de   : > { %5911 = vmatprep.mubr.msk.f32.mxu0 %vm436_vm0, %v6734_v4 }
 0x3e1   : > { %5912 = vmatmul.mubr.msk.f32.gmra.mrb[72].mxu0 %vm436_vm0, %v6735_v37 }
 0x3e2   : > { %5914 = vmatprep.mubr.msk.f32.mxu0 %vm436_vm0, %v6736_v47 }
 0x3e5   : > { %5915 = vmatmul.mubr.msk.f32.gmra.mrb[74].mxu0 %vm436_vm0, %v6737_v11 }
 0x3e6   : > { %5917 = vmatprep.mubr.msk.f32.mxu0 %vm436_vm0, %v6738_v39 }
 0x3e9   : > { %5918 = vmatmul.mubr.msk.f32.gmra.mrb[76].mxu0 %vm436_vm0, %v6739_v5 }
 0x3ea   : > { %5920 = vmatprep.mubr.msk.f32.mxu0 %vm436_vm0, %v6740_v44 }
 0x3ed   : > { %5921 = vmatmul.mubr.msk.f32.gmra.mrb[78].mxu0 %vm436_vm0, %v6741_v35 }
 0x3ee   : > { %5923 = vmatprep.mubr.msk.f32.mxu0 %vm436_vm0, %v6742_v48 }
 0x3f1   : > { %5924 = vmatmul.mubr.msk.f32.gmra.mrb[80].mxu0 %vm436_vm0, %v6743_v25 }
 0x3f2   : > { %5926 = vmatprep.mubr.msk.f32.mxu0 %vm436_vm0, %v6744_v31 }
 0x3f5   : > { %5927 = vmatmul.mubr.msk.f32.gmra.mrb[82].mxu0 %vm436_vm0, %v6745_v59 }
 0x3f6   : > { %5929 = vmatprep.mubr.msk.f32.mxu0 %vm436_vm0, %v6746_v61 }
 0x3f9   : > { %5930 = vmatmul.mubr.msk.f32.gmra.mrb[84].mxu0 %vm436_vm0, %v6747_v26 }
 0x3fa   : > { %5932 = vmatprep.mubr.msk.f32.mxu0 %vm436_vm0, %v6748_v10 }
 0x3fd   : > { %5933 = vmatmul.mubr.msk.f32.gmra.mrb[86].mxu0 %vm436_vm0, %v6749_v63 }
 0x3fe   : > { %5935 = vmatprep.mubr.msk.f32.mxu0 %vm436_vm0, %v6750_v3 }
 0x401   : > { %5936 = vmatmul.mubr.msk.f32.gmra.mrb[88].mxu0 %vm436_vm0, %v6751_v27 }
 0x402   : > { %5938 = vmatprep.mubr.msk.f32.mxu0 %vm436_vm0, %v6752_v38 }
 0x405   : > { %5939 = vmatmul.mubr.msk.f32.gmra.mrb[90].mxu0 %vm436_vm0, %v6753_v2 }
 0x406   : > { %5941 = vmatprep.mubr.msk.f32.mxu0 %vm436_vm0, %v6754_v62 }
 0x409   : > { %5942 = vmatmul.mubr.msk.f32.gmra.mrb[92].mxu0 %vm436_vm0, %v6755_v45 }
 0x40a   : > { %5944 = vmatprep.mubr.msk.f32.mxu0 %vm436_vm0, %v6756_v34 }
 0x40d   : > { %5945 = vmatmul.mubr.msk.f32.gmra.mrb[94].mxu0 %vm436_vm0, %v6757_v30 }
 0x4a4   : > { %v5901_v0 = vpop.f32.mrb[64].mxu0 }
 0x4a5   : > { %v6307_v54 = vadd.f32 %v5901_v0, %v4454_v55  ;;  %v4034_v23 = vpop.f32.mrb[65].mxu0 }
 0x4a6   : > { %v6309_v40 = vadd.f32 %v4454_v55, %v4034_v23 }
 0x4a7   : > { %v6308_v1 = vadd.f32 %v6307_v54, %v4455_v46 }
 0x4a8   : > { %v6310_v21 = vadd.f32 %v6309_v40, %v4455_v46  ;;  %v5904_v53 = vpop.f32.mrb[66].mxu0 }
 0x4a9   : > { %v4226_v52 = vmax.f32 %v6308_v1, 0.0  ;;  %v6312_v8 = vadd.f32 %v8270_v20, %v5904_v53  ;;  %v4044_v7 = vpop.f32.mrb[67].mxu0 }
 0x4aa   : > { %v4225_v15 = vmax.f32 %v6310_v21, 0.0  ;;  %v6314_v24 = vadd.f32 %v8270_v20, %v4044_v7 }
 0x4ab   : > { %4258 = vst [vmem:[%s8276_s9 + $0x8] sm:$0xff] %v4226_v52  ;;  %v4228_v16 = vmax.f32 %v6312_v8, 0.0 }
 0x4ac   : > { %4257 = vst [vmem:[%s8276_s9] sm:$0xff] %v4225_v15  ;;  %v4227_v33 = vmax.f32 %v6314_v24, 0.0  ;;  %v5907_v6 = vpop.f32.mrb[68].mxu0 }
 0x4ad   : > { %4260 = vst [vmem:[%s8276_s9 + $0x18] sm:$0xff] %v4228_v16  ;;  %v6316_v19 = vadd.f32 %v8270_v20, %v5907_v6  ;;  %v4054_v17 = vpop.f32.mrb[69].mxu0 }
 0x4ae   : > { %4259 = vst [vmem:[%s8276_s9 + $0x10] sm:$0xff] %v4227_v33  ;;  %v6318_v13 = vadd.f32 %v8270_v20, %v4054_v17 }
 0x4af   : > { %v4230_v18 = vmax.f32 %v6316_v19, 0.0 }
 0x4b0   : > { %v4229_v51 = vmax.f32 %v6318_v13, 0.0  ;;  %v5910_v36 = vpop.f32.mrb[70].mxu0 }
 0x4b1   : > { %4262 = vst [vmem:[%s8276_s9 + $0x28] sm:$0xff] %v4230_v18  ;;  %v6320_v60 = vadd.f32 %v8270_v20, %v5910_v36  ;;  %v4064_v12 = vpop.f32.mrb[71].mxu0 }
 0x4b2   : > { %4261 = vst [vmem:[%s8276_s9 + $0x20] sm:$0xff] %v4229_v51  ;;  %v6322_v28 = vadd.f32 %v8270_v20, %v4064_v12 }
 0x4b3   : > { %v4232_v42 = vmax.f32 %v6320_v60, 0.0 }
 0x4b4   : > { %v4231_v57 = vmax.f32 %v6322_v28, 0.0  ;;  %v5913_v41 = vpop.f32.mrb[72].mxu0 }
 0x4b5   : > { %4264 = vst [vmem:[%s8276_s9 + $0x38] sm:$0xff] %v4232_v42  ;;  %v6324_v43 = vadd.f32 %v8270_v20, %v5913_v41  ;;  %v4074_v14 = vpop.f32.mrb[73].mxu0 }
 0x4b6   : > { %4263 = vst [vmem:[%s8276_s9 + $0x30] sm:$0xff] %v4231_v57  ;;  %v6326_v50 = vadd.f32 %v8270_v20, %v4074_v14 }
 0x4b7   : > { %v4234_v32 = vmax.f32 %v6324_v43, 0.0 }
 0x4b8   : > { %v4233_v29 = vmax.f32 %v6326_v50, 0.0  ;;  %v5916_v58 = vpop.f32.mrb[74].mxu0 }
 0x4b9   : > { %4266 = vst [vmem:[%s8276_s9 + $0x48] sm:$0xff] %v4234_v32  ;;  %v6328_v56 = vadd.f32 %v8270_v20, %v5916_v58  ;;  %v4084_v9 = vpop.f32.mrb[75].mxu0 }
 0x4ba   : > { %4265 = vst [vmem:[%s8276_s9 + $0x40] sm:$0xff] %v4233_v29  ;;  %v6330_v22 = vadd.f32 %v8270_v20, %v4084_v9 }
 0x4bb   : > { %v4236_v49 = vmax.f32 %v6328_v56, 0.0 }
 0x4bc   : > { %v4235_v4 = vmax.f32 %v6330_v22, 0.0  ;;  %v5919_v37 = vpop.f32.mrb[76].mxu0 }
 0x4bd   : > { %4268 = vst [vmem:[%s8276_s9 + $0x58] sm:$0xff] %v4236_v49  ;;  %v6332_v47 = vadd.f32 %v8270_v20, %v5919_v37  ;;  %v4094_v11 = vpop.f32.mrb[77].mxu0 }
 0x4be   : > { %4267 = vst [vmem:[%s8276_s9 + $0x50] sm:$0xff] %v4235_v4  ;;  %v6334_v39 = vadd.f32 %v8270_v20, %v4094_v11 }
 0x4bf   : > { %v4238_v5 = vmax.f32 %v6332_v47, 0.0 }
 0x4c0   : > { %v4237_v44 = vmax.f32 %v6334_v39, 0.0  ;;  %v5922_v35 = vpop.f32.mrb[78].mxu0 }
 0x4c1   : > { %4270 = vst [vmem:[%s8276_s9 + $0x68] sm:$0xff] %v4238_v5  ;;  %v6336_v48 = vadd.f32 %v8270_v20, %v5922_v35  ;;  %v4104_v25 = vpop.f32.mrb[79].mxu0 }
 0x4c2   : > { %4269 = vst [vmem:[%s8276_s9 + $0x60] sm:$0xff] %v4237_v44  ;;  %v6338_v31 = vadd.f32 %v8270_v20, %v4104_v25 }
 0x4c3   : > { %v4240_v59 = vmax.f32 %v6336_v48, 0.0 }
 0x4c4   : > { %v4239_v61 = vmax.f32 %v6338_v31, 0.0  ;;  %v5925_v26 = vpop.f32.mrb[80].mxu0 }
 0x4c5   : > { %4272 = vst [vmem:[%s8276_s9 + $0x78] sm:$0xff] %v4240_v59  ;;  %v6340_v10 = vadd.f32 %v8270_v20, %v5925_v26  ;;  %v4114_v63 = vpop.f32.mrb[81].mxu0 }
 0x4c6   : > { %4271 = vst [vmem:[%s8276_s9 + $0x70] sm:$0xff] %v4239_v61  ;;  %v6342_v3 = vadd.f32 %v8270_v20, %v4114_v63 }
 0x4c7   : > { %v4242_v27 = vmax.f32 %v6340_v10, 0.0 }
 0x4c8   : > { %v4241_v38 = vmax.f32 %v6342_v3, 0.0  ;;  %v5928_v2 = vpop.f32.mrb[82].mxu0 }
 0x4c9   : > { %4274 = vst [vmem:[%s8276_s9 + $0x88] sm:$0xff] %v4242_v27  ;;  %v6344_v62 = vadd.f32 %v8270_v20, %v5928_v2  ;;  %v4124_v45 = vpop.f32.mrb[83].mxu0 }
 0x4ca   : > { %4273 = vst [vmem:[%s8276_s9 + $0x80] sm:$0xff] %v4241_v38  ;;  %v6346_v34 = vadd.f32 %v8270_v20, %v4124_v45 }
 0x4cb   : > { %v4244_v30 = vmax.f32 %v6344_v62, 0.0 }
 0x4cc   : > { %v4243_v55 = vmax.f32 %v6346_v34, 0.0  ;;  %v5931_v46 = vpop.f32.mrb[84].mxu0 }
 0x4cd   : > { %4276 = vst [vmem:[%s8276_s9 + $0x98] sm:$0xff] %v4244_v30  ;;  %v6348_v0 = vadd.f32 %v8270_v20, %v5931_v46  ;;  %v4134_v54 = vpop.f32.mrb[85].mxu0 }
 0x4ce   : > { %4275 = vst [vmem:[%s8276_s9 + $0x90] sm:$0xff] %v4243_v55  ;;  %v6350_v23 = vadd.f32 %v8270_v20, %v4134_v54 }
 0x4cf   : > { %v4246_v40 = vmax.f32 %v6348_v0, 0.0 }
 0x4d0   : > { %v4245_v1 = vmax.f32 %v6350_v23, 0.0  ;;  %v5934_v21 = vpop.f32.mrb[86].mxu0 }
 0x4d1   : > { %4278 = vst [vmem:[%s8276_s9 + $0xa8] sm:$0xff] %v4246_v40  ;;  %v6352_v53 = vadd.f32 %v8270_v20, %v5934_v21  ;;  %v4144_v52 = vpop.f32.mrb[87].mxu0 }
 0x4d2   : > { %4277 = vst [vmem:[%s8276_s9 + $0xa0] sm:$0xff] %v4245_v1  ;;  %v6354_v8 = vadd.f32 %v8270_v20, %v4144_v52 }
 0x4d3   : > { %v4248_v7 = vmax.f32 %v6352_v53, 0.0 }
 0x4d4   : > { %v4247_v15 = vmax.f32 %v6354_v8, 0.0  ;;  %v5937_v24 = vpop.f32.mrb[88].mxu0 }
 0x4d5   : > { %4280 = vst [vmem:[%s8276_s9 + $0xb8] sm:$0xff] %v4248_v7  ;;  %v6356_v16 = vadd.f32 %v8270_v20, %v5937_v24  ;;  %v4154_v33 = vpop.f32.mrb[89].mxu0 }
 0x4d6   : > { %4279 = vst [vmem:[%s8276_s9 + $0xb0] sm:$0xff] %v4247_v15  ;;  %v6358_v6 = vadd.f32 %v8270_v20, %v4154_v33 }
 0x4d7   : > { %v4250_v19 = vmax.f32 %v6356_v16, 0.0 }
 0x4d8   : > { %v4249_v17 = vmax.f32 %v6358_v6, 0.0  ;;  %v5940_v13 = vpop.f32.mrb[90].mxu0 }
 0x4d9   : > { %4282 = vst [vmem:[%s8276_s9 + $0xc8] sm:$0xff] %v4250_v19  ;;  %v6360_v18 = vadd.f32 %v8270_v20, %v5940_v13  ;;  %v4164_v51 = vpop.f32.mrb[91].mxu0 }
 0x4da   : > { %4281 = vst [vmem:[%s8276_s9 + $0xc0] sm:$0xff] %v4249_v17  ;;  %v6362_v36 = vadd.f32 %v8270_v20, %v4164_v51 }
 0x4db   : > { %v4252_v60 = vmax.f32 %v6360_v18, 0.0 }
 0x4dc   : > { %v4251_v12 = vmax.f32 %v6362_v36, 0.0  ;;  %v5943_v28 = vpop.f32.mrb[92].mxu0 }
 0x4dd   : > { %4284 = vst [vmem:[%s8276_s9 + $0xd8] sm:$0xff] %v4252_v60  ;;  %v6364_v42 = vadd.f32 %v8270_v20, %v5943_v28  ;;  %v4174_v57 = vpop.f32.mrb[93].mxu0 }
 0x4de   : > { %4283 = vst [vmem:[%s8276_s9 + $0xd0] sm:$0xff] %v4251_v12  ;;  %v6366_v41 = vadd.f32 %v8270_v20, %v4174_v57 }
 0x4df   : > { %v4254_v43 = vmax.f32 %v6364_v42, 0.0 }
 0x4e0   : > { %v4253_v14 = vmax.f32 %v6366_v41, 0.0  ;;  %v5946_v50 = vpop.f32.mrb[94].mxu0 }
 0x4e1   : > { %4286 = vst [vmem:[%s8276_s9 + $0xe8] sm:$0xff] %v4254_v43  ;;  %v6368_v32 = vadd.f32 %v8270_v20, %v5946_v50  ;;  %v4184_v29 = vpop.f32.mrb[95].mxu0 }
 0x4e2   : > { %4285 = vst [vmem:[%s8276_s9 + $0xe0] sm:$0xff] %v4253_v14  ;;  %v6370_v58 = vadd.f32 %v8270_v20, %v4184_v29 }
 0x4e3   : > { %v4256_v56 = vmax.f32 %v6368_v32, 0.0 }
 0x4e4   : > { %v4255_v9 = vmax.f32 %v6370_v58, 0.0 }
 0x4e5   : > { %4288 = vst [vmem:[%s8276_s9 + $0xf8] sm:$0xff] %v4256_v56 }
 0x4e6   : > { %4287 = vst [vmem:[%s8276_s9 + $0xf0] sm:$0xff] %v4255_v9 }
 0x4e7   : > { %6885 = shalt.err (!%p6882_p4)
}
 0x4e8   : > { %s6886_s24 = scalar_lea.hbm %s8341_s23, 4096  ;;  %s6890_s9 = scalar_lea.hbm %s8596_s26, 8192 }
 0x4e9   : > { %p6887_p9 = scmp.ne.s32.totalorder %s8341_s23, %s6886_s24  ;;  %p6891_p8 = scmp.lt.u32.totalorder %s8341_s23, %s8596_s26 }
 0x4ea   : > { %p6892_p13 = scmp.lt.u32.totalorder %s6890_s9, %s6886_s24  ;;  %p6894_p10 = scmp.lt.u32.totalorder %s6886_s24, %s8341_s23 }
 0x4eb   : > { %p6888_p0 = pnand %p6887_p9, %p7162_p5 }
 0x4ec   : > { %p6893_p6 = por %p6892_p13, %p6891_p8 }
 0x4ed   : > { %p6889_p11 = pneg %p6888_p0 }
 0x4ee   : > { %p6895_p3 = por %p6894_p10, %p6893_p6 }
 0x4f0   : > { %p6896_p7 = pnand %p6895_p3, %p6889_p11 }
 0x4f2   : > { %6899 = shalt.err (!%p6896_p7)
}
 0x4f3   : > { %s6956_s25 = smov 128   ;;  %s6957_s22 = smov 8  }
 0x4f4   : > { %6641 = dma.vmem_to_hbm [thread:$0]  (%p7162_p5), %s8343_s15, 4096, %s8341_s23, %s4290_s13, %s6956_s25, %s6956_s25, %s6957_s22  }
 0x4f5 PF: > { %s8597_s20 = sld [smem:[#allocation16_spill]]  ;;  %s8598_s28 = sld [smem:[#allocation17_spill]] }
 0x4f6   : > { %p8600_p1 = scmp.ge.s32.totalorder %s6946_s12, 2 }
 0x4fb   : > { %s4318_s29 = sand.u32 1, %s8597_s20   ;;  %p8599_p12 = scmp.ne.s32.totalorder %s8598_s28, 0 }
 0x4fc   : > { %s4319_s24 = scalar_lea.sflag [#allocation5], %s4318_s29 }
 0x4fd   : > { %p6658_p2 = pnand %p8600_p1, %p8599_p12 }
 0x4ff   : > { %6929 = dma.done.wait (!%p6658_p2), %s4319_s24, 4096  }
 0x500   : > { %6931 = vsyncadd (!%p6658_p2), %s4319_s24, 4294963200  ;;  %p24_p4 = scmp.ge.s32.totalorder %s7148_s14, 4   ;;  %s8601_s30 = smov %s6938_s10 }
 0x501   : > { %s8602_s10 = smov %s6942_s11  ;;  %s8603_s11 = smov %s7158_s16 }
 0x502   : > { %s8604_s12 = smov %s7148_s14  ;;  %26 = sbr.rel (!%p24_p4) target bundleno = 9 (0x9), region = 122 }
 0x509   :  { %4324 = vsyncpa [#allocation4], 1 }
 0x50a   :  { %4326 = vsyncpa [#allocation4 + $0x1], 1 }
 0x50b   :  { %4327 = vsyncpa [#allocation7], 1 }
 0x50c   :  { %4328 = vsyncpa [#allocation10], 1 }
 0x50d   :  { %4329 = vsyncpa [#allocation5], 1 }
 0x50e   :  { %4331 = vsyncpa [#allocation5 + $0x1], 1 }

</bundles_post_ra>
